<compile_context>
chip_gen: v7x
topology: tpu7x:2x2x1
jax: 0.10.0
libtpu: 0.0.40
codegen_flags: <defaults>
</compile_context>

<pallas_src>
import functools

import jax
import jax.numpy as jnp
from jax import lax
from jax.experimental import pallas as pl
from jax.experimental.pallas import tpu as pltpu


# ---------------------------------------------------------------------------
# Kernel A: transposed conv (kernel == stride, padding 0) as a single matmul.
#   out[(co,di,hi,wi), s] = sum_ci W[(co,di,hi,wi), ci] * x[ci, s] + bias[co]
# ---------------------------------------------------------------------------
def _upsample_matmul_kernel(x_ref, w_ref, b_ref, o_ref):
    res = jnp.dot(w_ref[...], x_ref[0], preferred_element_type=jnp.float32)
    res = res + b_ref[...]
    o_ref[...] = res[None].astype(o_ref.dtype)


# ---------------------------------------------------------------------------
# Kernel B: 3x3x3 (or 1x3x3) conv, stride 1, on a zero-padded input; one output
# depth slice per grid step.  Each tap is a (Co, C) @ (C, Ho*Wp) matmul on a flat
# shifted window.  Bias fused; GroupNorm sum / sumsq accumulated across the depth
# axis into resident output blocks (depth axis marked "arbitrary").
# ---------------------------------------------------------------------------
def _conv3_gn_stats_kernel(*refs, kd2, Wp, L):
    x_refs = refs[:kd2]
    w_ref, b_ref, m_ref = refs[kd2:kd2 + 3]
    o_ref, ssum_ref, ssq_ref = refs[kd2 + 3:]

    acc = None
    for kd in range(kd2):
        xin = x_refs[kd][0, 0]                        # (C, Hp*Wp)
        for kh in range(3):
            for kw in range(3):
                tap = (kd * 3 + kh) * 3 + kw
                off = kh * Wp + kw
                rhs = xin[:, off:off + L]             # (C, Ho*Wp), static slice
                t = jnp.dot(w_ref[tap], rhs, preferred_element_type=jnp.float32)
                acc = t if acc is None else acc + t
    out = acc + b_ref[...]                            # (Co, Ho*Wp)
    o_ref[...] = out[None, None].astype(o_ref.dtype)

    # masked GroupNorm statistics (mask zeroes the 2 junk columns of each Wp row)
    om = out * m_ref[...]
    s1 = jnp.sum(om, axis=1, keepdims=True)           # (Co, 1)
    s2 = jnp.sum(om * om, axis=1, keepdims=True)      # (Co, 1)

    @pl.when(pl.program_id(1) == 0)
    def _init():
        ssum_ref[...] = jnp.zeros_like(ssum_ref)
        ssq_ref[...] = jnp.zeros_like(ssq_ref)

    ssum_ref[...] += s1[None]
    ssq_ref[...] += s2[None]


# ---------------------------------------------------------------------------
# Kernel C: per-(n, c) GroupNorm affine + LeakyReLU; output BlockSpec writes the
# final NCDHW layout directly.
# ---------------------------------------------------------------------------
def _gn_act_kernel(x_ref, scale_ref, shift_ref, o_ref, *, Wo, slope):
    xin = x_ref[0, 0]                                 # (Co, Ho, Wp)
    v = xin[:, :, :Wo] * scale_ref[0] + shift_ref[0]  # (Co, Ho, Wo)
    y = jnp.where(v >= 0, v, v * slope)
    o_ref[...] = y[None, :, None].astype(o_ref.dtype)


def _pick_spatial_tile(s):
    for t in (2048, 1024, 512, 256, 128):
        if s % t == 0:
            return t
    return s


def _shifted_depth_index_map(n, d, *, kd):
    return (n, d + kd, 0, 0)


@functools.partial(jax.jit, static_argnames=("aniso_d", "num_downsamples"))
def adaptive_transposed_conv_upsample(x, wt, bt, wc, bc, gamma, beta, *,
                                      aniso_d, num_downsamples):
    """Forward of AdaptiveTransposedConvUpsample (stride=2).

    x:  (N, Ci, D, H, W) f32 NCDHW
    wt: (Ci, Co, 2, 2, 2)  transposed-conv weight (PyTorch ConvTranspose3d layout)
    bt: (Co,)              transposed-conv bias
    wc: (Co, Co, 3, 3, 3)  3x3x3 conv weight (PyTorch Conv3d layout)
    bc: (Co,)              conv bias
    gamma, beta: (Co,)     GroupNorm(8) affine
    Returns (y, new_num_downsamples); y is (N, Co, Do, 2H, 2W) NCDHW.
    """
    eps = 1e-5
    negative_slope = 0.01
    num_groups = 8

    N, Ci, D, H, W = x.shape
    Co = wt.shape[1]

    # -------- stage 1: InflatableTransposedConv3d (kernel == stride == 2) --------
    remained = max(num_downsamples - aniso_d, 0)
    sd = 2 if remained >= 1 else 1
    w1 = wt if sd == 2 else jnp.sum(wt, axis=2, keepdims=True)    # (Ci, Co, kd1, 2, 2)
    kd1 = 2 if sd == 2 else 1
    Ck1 = Co * kd1 * 4
    w1m = jnp.transpose(w1, (1, 2, 3, 4, 0)).reshape(Ck1, Ci)     # rows = (co,di,hi,wi)
    b1m = jnp.broadcast_to(bt[:, None], (Co, kd1 * 4)).reshape(Ck1, 1)

    S1 = D * H * W
    ts = _pick_spatial_tile(S1)
    x3 = x.reshape(N, Ci, S1)

    yb = pl.pallas_call(
        _upsample_matmul_kernel,
        out_shape=jax.ShapeDtypeStruct((N, Ck1, S1), jnp.float32),
        grid_spec=pltpu.PrefetchScalarGridSpec(
            num_scalar_prefetch=0,
            grid=(N, S1 // ts),
            in_specs=[
                pl.BlockSpec((1, Ci, ts), lambda n, s: (n, 0, s)),
                pl.BlockSpec((Ck1, Ci), lambda n, s: (0, 0)),
                pl.BlockSpec((Ck1, 1), lambda n, s: (0, 0)),
            ],
            out_specs=pl.BlockSpec((1, Ck1, ts), lambda n, s: (n, 0, s)),
        ),
        compiler_params=pltpu.CompilerParams(
            dimension_semantics=("parallel", "parallel")),
    )(x3, w1m, b1m)

    Do, Ho, Wo = D * kd1, 2 * H, 2 * W
    nd1 = num_downsamples - 1   # x.num_downsamples -= num_upsamples (=1)

    # depatchify to (N, Do, Co, Ho, Wo) + halo zero-pad for the 3x3 conv
    # (single fused XLA layout pass; everything else stays in Pallas)
    y1 = yb.reshape(N, Co, kd1, 2, 2, D, H, W)
    y1 = jnp.transpose(y1, (0, 5, 2, 1, 6, 3, 7, 4))
    y1 = y1.reshape(N, Do, Co, Ho, Wo)

    # -------- stage 2: InflatableConv3d(k=3, s=1, p=1) + fused GroupNorm stats ---
    pending = max(aniso_d - nd1, 0)
    w2 = wc if pending == 0 else jnp.sum(wc, axis=2, keepdims=True)  # (Co,Co,kd2,3,3)
    kd2 = 3 if pending == 0 else 1
    pd = 1 if kd2 == 3 else 0
    T = kd2 * 9
    w2m = jnp.transpose(w2, (2, 3, 4, 0, 1)).reshape(T, Co, Co)
    b2m = bc.reshape(Co, 1)

    Hp, Wp = Ho + 3, Wo + 2       # H padded (1, 2): halo + slack for flat windows
    Dp = Do + 2 * pd
    L = Ho * Wp
    y1p = jnp.pad(y1, ((0, 0), (pd, pd), (0, 0), (1, 2), (1, 1)))
    y1pf = y1p.reshape(N, Dp, Co, Hp * Wp)

    # 1.0 on valid columns, 0.0 on the 2 junk columns of every Wp-wide row
    mask = jnp.broadcast_to((jnp.arange(Wp) < Wo)[None, :], (Ho, Wp))
    mask = mask.reshape(1, L).astype(jnp.float32)

    x_specs = [
        pl.BlockSpec((1, 1, Co, Hp * Wp),
                     functools.partial(_shifted_depth_index_map, kd=kd))
        for kd in range(kd2)
    ]
    y2, ssum, ssq = pl.pallas_call(
        functools.partial(_conv3_gn_stats_kernel, kd2=kd2, Wp=Wp, L=L),
        out_shape=(
            jax.ShapeDtypeStruct((N, Do, Co, L), jnp.float32),
            jax.ShapeDtypeStruct((N, Co, 1), jnp.float32),
            jax.ShapeDtypeStruct((N, Co, 1), jnp.float32),
        ),
        grid_spec=pltpu.PrefetchScalarGridSpec(
            num_scalar_prefetch=0,
            grid=(N, Do),
            in_specs=x_specs + [
                pl.BlockSpec((T, Co, Co), lambda n, d: (0, 0, 0)),
                pl.BlockSpec((Co, 1), lambda n, d: (0, 0)),
                pl.BlockSpec((1, L), lambda n, d: (0, 0)),
            ],
            out_specs=[
                pl.BlockSpec((1, 1, Co, L), lambda n, d: (n, d, 0, 0)),
                pl.BlockSpec((1, Co, 1), lambda n, d: (n, 0, 0)),
                pl.BlockSpec((1, Co, 1), lambda n, d: (n, 0, 0)),
            ],
        ),
        compiler_params=pltpu.CompilerParams(
            dimension_semantics=("parallel", "arbitrary")),
    )(*([y1pf] * kd2), w2m, b2m, mask)

    # -------- GroupNorm finalisation (tiny) + fused affine / LeakyReLU kernel ----
    Cg = Co // num_groups
    count = Cg * Do * Ho * Wo
    gsum = ssum.reshape(N, num_groups, Cg).sum(axis=2)
    gsq = ssq.reshape(N, num_groups, Cg).sum(axis=2)
    mean = gsum / count
    var = gsq / count - mean * mean
    inv = 1.0 / jnp.sqrt(var + eps)                       # (N, G)
    inv_c = jnp.repeat(inv, Cg, axis=1)                   # (N, Co)
    mean_c = jnp.repeat(mean, Cg, axis=1)
    scale = (gamma[None, :] * inv_c).reshape(N, Co, 1, 1)
    shift = (beta[None, :] - mean_c * gamma[None, :] * inv_c).reshape(N, Co, 1, 1)

    y2v = y2.reshape(N, Do, Co, Ho, Wp)
    out = pl.pallas_call(
        functools.partial(_gn_act_kernel, Wo=Wo, slope=negative_slope),
        out_shape=jax.ShapeDtypeStruct((N, Co, Do, Ho, Wo), x.dtype),
        grid_spec=pltpu.PrefetchScalarGridSpec(
            num_scalar_prefetch=0,
            grid=(N, Do),
            in_specs=[
                pl.BlockSpec((1, 1, Co, Ho, Wp), lambda n, d: (n, d, 0, 0, 0)),
                pl.BlockSpec((1, Co, 1, 1), lambda n, d: (n, 0, 0, 0)),
                pl.BlockSpec((1, Co, 1, 1), lambda n, d: (n, 0, 0, 0)),
            ],
            out_specs=pl.BlockSpec((1, Co, 1, Ho, Wo), lambda n, d: (n, 0, d, 0, 0)),
        ),
        compiler_params=pltpu.CompilerParams(
            dimension_semantics=("parallel", "parallel")),
    )(y2v, scale, shift)

    return out, nd1


# ---------------------------------------------------------------------------
# Pure-JAX reference (same branch selection) for the self-test.
# ---------------------------------------------------------------------------
def _reference_forward(x, wt, bt, wc, bc, gamma, beta, *, aniso_d, num_downsamples):
    eps = 1e-5
    remained = max(num_downsamples - aniso_d, 0)
    sd = 2 if remained >= 1 else 1
    w1 = wt if sd == 2 else jnp.sum(wt, axis=2, keepdims=True)
    kd1 = w1.shape[2]
    # conv_transpose == conv with spatially-flipped, IO-swapped kernel on a
    # lhs-dilated input, padding = kernel - 1
    w1c = jnp.transpose(jnp.flip(w1, axis=(2, 3, 4)), (1, 0, 2, 3, 4))
    y1 = lax.conv_general_dilated(
        x, w1c, window_strides=(1, 1, 1),
        padding=((kd1 - 1, kd1 - 1), (1, 1), (1, 1)),
        lhs_dilation=(sd, 2, 2),
        dimension_numbers=("NCDHW", "OIDHW", "NCDHW"))
    y1 = y1 + bt.reshape(1, -1, 1, 1, 1)
    nd1 = num_downsamples - 1

    pending = max(aniso_d - nd1, 0)
    w2 = wc if pending == 0 else jnp.sum(wc, axis=2, keepdims=True)
    pd = 1 if pending == 0 else 0
    y2 = lax.conv_general_dilated(
        y1, w2, window_strides=(1, 1, 1),
        padding=((pd, pd), (1, 1), (1, 1)),
        dimension_numbers=("NCDHW", "OIDHW", "NCDHW"))
    y2 = y2 + bc.reshape(1, -1, 1, 1, 1)

    G = 8
    N, C, Do, Ho, Wo = y2.shape
    yg = y2.reshape(N, G, C // G, Do, Ho, Wo)
    mean = yg.mean(axis=(2, 3, 4, 5), keepdims=True)
    var = yg.var(axis=(2, 3, 4, 5), keepdims=True)
    yn = ((yg - mean) / jnp.sqrt(var + eps)).reshape(N, C, Do, Ho, Wo)
    yn = yn * gamma.reshape(1, -1, 1, 1, 1) + beta.reshape(1, -1, 1, 1, 1)
    return jnp.where(yn >= 0, yn, 0.01 * yn)


if __name__ == "__main__":
    key = jax.random.PRNGKey(0)
    k1, k2, k3, k4, k5, k6, k7 = jax.random.split(key, 7)

    N, Ci, Co = 2, 4, 8
    D, H, W = 4, 16, 16

    x = jax.random.normal(k1, (N, Ci, D, H, W), dtype=jnp.float32)
    wt = jax.random.normal(k2, (Ci, Co, 2, 2, 2), dtype=jnp.float32) * 0.1
    bt = jax.random.normal(k3, (Co,), dtype=jnp.float32) * 0.1
    wc = jax.random.normal(k4, (Co, Co, 3, 3, 3), dtype=jnp.float32) * 0.1
    bc = jax.random.normal(k5, (Co,), dtype=jnp.float32) * 0.1
    gamma = 1.0 + 0.1 * jax.random.normal(k6, (Co,), dtype=jnp.float32)
    beta = 0.1 * jax.random.normal(k7, (Co,), dtype=jnp.float32)

    # Case 1: depth upsample still pending -> full (2,2,2)/stride-2 transposed conv,
    #         then full 3x3x3 conv (no pending hw downsamples afterwards).
    y1, nd1 = adaptive_transposed_conv_upsample(
        x, wt, bt, wc, bc, gamma, beta, aniso_d=0, num_downsamples=2)
    jax.block_until_ready(y1)
    r1 = _reference_forward(x, wt, bt, wc, bc, gamma, beta,
                            aniso_d=0, num_downsamples=2)
    assert y1.shape == (N, Co, 2 * D, 2 * H, 2 * W), y1.shape
    assert nd1 == 1
    assert jnp.allclose(y1, r1, atol=2e-3, rtol=2e-3), float(jnp.max(jnp.abs(y1 - r1)))

    # Case 2: anisotropic, no remaining depth upsamples -> depth-collapsed
    #         (1,2,2)/stride-(1,2,2) transposed conv, then (1,3,3) conv.
    y2, nd2 = adaptive_transposed_conv_upsample(
        x, wt, bt, wc, bc, gamma, beta, aniso_d=2, num_downsamples=1)
    jax.block_until_ready(y2)
    r2 = _reference_forward(x, wt, bt, wc, bc, gamma, beta,
                            aniso_d=2, num_downsamples=1)
    assert y2.shape == (N, Co, D, 2 * H, 2 * W), y2.shape
    assert nd2 == 0
    assert jnp.allclose(y2, r2, atol=2e-3, rtol=2e-3), float(jnp.max(jnp.abs(y2 - r2)))

    print("KERNEL_OK")
</pallas_src>

<mosaic_0001>
module attributes {stable_mosaic.version = 11 : i64} {
  func.func @_upsample_matmul_kernel(%arg0: i32, %arg1: i32, %arg2: memref<1x4x1024xf32, #tpu.memory_space<vmem>>, %arg3: memref<64x4xf32, #tpu.memory_space<vmem>>, %arg4: memref<64x1xf32, #tpu.memory_space<vmem>>, %arg5: memref<1x64x1024xf32, #tpu.memory_space<vmem>>) attributes {dimension_semantics = [#tpu.dimension_semantics<parallel>, #tpu.dimension_semantics<parallel>], iteration_bounds = array<i64: 2, 1>, scalar_prefetch = 0 : i64, scratch_operands = 0 : i64, tpu.core_type = #tpu.core_type<tc>, window_params = [{transform_indices = @transform_0, window_bounds = array<i64: 1, 4, 1024>}, {pipeline_mode = #tpu.pipeline_mode<synchronous>, transform_indices = @transform_1, window_bounds = array<i64: 64, 4>}, {pipeline_mode = #tpu.pipeline_mode<synchronous>, transform_indices = @transform_2, window_bounds = array<i64: 64, 1>}, {transform_indices = @transform_3, window_bounds = array<i64: 1, 64, 1024>}]} {
    %c0 = arith.constant 0 : index
    %c0_0 = arith.constant 0 : index
    %0 = vector.load %arg3[%c0, %c0_0] : memref<64x4xf32, #tpu.memory_space<vmem>>, vector<64x4xf32>
    %c0_1 = arith.constant 0 : index
    %c0_2 = arith.constant 0 : index
    %c0_3 = arith.constant 0 : index
    %1 = vector.load %arg2[%c0_1, %c0_2, %c0_3] : memref<1x4x1024xf32, #tpu.memory_space<vmem>>, vector<1x4x1024xf32>
    %2 = vector.shape_cast %1 : vector<1x4x1024xf32> to vector<4x1024xf32>
    %cst = arith.constant dense<0.000000e+00> : vector<64x1024xf32>
    %3 = tpu.matmul %0, %2, %cst {dimension_numbers = #tpu.dot_dimension_numbers<[1], [0], [0], [1], [0, 0, 1, 1], [], []>} : vector<64x4xf32>, vector<4x1024xf32>, vector<64x1024xf32> -> vector<64x1024xf32>
    %c0_4 = arith.constant 0 : index
    %c0_5 = arith.constant 0 : index
    %4 = vector.load %arg4[%c0_4, %c0_5] : memref<64x1xf32, #tpu.memory_space<vmem>>, vector<64x1xf32>
    %5 = vector.broadcast %4 : vector<64x1xf32> to vector<64x1024xf32>
    %6 = arith.addf %3, %5 : vector<64x1024xf32>
    %7 = vector.shape_cast %6 : vector<64x1024xf32> to vector<1x64x1024xf32>
    %c0_6 = arith.constant 0 : index
    %c0_7 = arith.constant 0 : index
    %c0_8 = arith.constant 0 : index
    %8 = vector.load %arg5[%c0_6, %c0_7, %c0_8] : memref<1x64x1024xf32, #tpu.memory_space<vmem>>, vector<1x64x1024xf32>
    tpu.vector_store %arg5[%c0_6, %c0_7, %c0_8], %7 {strides = array<i32>} : memref<1x64x1024xf32, #tpu.memory_space<vmem>>, vector<1x64x1024xf32>,
    return
  }
  func.func @transform_0(%arg0: i32, %arg1: i32) -> (i32, i32, i32) {
    %c0_i32 = arith.constant 0 : i32
    %c0_i32_0 = arith.constant 0 : i32
    return %arg0, %c0_i32, %arg1 : i32, i32, i32
  }
  func.func @transform_1(%arg0: i32, %arg1: i32) -> (i32, i32) {
    %c0_i32 = arith.constant 0 : i32
    %c0_i32_0 = arith.constant 0 : i32
    %c0_i32_1 = arith.constant 0 : i32
    return %c0_i32, %c0_i32_0 : i32, i32
  }
  func.func @transform_2(%arg0: i32, %arg1: i32) -> (i32, i32) {
    %c0_i32 = arith.constant 0 : i32
    %c0_i32_0 = arith.constant 0 : i32
    %c0_i32_1 = arith.constant 0 : i32
    return %c0_i32, %c0_i32_0 : i32, i32
  }
  func.func @transform_3(%arg0: i32, %arg1: i32) -> (i32, i32, i32) {
    %c0_i32 = arith.constant 0 : i32
    %c0_i32_0 = arith.constant 0 : i32
    return %arg0, %c0_i32, %arg1 : i32, i32, i32
  }
}

module attributes {stable_mosaic.version = 11 : i64} {
  func.func @_conv3_gn_stats_kernel(%arg0: i32, %arg1: i32, %arg2: memref<1x1x8x1190xf32, #tpu.memory_space<vmem>>, %arg3: memref<1x1x8x1190xf32, #tpu.memory_space<vmem>>, %arg4: memref<1x1x8x1190xf32, #tpu.memory_space<vmem>>, %arg5: memref<27x8x8xf32, #tpu.memory_space<vmem>>, %arg6: memref<8x1xf32, #tpu.memory_space<vmem>>, %arg7: memref<1x1088xf32, #tpu.memory_space<vmem>>, %arg8: memref<1x1x8x1088xf32, #tpu.memory_space<vmem>>, %arg9: memref<1x8x1xf32, #tpu.memory_space<vmem>>, %arg10: memref<1x8x1xf32, #tpu.memory_space<vmem>>) attributes {dimension_semantics = [#tpu.dimension_semantics<parallel>, #tpu.dimension_semantics<arbitrary>], iteration_bounds = array<i64: 2, 8>, scalar_prefetch = 0 : i64, scratch_operands = 0 : i64, tpu.core_type = #tpu.core_type<tc>, window_params = [{transform_indices = @transform_0, window_bounds = array<i64: 1, 1, 8, 1190>}, {transform_indices = @transform_1, window_bounds = array<i64: 1, 1, 8, 1190>}, {transform_indices = @transform_2, window_bounds = array<i64: 1, 1, 8, 1190>}, {pipeline_mode = #tpu.pipeline_mode<synchronous>, transform_indices = @transform_3, window_bounds = array<i64: 27, 8, 8>}, {pipeline_mode = #tpu.pipeline_mode<synchronous>, transform_indices = @transform_4, window_bounds = array<i64: 8, 1>}, {pipeline_mode = #tpu.pipeline_mode<synchronous>, transform_indices = @transform_5, window_bounds = array<i64: 1, 1088>}, {transform_indices = @transform_6, window_bounds = array<i64: 1, 1, 8, 1088>}, {transform_indices = @transform_7, window_bounds = array<i64: 1, 8, 1>}, {transform_indices = @transform_8, window_bounds = array<i64: 1, 8, 1>}]} {
    %c0 = arith.constant 0 : index
    %c0_0 = arith.constant 0 : index
    %c0_1 = arith.constant 0 : index
    %c0_2 = arith.constant 0 : index
    %0 = vector.load %arg2[%c0, %c0_0, %c0_1, %c0_2] : memref<1x1x8x1190xf32, #tpu.memory_space<vmem>>, vector<1x1x8x1190xf32>
    %1 = vector.shape_cast %0 : vector<1x1x8x1190xf32> to vector<8x1190xf32>
    %2 = vector.extract_strided_slice %1 {offsets = [0, 0], sizes = [8, 1088], strides = [1, 1]} : vector<8x1190xf32> to vector<8x1088xf32>
    %c0_3 = arith.constant 0 : index
    %c0_4 = arith.constant 0 : index
    %c0_5 = arith.constant 0 : index
    %3 = vector.load %arg5[%c0_3, %c0_4, %c0_5] : memref<27x8x8xf32, #tpu.memory_space<vmem>>, vector<1x8x8xf32>
    %4 = vector.shape_cast %3 : vector<1x8x8xf32> to vector<8x8xf32>
    %cst = arith.constant dense<0.000000e+00> : vector<8x1088xf32>
    %5 = tpu.matmul %4, %2, %cst {dimension_numbers = #tpu.dot_dimension_numbers<[1], [0], [0], [1], [0, 0, 1, 1], [], []>} : vector<8x8xf32>, vector<8x1088xf32>, vector<8x1088xf32> -> vector<8x1088xf32>
    %6 = vector.extract_strided_slice %1 {offsets = [0, 1], sizes = [8, 1088], strides = [1, 1]} : vector<8x1190xf32> to vector<8x1088xf32>
    %c1 = arith.constant 1 : index
    %c0_6 = arith.constant 0 : index
    %c0_7 = arith.constant 0 : index
    %7 = vector.load %arg5[%c1, %c0_6, %c0_7] : memref<27x8x8xf32, #tpu.memory_space<vmem>>, vector<1x8x8xf32>
    %8 = vector.shape_cast %7 : vector<1x8x8xf32> to vector<8x8xf32>
    %cst_8 = arith.constant dense<0.000000e+00> : vector<8x1088xf32>
    %9 = tpu.matmul %8, %6, %cst_8 {dimension_numbers = #tpu.dot_dimension_numbers<[1], [0], [0], [1], [0, 0, 1, 1], [], []>} : vector<8x8xf32>, vector<8x1088xf32>, vector<8x1088xf32> -> vector<8x1088xf32>
    %10 = arith.addf %5, %9 : vector<8x1088xf32>
    %11 = vector.extract_strided_slice %1 {offsets = [0, 2], sizes = [8, 1088], strides = [1, 1]} : vector<8x1190xf32> to vector<8x1088xf32>
    %c2 = arith.constant 2 : index
    %c0_9 = arith.constant 0 : index
    %c0_10 = arith.constant 0 : index
    %12 = vector.load %arg5[%c2, %c0_9, %c0_10] : memref<27x8x8xf32, #tpu.memory_space<vmem>>, vector<1x8x8xf32>
    %13 = vector.shape_cast %12 : vector<1x8x8xf32> to vector<8x8xf32>
    %cst_11 = arith.constant dense<0.000000e+00> : vector<8x1088xf32>
    %14 = tpu.matmul %13, %11, %cst_11 {dimension_numbers = #tpu.dot_dimension_numbers<[1], [0], [0], [1], [0, 0, 1, 1], [], []>} : vector<8x8xf32>, vector<8x1088xf32>, vector<8x1088xf32> -> vector<8x1088xf32>
    %15 = arith.addf %10, %14 : vector<8x1088xf32>
    %16 = vector.extract_strided_slice %1 {offsets = [0, 34], sizes = [8, 1088], strides = [1, 1]} : vector<8x1190xf32> to vector<8x1088xf32>
    %c3 = arith.constant 3 : index
    %c0_12 = arith.constant 0 : index
    %c0_13 = arith.constant 0 : index
    %17 = vector.load %arg5[%c3, %c0_12, %c0_13] : memref<27x8x8xf32, #tpu.memory_space<vmem>>, vector<1x8x8xf32>
    %18 = vector.shape_cast %17 : vector<1x8x8xf32> to vector<8x8xf32>
    %cst_14 = arith.constant dense<0.000000e+00> : vector<8x1088xf32>
    %19 = tpu.matmul %18, %16, %cst_14 {dimension_numbers = #tpu.dot_dimension_numbers<[1], [0], [0], [1], [0, 0, 1, 1], [], []>} : vector<8x8xf32>, vector<8x1088xf32>, vector<8x1088xf32> -> vector<8x1088xf32>
    %20 = arith.addf %15, %19 : vector<8x1088xf32>
    %21 = vector.extract_strided_slice %1 {offsets = [0, 35], sizes = [8, 1088], strides = [1, 1]} : vector<8x1190xf32> to vector<8x1088xf32>
    %c4 = arith.constant 4 : index
    %c0_15 = arith.constant 0 : index
    %c0_16 = arith.constant 0 : index
    %22 = vector.load %arg5[%c4, %c0_15, %c0_16] : memref<27x8x8xf32, #tpu.memory_space<vmem>>, vector<1x8x8xf32>
    %23 = vector.shape_cast %22 : vector<1x8x8xf32> to vector<8x8xf32>
    %cst_17 = arith.constant dense<0.000000e+00> : vector<8x1088xf32>
    %24 = tpu.matmul %23, %21, %cst_17 {dimension_numbers = #tpu.dot_dimension_numbers<[1], [0], [0], [1], [0, 0, 1, 1], [], []>} : vector<8x8xf32>, vector<8x1088xf32>, vector<8x1088xf32> -> vector<8x1088xf32>
    %25 = arith.addf %20, %24 : vector<8x1088xf32>
    %26 = vector.extract_strided_slice %1 {offsets = [0, 36], sizes = [8, 1088], strides = [1, 1]} : vector<8x1190xf32> to vector<8x1088xf32>
    %c5 = arith.constant 5 : index
    %c0_18 = arith.constant 0 : index
    %c0_19 = arith.constant 0 : index
    %27 = vector.load %arg5[%c5, %c0_18, %c0_19] : memref<27x8x8xf32, #tpu.memory_space<vmem>>, vector<1x8x8xf32>
    %28 = vector.shape_cast %27 : vector<1x8x8xf32> to vector<8x8xf32>
    %cst_20 = arith.constant dense<0.000000e+00> : vector<8x1088xf32>
    %29 = tpu.matmul %28, %26, %cst_20 {dimension_numbers = #tpu.dot_dimension_numbers<[1], [0], [0], [1], [0, 0, 1, 1], [], []>} : vector<8x8xf32>, vector<8x1088xf32>, vector<8x1088xf32> -> vector<8x1088xf32>
    %30 = arith.addf %25, %29 : vector<8x1088xf32>
    %31 = vector.extract_strided_slice %1 {offsets = [0, 68], sizes = [8, 1088], strides = [1, 1]} : vector<8x1190xf32> to vector<8x1088xf32>
    %c6 = arith.constant 6 : index
    %c0_21 = arith.constant 0 : index
    %c0_22 = arith.constant 0 : index
    %32 = vector.load %arg5[%c6, %c0_21, %c0_22] : memref<27x8x8xf32, #tpu.memory_space<vmem>>, vector<1x8x8xf32>
    %33 = vector.shape_cast %32 : vector<1x8x8xf32> to vector<8x8xf32>
    %cst_23 = arith.constant dense<0.000000e+00> : vector<8x1088xf32>
    %34 = tpu.matmul %33, %31, %cst_23 {dimension_numbers = #tpu.dot_dimension_numbers<[1], [0], [0], [1], [0, 0, 1, 1], [], []>} : vector<8x8xf32>, vector<8x1088xf32>, vector<8x1088xf32> -> vector<8x1088xf32>
    %35 = arith.addf %30, %34 : vector<8x1088xf32>
    %36 = vector.extract_strided_slice %1 {offsets = [0, 69], sizes = [8, 1088], strides = [1, 1]} : vector<8x1190xf32> to vector<8x1088xf32>
    %c7 = arith.constant 7 : index
    %c0_24 = arith.constant 0 : index
    %c0_25 = arith.constant 0 : index
    %37 = vector.load %arg5[%c7, %c0_24, %c0_25] : memref<27x8x8xf32, #tpu.memory_space<vmem>>, vector<1x8x8xf32>
    %38 = vector.shape_cast %37 : vector<1x8x8xf32> to vector<8x8xf32>
    %cst_26 = arith.constant dense<0.000000e+00> : vector<8x1088xf32>
    %39 = tpu.matmul %38, %36, %cst_26 {dimension_numbers = #tpu.dot_dimension_numbers<[1], [0], [0], [1], [0, 0, 1, 1], [], []>} : vector<8x8xf32>, vector<8x1088xf32>, vector<8x1088xf32> -> vector<8x1088xf32>
    %40 = arith.addf %35, %39 : vector<8x1088xf32>
    %41 = vector.extract_strided_slice %1 {offsets = [0, 70], sizes = [8, 1088], strides = [1, 1]} : vector<8x1190xf32> to vector<8x1088xf32>
    %c8 = arith.constant 8 : index
    %c0_27 = arith.constant 0 : index
    %c0_28 = arith.constant 0 : index
    %42 = vector.load %arg5[%c8, %c0_27, %c0_28] : memref<27x8x8xf32, #tpu.memory_space<vmem>>, vector<1x8x8xf32>
    %43 = vector.shape_cast %42 : vector<1x8x8xf32> to vector<8x8xf32>
    %cst_29 = arith.constant dense<0.000000e+00> : vector<8x1088xf32>
    %44 = tpu.matmul %43, %41, %cst_29 {dimension_numbers = #tpu.dot_dimension_numbers<[1], [0], [0], [1], [0, 0, 1, 1], [], []>} : vector<8x8xf32>, vector<8x1088xf32>, vector<8x1088xf32> -> vector<8x1088xf32>
    %45 = arith.addf %40, %44 : vector<8x1088xf32>
    %c0_30 = arith.constant 0 : index
    %c0_31 = arith.constant 0 : index
    %c0_32 = arith.constant 0 : index
    %c0_33 = arith.constant 0 : index
    %46 = vector.load %arg3[%c0_30, %c0_31, %c0_32, %c0_33] : memref<1x1x8x1190xf32, #tpu.memory_space<vmem>>, vector<1x1x8x1190xf32>
    %47 = vector.shape_cast %46 : vector<1x1x8x1190xf32> to vector<8x1190xf32>
    %48 = vector.extract_strided_slice %47 {offsets = [0, 0], sizes = [8, 1088], strides = [1, 1]} : vector<8x1190xf32> to vector<8x1088xf32>
    %c9 = arith.constant 9 : index
    %c0_34 = arith.constant 0 : index
    %c0_35 = arith.constant 0 : index
    %49 = vector.load %arg5[%c9, %c0_34, %c0_35] : memref<27x8x8xf32, #tpu.memory_space<vmem>>, vector<1x8x8xf32>
    %50 = vector.shape_cast %49 : vector<1x8x8xf32> to vector<8x8xf32>
    %cst_36 = arith.constant dense<0.000000e+00> : vector<8x1088xf32>
    %51 = tpu.matmul %50, %48, %cst_36 {dimension_numbers = #tpu.dot_dimension_numbers<[1], [0], [0], [1], [0, 0, 1, 1], [], []>} : vector<8x8xf32>, vector<8x1088xf32>, vector<8x1088xf32> -> vector<8x1088xf32>
    %52 = arith.addf %45, %51 : vector<8x1088xf32>
    %53 = vector.extract_strided_slice %47 {offsets = [0, 1], sizes = [8, 1088], strides = [1, 1]} : vector<8x1190xf32> to vector<8x1088xf32>
    %c10 = arith.constant 10 : index
    %c0_37 = arith.constant 0 : index
    %c0_38 = arith.constant 0 : index
    %54 = vector.load %arg5[%c10, %c0_37, %c0_38] : memref<27x8x8xf32, #tpu.memory_space<vmem>>, vector<1x8x8xf32>
    %55 = vector.shape_cast %54 : vector<1x8x8xf32> to vector<8x8xf32>
    %cst_39 = arith.constant dense<0.000000e+00> : vector<8x1088xf32>
    %56 = tpu.matmul %55, %53, %cst_39 {dimension_numbers = #tpu.dot_dimension_numbers<[1], [0], [0], [1], [0, 0, 1, 1], [], []>} : vector<8x8xf32>, vector<8x1088xf32>, vector<8x1088xf32> -> vector<8x1088xf32>
    %57 = arith.addf %52, %56 : vector<8x1088xf32>
    %58 = vector.extract_strided_slice %47 {offsets = [0, 2], sizes = [8, 1088], strides = [1, 1]} : vector<8x1190xf32> to vector<8x1088xf32>
    %c11 = arith.constant 11 : index
    %c0_40 = arith.constant 0 : index
    %c0_41 = arith.constant 0 : index
    %59 = vector.load %arg5[%c11, %c0_40, %c0_41] : memref<27x8x8xf32, #tpu.memory_space<vmem>>, vector<1x8x8xf32>
    %60 = vector.shape_cast %59 : vector<1x8x8xf32> to vector<8x8xf32>
    %cst_42 = arith.constant dense<0.000000e+00> : vector<8x1088xf32>
    %61 = tpu.matmul %60, %58, %cst_42 {dimension_numbers = #tpu.dot_dimension_numbers<[1], [0], [0], [1], [0, 0, 1, 1], [], []>} : vector<8x8xf32>, vector<8x1088xf32>, vector<8x1088xf32> -> vector<8x1088xf32>
    %62 = arith.addf %57, %61 : vector<8x1088xf32>
    %63 = vector.extract_strided_slice %47 {offsets = [0, 34], sizes = [8, 1088], strides = [1, 1]} : vector<8x1190xf32> to vector<8x1088xf32>
    %c12 = arith.constant 12 : index
    %c0_43 = arith.constant 0 : index
    %c0_44 = arith.constant 0 : index
    %64 = vector.load %arg5[%c12, %c0_43, %c0_44] : memref<27x8x8xf32, #tpu.memory_space<vmem>>, vector<1x8x8xf32>
    %65 = vector.shape_cast %64 : vector<1x8x8xf32> to vector<8x8xf32>
    %cst_45 = arith.constant dense<0.000000e+00> : vector<8x1088xf32>
    %66 = tpu.matmul %65, %63, %cst_45 {dimension_numbers = #tpu.dot_dimension_numbers<[1], [0], [0], [1], [0, 0, 1, 1], [], []>} : vector<8x8xf32>, vector<8x1088xf32>, vector<8x1088xf32> -> vector<8x1088xf32>
    %67 = arith.addf %62, %66 : vector<8x1088xf32>
    %68 = vector.extract_strided_slice %47 {offsets = [0, 35], sizes = [8, 1088], strides = [1, 1]} : vector<8x1190xf32> to vector<8x1088xf32>
    %c13 = arith.constant 13 : index
    %c0_46 = arith.constant 0 : index
    %c0_47 = arith.constant 0 : index
    %69 = vector.load %arg5[%c13, %c0_46, %c0_47] : memref<27x8x8xf32, #tpu.memory_space<vmem>>, vector<1x8x8xf32>
    %70 = vector.shape_cast %69 : vector<1x8x8xf32> to vector<8x8xf32>
    %cst_48 = arith.constant dense<0.000000e+00> : vector<8x1088xf32>
    %71 = tpu.matmul %70, %68, %cst_48 {dimension_numbers = #tpu.dot_dimension_numbers<[1], [0], [0], [1], [0, 0, 1, 1], [], []>} : vector<8x8xf32>, vector<8x1088xf32>, vector<8x1088xf32> -> vector<8x1088xf32>
    %72 = arith.addf %67, %71 : vector<8x1088xf32>
    %73 = vector.extract_strided_slice %47 {offsets = [0, 36], sizes = [8, 1088], strides = [1, 1]} : vector<8x1190xf32> to vector<8x1088xf32>
    %c14 = arith.constant 14 : index
    %c0_49 = arith.constant 0 : index
    %c0_50 = arith.constant 0 : index
    %74 = vector.load %arg5[%c14, %c0_49, %c0_50] : memref<27x8x8xf32, #tpu.memory_space<vmem>>, vector<1x8x8xf32>
    %75 = vector.shape_cast %74 : vector<1x8x8xf32> to vector<8x8xf32>
    %cst_51 = arith.constant dense<0.000000e+00> : vector<8x1088xf32>
    %76 = tpu.matmul %75, %73, %cst_51 {dimension_numbers = #tpu.dot_dimension_numbers<[1], [0], [0], [1], [0, 0, 1, 1], [], []>} : vector<8x8xf32>, vector<8x1088xf32>, vector<8x1088xf32> -> vector<8x1088xf32>
    %77 = arith.addf %72, %76 : vector<8x1088xf32>
    %78 = vector.extract_strided_slice %47 {offsets = [0, 68], sizes = [8, 1088], strides = [1, 1]} : vector<8x1190xf32> to vector<8x1088xf32>
    %c15 = arith.constant 15 : index
    %c0_52 = arith.constant 0 : index
    %c0_53 = arith.constant 0 : index
    %79 = vector.load %arg5[%c15, %c0_52, %c0_53] : memref<27x8x8xf32, #tpu.memory_space<vmem>>, vector<1x8x8xf32>
    %80 = vector.shape_cast %79 : vector<1x8x8xf32> to vector<8x8xf32>
    %cst_54 = arith.constant dense<0.000000e+00> : vector<8x1088xf32>
    %81 = tpu.matmul %80, %78, %cst_54 {dimension_numbers = #tpu.dot_dimension_numbers<[1], [0], [0], [1], [0, 0, 1, 1], [], []>} : vector<8x8xf32>, vector<8x1088xf32>, vector<8x1088xf32> -> vector<8x1088xf32>
    %82 = arith.addf %77, %81 : vector<8x1088xf32>
    %83 = vector.extract_strided_slice %47 {offsets = [0, 69], sizes = [8, 1088], strides = [1, 1]} : vector<8x1190xf32> to vector<8x1088xf32>
    %c16 = arith.constant 16 : index
    %c0_55 = arith.constant 0 : index
    %c0_56 = arith.constant 0 : index
    %84 = vector.load %arg5[%c16, %c0_55, %c0_56] : memref<27x8x8xf32, #tpu.memory_space<vmem>>, vector<1x8x8xf32>
    %85 = vector.shape_cast %84 : vector<1x8x8xf32> to vector<8x8xf32>
    %cst_57 = arith.constant dense<0.000000e+00> : vector<8x1088xf32>
    %86 = tpu.matmul %85, %83, %cst_57 {dimension_numbers = #tpu.dot_dimension_numbers<[1], [0], [0], [1], [0, 0, 1, 1], [], []>} : vector<8x8xf32>, vector<8x1088xf32>, vector<8x1088xf32> -> vector<8x1088xf32>
    %87 = arith.addf %82, %86 : vector<8x1088xf32>
    %88 = vector.extract_strided_slice %47 {offsets = [0, 70], sizes = [8, 1088], strides = [1, 1]} : vector<8x1190xf32> to vector<8x1088xf32>
    %c17 = arith.constant 17 : index
    %c0_58 = arith.constant 0 : index
    %c0_59 = arith.constant 0 : index
    %89 = vector.load %arg5[%c17, %c0_58, %c0_59] : memref<27x8x8xf32, #tpu.memory_space<vmem>>, vector<1x8x8xf32>
    %90 = vector.shape_cast %89 : vector<1x8x8xf32> to vector<8x8xf32>
    %cst_60 = arith.constant dense<0.000000e+00> : vector<8x1088xf32>
    %91 = tpu.matmul %90, %88, %cst_60 {dimension_numbers = #tpu.dot_dimension_numbers<[1], [0], [0], [1], [0, 0, 1, 1], [], []>} : vector<8x8xf32>, vector<8x1088xf32>, vector<8x1088xf32> -> vector<8x1088xf32>
    %92 = arith.addf %87, %91 : vector<8x1088xf32>
    %c0_61 = arith.constant 0 : index
    %c0_62 = arith.constant 0 : index
    %c0_63 = arith.constant 0 : index
    %c0_64 = arith.constant 0 : index
    %93 = vector.load %arg4[%c0_61, %c0_62, %c0_63, %c0_64] : memref<1x1x8x1190xf32, #tpu.memory_space<vmem>>, vector<1x1x8x1190xf32>
    %94 = vector.shape_cast %93 : vector<1x1x8x1190xf32> to vector<8x1190xf32>
    %95 = vector.extract_strided_slice %94 {offsets = [0, 0], sizes = [8, 1088], strides = [1, 1]} : vector<8x1190xf32> to vector<8x1088xf32>
    %c18 = arith.constant 18 : index
    %c0_65 = arith.constant 0 : index
    %c0_66 = arith.constant 0 : index
    %96 = vector.load %arg5[%c18, %c0_65, %c0_66] : memref<27x8x8xf32, #tpu.memory_space<vmem>>, vector<1x8x8xf32>
    %97 = vector.shape_cast %96 : vector<1x8x8xf32> to vector<8x8xf32>
    %cst_67 = arith.constant dense<0.000000e+00> : vector<8x1088xf32>
    %98 = tpu.matmul %97, %95, %cst_67 {dimension_numbers = #tpu.dot_dimension_numbers<[1], [0], [0], [1], [0, 0, 1, 1], [], []>} : vector<8x8xf32>, vector<8x1088xf32>, vector<8x1088xf32> -> vector<8x1088xf32>
    %99 = arith.addf %92, %98 : vector<8x1088xf32>
    %100 = vector.extract_strided_slice %94 {offsets = [0, 1], sizes = [8, 1088], strides = [1, 1]} : vector<8x1190xf32> to vector<8x1088xf32>
    %c19 = arith.constant 19 : index
    %c0_68 = arith.constant 0 : index
    %c0_69 = arith.constant 0 : index
    %101 = vector.load %arg5[%c19, %c0_68, %c0_69] : memref<27x8x8xf32, #tpu.memory_space<vmem>>, vector<1x8x8xf32>
    %102 = vector.shape_cast %101 : vector<1x8x8xf32> to vector<8x8xf32>
    %cst_70 = arith.constant dense<0.000000e+00> : vector<8x1088xf32>
    %103 = tpu.matmul %102, %100, %cst_70 {dimension_numbers = #tpu.dot_dimension_numbers<[1], [0], [0], [1], [0, 0, 1, 1], [], []>} : vector<8x8xf32>, vector<8x1088xf32>, vector<8x1088xf32> -> vector<8x1088xf32>
    %104 = arith.addf %99, %103 : vector<8x1088xf32>
    %105 = vector.extract_strided_slice %94 {offsets = [0, 2], sizes = [8, 1088], strides = [1, 1]} : vector<8x1190xf32> to vector<8x1088xf32>
    %c20 = arith.constant 20 : index
    %c0_71 = arith.constant 0 : index
    %c0_72 = arith.constant 0 : index
    %106 = vector.load %arg5[%c20, %c0_71, %c0_72] : memref<27x8x8xf32, #tpu.memory_space<vmem>>, vector<1x8x8xf32>
    %107 = vector.shape_cast %106 : vector<1x8x8xf32> to vector<8x8xf32>
    %cst_73 = arith.constant dense<0.000000e+00> : vector<8x1088xf32>
    %108 = tpu.matmul %107, %105, %cst_73 {dimension_numbers = #tpu.dot_dimension_numbers<[1], [0], [0], [1], [0, 0, 1, 1], [], []>} : vector<8x8xf32>, vector<8x1088xf32>, vector<8x1088xf32> -> vector<8x1088xf32>
    %109 = arith.addf %104, %108 : vector<8x1088xf32>
    %110 = vector.extract_strided_slice %94 {offsets = [0, 34], sizes = [8, 1088], strides = [1, 1]} : vector<8x1190xf32> to vector<8x1088xf32>
    %c21 = arith.constant 21 : index
    %c0_74 = arith.constant 0 : index
    %c0_75 = arith.constant 0 : index
    %111 = vector.load %arg5[%c21, %c0_74, %c0_75] : memref<27x8x8xf32, #tpu.memory_space<vmem>>, vector<1x8x8xf32>
    %112 = vector.shape_cast %111 : vector<1x8x8xf32> to vector<8x8xf32>
    %cst_76 = arith.constant dense<0.000000e+00> : vector<8x1088xf32>
    %113 = tpu.matmul %112, %110, %cst_76 {dimension_numbers = #tpu.dot_dimension_numbers<[1], [0], [0], [1], [0, 0, 1, 1], [], []>} : vector<8x8xf32>, vector<8x1088xf32>, vector<8x1088xf32> -> vector<8x1088xf32>
    %114 = arith.addf %109, %113 : vector<8x1088xf32>
    %115 = vector.extract_strided_slice %94 {offsets = [0, 35], sizes = [8, 1088], strides = [1, 1]} : vector<8x1190xf32> to vector<8x1088xf32>
    %c22 = arith.constant 22 : index
    %c0_77 = arith.constant 0 : index
    %c0_78 = arith.constant 0 : index
    %116 = vector.load %arg5[%c22, %c0_77, %c0_78] : memref<27x8x8xf32, #tpu.memory_space<vmem>>, vector<1x8x8xf32>
    %117 = vector.shape_cast %116 : vector<1x8x8xf32> to vector<8x8xf32>
    %cst_79 = arith.constant dense<0.000000e+00> : vector<8x1088xf32>
    %118 = tpu.matmul %117, %115, %cst_79 {dimension_numbers = #tpu.dot_dimension_numbers<[1], [0], [0], [1], [0, 0, 1, 1], [], []>} : vector<8x8xf32>, vector<8x1088xf32>, vector<8x1088xf32> -> vector<8x1088xf32>
    %119 = arith.addf %114, %118 : vector<8x1088xf32>
    %120 = vector.extract_strided_slice %94 {offsets = [0, 36], sizes = [8, 1088], strides = [1, 1]} : vector<8x1190xf32> to vector<8x1088xf32>
    %c23 = arith.constant 23 : index
    %c0_80 = arith.constant 0 : index
    %c0_81 = arith.constant 0 : index
    %121 = vector.load %arg5[%c23, %c0_80, %c0_81] : memref<27x8x8xf32, #tpu.memory_space<vmem>>, vector<1x8x8xf32>
    %122 = vector.shape_cast %121 : vector<1x8x8xf32> to vector<8x8xf32>
    %cst_82 = arith.constant dense<0.000000e+00> : vector<8x1088xf32>
    %123 = tpu.matmul %122, %120, %cst_82 {dimension_numbers = #tpu.dot_dimension_numbers<[1], [0], [0], [1], [0, 0, 1, 1], [], []>} : vector<8x8xf32>, vector<8x1088xf32>, vector<8x1088xf32> -> vector<8x1088xf32>
    %124 = arith.addf %119, %123 : vector<8x1088xf32>
    %125 = vector.extract_strided_slice %94 {offsets = [0, 68], sizes = [8, 1088], strides = [1, 1]} : vector<8x1190xf32> to vector<8x1088xf32>
    %c24 = arith.constant 24 : index
    %c0_83 = arith.constant 0 : index
    %c0_84 = arith.constant 0 : index
    %126 = vector.load %arg5[%c24, %c0_83, %c0_84] : memref<27x8x8xf32, #tpu.memory_space<vmem>>, vector<1x8x8xf32>
    %127 = vector.shape_cast %126 : vector<1x8x8xf32> to vector<8x8xf32>
    %cst_85 = arith.constant dense<0.000000e+00> : vector<8x1088xf32>
    %128 = tpu.matmul %127, %125, %cst_85 {dimension_numbers = #tpu.dot_dimension_numbers<[1], [0], [0], [1], [0, 0, 1, 1], [], []>} : vector<8x8xf32>, vector<8x1088xf32>, vector<8x1088xf32> -> vector<8x1088xf32>
    %129 = arith.addf %124, %128 : vector<8x1088xf32>
    %130 = vector.extract_strided_slice %94 {offsets = [0, 69], sizes = [8, 1088], strides = [1, 1]} : vector<8x1190xf32> to vector<8x1088xf32>
    %c25 = arith.constant 25 : index
    %c0_86 = arith.constant 0 : index
    %c0_87 = arith.constant 0 : index
    %131 = vector.load %arg5[%c25, %c0_86, %c0_87] : memref<27x8x8xf32, #tpu.memory_space<vmem>>, vector<1x8x8xf32>
    %132 = vector.shape_cast %131 : vector<1x8x8xf32> to vector<8x8xf32>
    %cst_88 = arith.constant dense<0.000000e+00> : vector<8x1088xf32>
    %133 = tpu.matmul %132, %130, %cst_88 {dimension_numbers = #tpu.dot_dimension_numbers<[1], [0], [0], [1], [0, 0, 1, 1], [], []>} : vector<8x8xf32>, vector<8x1088xf32>, vector<8x1088xf32> -> vector<8x1088xf32>
    %134 = arith.addf %129, %133 : vector<8x1088xf32>
    %135 = vector.extract_strided_slice %94 {offsets = [0, 70], sizes = [8, 1088], strides = [1, 1]} : vector<8x1190xf32> to vector<8x1088xf32>
    %c26 = arith.constant 26 : index
    %c0_89 = arith.constant 0 : index
    %c0_90 = arith.constant 0 : index
    %136 = vector.load %arg5[%c26, %c0_89, %c0_90] : memref<27x8x8xf32, #tpu.memory_space<vmem>>, vector<1x8x8xf32>
    %137 = vector.shape_cast %136 : vector<1x8x8xf32> to vector<8x8xf32>
    %cst_91 = arith.constant dense<0.000000e+00> : vector<8x1088xf32>
    %138 = tpu.matmul %137, %135, %cst_91 {dimension_numbers = #tpu.dot_dimension_numbers<[1], [0], [0], [1], [0, 0, 1, 1], [], []>} : vector<8x8xf32>, vector<8x1088xf32>, vector<8x1088xf32> -> vector<8x1088xf32>
    %139 = arith.addf %134, %138 : vector<8x1088xf32>
    %c0_92 = arith.constant 0 : index
    %c0_93 = arith.constant 0 : index
    %140 = vector.load %arg6[%c0_92, %c0_93] : memref<8x1xf32, #tpu.memory_space<vmem>>, vector<8x1xf32>
    %141 = vector.broadcast %140 : vector<8x1xf32> to vector<8x1088xf32>
    %142 = arith.addf %139, %141 : vector<8x1088xf32>
    %143 = vector.shape_cast %142 : vector<8x1088xf32> to vector<1x1x8x1088xf32>
    %c0_94 = arith.constant 0 : index
    %c0_95 = arith.constant 0 : index
    %c0_96 = arith.constant 0 : index
    %c0_97 = arith.constant 0 : index
    %144 = vector.load %arg8[%c0_94, %c0_95, %c0_96, %c0_97] : memref<1x1x8x1088xf32, #tpu.memory_space<vmem>>, vector<1x1x8x1088xf32>
    tpu.vector_store %arg8[%c0_94, %c0_95, %c0_96, %c0_97], %143 {strides = array<i32>} : memref<1x1x8x1088xf32, #tpu.memory_space<vmem>>, vector<1x1x8x1088xf32>,
    %c0_98 = arith.constant 0 : index
    %c0_99 = arith.constant 0 : index
    %145 = vector.load %arg7[%c0_98, %c0_99] : memref<1x1088xf32, #tpu.memory_space<vmem>>, vector<1x1088xf32>
    %146 = vector.broadcast %145 : vector<1x1088xf32> to vector<8x1088xf32>
    %147 = arith.mulf %142, %146 : vector<8x1088xf32>
    %cst_100 = arith.constant dense<0.000000e+00> : vector<8xf32>
    %148 = vector.multi_reduction <add>, %147, %cst_100 [1] : vector<8x1088xf32> to vector<8xf32>
    %149 = vector.shape_cast %148 : vector<8xf32> to vector<8x1xf32>
    %150 = arith.mulf %147, %147 : vector<8x1088xf32>
    %cst_101 = arith.constant dense<0.000000e+00> : vector<8xf32>
    %151 = vector.multi_reduction <add>, %150, %cst_101 [1] : vector<8x1088xf32> to vector<8xf32>
    %152 = vector.shape_cast %151 : vector<8xf32> to vector<8x1xf32>
    %c0_i32 = arith.constant 0 : i32
    %153 = arith.cmpi eq, %arg1, %c0_i32 : i32
    %154 = arith.extui %153 : i1 to i32
    %c0_i32_102 = arith.constant 0 : i32
    %155 = arith.cmpi ne, %154, %c0_i32_102 : i32
    scf.if %155 {
      %cst_115 = arith.constant 0.000000e+00 : f32
      %164 = vector.broadcast %cst_115 : f32 to vector<1x8x1xf32>
      %c0_116 = arith.constant 0 : index
      %c0_117 = arith.constant 0 : index
      %c0_118 = arith.constant 0 : index
      %165 = vector.load %arg9[%c0_116, %c0_117, %c0_118] : memref<1x8x1xf32, #tpu.memory_space<vmem>>, vector<1x8x1xf32>
      tpu.vector_store %arg9[%c0_116, %c0_117, %c0_118], %164 {strides = array<i32>} : memref<1x8x1xf32, #tpu.memory_space<vmem>>, vector<1x8x1xf32>,
      %cst_119 = arith.constant 0.000000e+00 : f32
      %166 = vector.broadcast %cst_119 : f32 to vector<1x8x1xf32>
      %c0_120 = arith.constant 0 : index
      %c0_121 = arith.constant 0 : index
      %c0_122 = arith.constant 0 : index
      %167 = vector.load %arg10[%c0_120, %c0_121, %c0_122] : memref<1x8x1xf32, #tpu.memory_space<vmem>>, vector<1x8x1xf32>
      tpu.vector_store %arg10[%c0_120, %c0_121, %c0_122], %166 {strides = array<i32>} : memref<1x8x1xf32, #tpu.memory_space<vmem>>, vector<1x8x1xf32>,
    } else {
    }
    %c0_103 = arith.constant 0 : index
    %c0_104 = arith.constant 0 : index
    %c0_105 = arith.constant 0 : index
    %156 = vector.load %arg9[%c0_103, %c0_104, %c0_105] : memref<1x8x1xf32, #tpu.memory_space<vmem>>, vector<1x8x1xf32>
    %157 = vector.shape_cast %149 : vector<8x1xf32> to vector<1x8x1xf32>
    %158 = arith.addf %156, %157 : vector<1x8x1xf32>
    %c0_106 = arith.constant 0 : index
    %c0_107 = arith.constant 0 : index
    %c0_108 = arith.constant 0 : index
    %159 = vector.load %arg9[%c0_106, %c0_107, %c0_108] : memref<1x8x1xf32, #tpu.memory_space<vmem>>, vector<1x8x1xf32>
    tpu.vector_store %arg9[%c0_106, %c0_107, %c0_108], %158 {strides = array<i32>} : memref<1x8x1xf32, #tpu.memory_space<vmem>>, vector<1x8x1xf32>,
    %c0_109 = arith.constant 0 : index
    %c0_110 = arith.constant 0 : index
    %c0_111 = arith.constant 0 : index
    %160 = vector.load %arg10[%c0_109, %c0_110, %c0_111] : memref<1x8x1xf32, #tpu.memory_space<vmem>>, vector<1x8x1xf32>
    %161 = vector.shape_cast %152 : vector<8x1xf32> to vector<1x8x1xf32>
    %162 = arith.addf %160, %161 : vector<1x8x1xf32>
    %c0_112 = arith.constant 0 : index
    %c0_113 = arith.constant 0 : index
    %c0_114 = arith.constant 0 : index
    %163 = vector.load %arg10[%c0_112, %c0_113, %c0_114] : memref<1x8x1xf32, #tpu.memory_space<vmem>>, vector<1x8x1xf32>
    tpu.vector_store %arg10[%c0_112, %c0_113, %c0_114], %162 {strides = array<i32>} : memref<1x8x1xf32, #tpu.memory_space<vmem>>, vector<1x8x1xf32>,
    return
  }
  func.func @transform_0(%arg0: i32, %arg1: i32) -> (i32, i32, i32, i32) {
    %c0_i32 = arith.constant 0 : i32
    %0 = arith.addi %arg1, %c0_i32 : i32
    %c0_i32_0 = arith.constant 0 : i32
    %c0_i32_1 = arith.constant 0 : i32
    %c0_i32_2 = arith.constant 0 : i32
    return %arg0, %0, %c0_i32_0, %c0_i32_1 : i32, i32, i32, i32
  }
  func.func @transform_1(%arg0: i32, %arg1: i32) -> (i32, i32, i32, i32) {
    %c1_i32 = arith.constant 1 : i32
    %0 = arith.addi %arg1, %c1_i32 : i32
    %c0_i32 = arith.constant 0 : i32
    %c0_i32_0 = arith.constant 0 : i32
    %c0_i32_1 = arith.constant 0 : i32
    return %arg0, %0, %c0_i32, %c0_i32_0 : i32, i32, i32, i32
  }
  func.func @transform_2(%arg0: i32, %arg1: i32) -> (i32, i32, i32, i32) {
    %c2_i32 = arith.constant 2 : i32
    %0 = arith.addi %arg1, %c2_i32 : i32
    %c0_i32 = arith.constant 0 : i32
    %c0_i32_0 = arith.constant 0 : i32
    %c0_i32_1 = arith.constant 0 : i32
    return %arg0, %0, %c0_i32, %c0_i32_0 : i32, i32, i32, i32
  }
  func.func @transform_3(%arg0: i32, %arg1: i32) -> (i32, i32, i32) {
    %c0_i32 = arith.constant 0 : i32
    %c0_i32_0 = arith.constant 0 : i32
    %c0_i32_1 = arith.constant 0 : i32
    %c0_i32_2 = arith.constant 0 : i32
    return %c0_i32, %c0_i32_0, %c0_i32_1 : i32, i32, i32
  }
  func.func @transform_4(%arg0: i32, %arg1: i32) -> (i32, i32) {
    %c0_i32 = arith.constant 0 : i32
    %c0_i32_0 = arith.constant 0 : i32
    %c0_i32_1 = arith.constant 0 : i32
    return %c0_i32, %c0_i32_0 : i32, i32
  }
  func.func @transform_5(%arg0: i32, %arg1: i32) -> (i32, i32) {
    %c0_i32 = arith.constant 0 : i32
    %c0_i32_0 = arith.constant 0 : i32
    %c0_i32_1 = arith.constant 0 : i32
    return %c0_i32, %c0_i32_0 : i32, i32
  }
  func.func @transform_6(%arg0: i32, %arg1: i32) -> (i32, i32, i32, i32) {
    %c0_i32 = arith.constant 0 : i32
    %c0_i32_0 = arith.constant 0 : i32
    %c0_i32_1 = arith.constant 0 : i32
    return %arg0, %arg1, %c0_i32, %c0_i32_0 : i32, i32, i32, i32
  }
  func.func @transform_7(%arg0: i32, %arg1: i32) -> (i32, i32, i32) {
    %c0_i32 = arith.constant 0 : i32
    %c0_i32_0 = arith.constant 0 : i32
    %c0_i32_1 = arith.constant 0 : i32
    return %arg0, %c0_i32, %c0_i32_0 : i32, i32, i32
  }
  func.func @transform_8(%arg0: i32, %arg1: i32) -> (i32, i32, i32) {
    %c0_i32 = arith.constant 0 : i32
    %c0_i32_0 = arith.constant 0 : i32
    %c0_i32_1 = arith.constant 0 : i32
    return %arg0, %c0_i32, %c0_i32_0 : i32, i32, i32
  }
}

module attributes {stable_mosaic.version = 11 : i64} {
  func.func @_gn_act_kernel(%arg0: i32, %arg1: i32, %arg2: memref<1x1x8x32x34xf32, #tpu.memory_space<vmem>>, %arg3: memref<1x8x1x1xf32, #tpu.memory_space<vmem>>, %arg4: memref<1x8x1x1xf32, #tpu.memory_space<vmem>>, %arg5: memref<1x8x1x32x32xf32, #tpu.memory_space<vmem>>) attributes {dimension_semantics = [#tpu.dimension_semantics<parallel>, #tpu.dimension_semantics<parallel>], iteration_bounds = array<i64: 2, 8>, scalar_prefetch = 0 : i64, scratch_operands = 0 : i64, tpu.core_type = #tpu.core_type<tc>, window_params = [{transform_indices = @transform_0, window_bounds = array<i64: 1, 1, 8, 32, 34>}, {transform_indices = @transform_1, window_bounds = array<i64: 1, 8, 1, 1>}, {transform_indices = @transform_2, window_bounds = array<i64: 1, 8, 1, 1>}, {transform_indices = @transform_3, window_bounds = array<i64: 1, 8, 1, 32, 32>}]} {
    %c0 = arith.constant 0 : index
    %c0_0 = arith.constant 0 : index
    %c0_1 = arith.constant 0 : index
    %c0_2 = arith.constant 0 : index
    %c0_3 = arith.constant 0 : index
    %0 = vector.load %arg2[%c0, %c0_0, %c0_1, %c0_2, %c0_3] : memref<1x1x8x32x34xf32, #tpu.memory_space<vmem>>, vector<1x1x8x32x34xf32>
    %1 = vector.shape_cast %0 : vector<1x1x8x32x34xf32> to vector<8x32x34xf32>
    %2 = vector.extract_strided_slice %1 {offsets = [0, 0, 0], sizes = [8, 32, 32], strides = [1, 1, 1]} : vector<8x32x34xf32> to vector<8x32x32xf32>
    %c0_4 = arith.constant 0 : index
    %c0_5 = arith.constant 0 : index
    %c0_6 = arith.constant 0 : index
    %c0_7 = arith.constant 0 : index
    %3 = vector.load %arg3[%c0_4, %c0_5, %c0_6, %c0_7] : memref<1x8x1x1xf32, #tpu.memory_space<vmem>>, vector<1x8x1x1xf32>
    %4 = vector.shape_cast %3 : vector<1x8x1x1xf32> to vector<8x1x1xf32>
    %5 = vector.broadcast %4 : vector<8x1x1xf32> to vector<8x32x32xf32>
    %6 = arith.mulf %2, %5 : vector<8x32x32xf32>
    %c0_8 = arith.constant 0 : index
    %c0_9 = arith.constant 0 : index
    %c0_10 = arith.constant 0 : index
    %c0_11 = arith.constant 0 : index
    %7 = vector.load %arg4[%c0_8, %c0_9, %c0_10, %c0_11] : memref<1x8x1x1xf32, #tpu.memory_space<vmem>>, vector<1x8x1x1xf32>
    %8 = vector.shape_cast %7 : vector<1x8x1x1xf32> to vector<8x1x1xf32>
    %9 = vector.broadcast %8 : vector<8x1x1xf32> to vector<8x32x32xf32>
    %10 = arith.addf %6, %9 : vector<8x32x32xf32>
    %cst = arith.constant 0.000000e+00 : f32
    %11 = vector.broadcast %cst : f32 to vector<8x32x32xf32>
    %12 = arith.cmpf oge, %10, %11 : vector<8x32x32xf32>
    %cst_12 = arith.constant 0.00999999977 : f32
    %13 = vector.broadcast %cst_12 : f32 to vector<8x32x32xf32>
    %14 = arith.mulf %10, %13 : vector<8x32x32xf32>
    %15 = arith.select %12, %10, %14 : vector<8x32x32xi1>, vector<8x32x32xf32>
    %16 = vector.shape_cast %15 : vector<8x32x32xf32> to vector<1x8x1x32x32xf32>
    %c0_13 = arith.constant 0 : index
    %c0_14 = arith.constant 0 : index
    %c0_15 = arith.constant 0 : index
    %c0_16 = arith.constant 0 : index
    %c0_17 = arith.constant 0 : index
    %17 = vector.load %arg5[%c0_13, %c0_14, %c0_15, %c0_16, %c0_17] : memref<1x8x1x32x32xf32, #tpu.memory_space<vmem>>, vector<1x8x1x32x32xf32>
    tpu.vector_store %arg5[%c0_13, %c0_14, %c0_15, %c0_16, %c0_17], %16 {strides = array<i32>} : memref<1x8x1x32x32xf32, #tpu.memory_space<vmem>>, vector<1x8x1x32x32xf32>,
    return
  }
  func.func @transform_0(%arg0: i32, %arg1: i32) -> (i32, i32, i32, i32, i32) {
    %c0_i32 = arith.constant 0 : i32
    %c0_i32_0 = arith.constant 0 : i32
    %c0_i32_1 = arith.constant 0 : i32
    %c0_i32_2 = arith.constant 0 : i32
    return %arg0, %arg1, %c0_i32, %c0_i32_0, %c0_i32_1 : i32, i32, i32, i32, i32
  }
  func.func @transform_1(%arg0: i32, %arg1: i32) -> (i32, i32, i32, i32) {
    %c0_i32 = arith.constant 0 : i32
    %c0_i32_0 = arith.constant 0 : i32
    %c0_i32_1 = arith.constant 0 : i32
    %c0_i32_2 = arith.constant 0 : i32
    return %arg0, %c0_i32, %c0_i32_0, %c0_i32_1 : i32, i32, i32, i32
  }
  func.func @transform_2(%arg0: i32, %arg1: i32) -> (i32, i32, i32, i32) {
    %c0_i32 = arith.constant 0 : i32
    %c0_i32_0 = arith.constant 0 : i32
    %c0_i32_1 = arith.constant 0 : i32
    %c0_i32_2 = arith.constant 0 : i32
    return %arg0, %c0_i32, %c0_i32_0, %c0_i32_1 : i32, i32, i32, i32
  }
  func.func @transform_3(%arg0: i32, %arg1: i32) -> (i32, i32, i32, i32, i32) {
    %c0_i32 = arith.constant 0 : i32
    %c0_i32_0 = arith.constant 0 : i32
    %c0_i32_1 = arith.constant 0 : i32
    %c0_i32_2 = arith.constant 0 : i32
    return %arg0, %c0_i32, %arg1, %c0_i32_0, %c0_i32_1 : i32, i32, i32, i32, i32
  }
}

</mosaic_0001>

<bundles_post_ra>
// kernel: adaptive_transposed_conv_upsample.3
= control target key start
LH: loop header
LB: loop body
LE: loop exit
PB: predicated region body
PF: predicated region fallthrough
CT: control target
= control target key end

     0   :  { %s1054_s12 = smov 0   ;;  %s1056_s13 = smov 0   ;;  %s1357_s0 = inlined_call_operand.vmem [shape: f32[2,4,1024], index: 0, kind: input, shape index: {}]   ;;  %s1358_s1 = inlined_call_operand.vmem [shape: f32[64,4], index: 1, kind: input, shape index: {}]   ;;  %s1359_s2 = inlined_call_operand.vmem [shape: f32[64,1], index: 2, kind: input, shape index: {}]   ;;  %s1360_s3 = inlined_call_operand.vmem [shape: f32[2,64,1024], index: 3, kind: output, shape index: {}]  }
   0x1   :  { %s1058_s14 = smov 0  }
   0x2 LB: > { %s25_s15 = sadd.s32 1, %s1026_s13  ;;  %p927_p0 = scmp.ge.s32.totalorder %s1030_s14, 1  ;;  %s1030_s14 = sphi %s1058_s14, %s13_s14   ;;  %s1026_s13 = sphi %s1056_s13, %s1362_s13   ;;  %s1022_s12 = sphi %s1054_s12, %s1361_s12  }
   0x3   : > { %p27_p1 = scmp.ge.s32.totalorder %s25_s15, 2  ;;  %p158_p2 = scmp.lt.s32.totalorder %s1030_s14, 3 }
   0x5   : > { %s1364_s15 = smov (%p27_p1, %s25_s15), 0  ;;  %p159_p3 = pnand %p927_p0, %p158_p2 }
   0x6   : > { %p191_p4 = scmp.lt.s32.totalorder (!%p159_p3), %s1022_s12, 1  ;;  %v1032_v0 = vmov (!%p159_p3), 0.0   ;;  %v1033_v1 = vmov (!%p159_p3), 0   ;;  %v222_v2 = vld [vmem:[%s1359_s2] sm:$0xff] (!%p159_p3)  ;;  %v224_v3 = vld [vmem:[%s1359_s2 + $0x10] sm:$0xff] (!%p159_p3)  ;;  %v223_v4 = vld [vmem:[%s1359_s2 + $0x8] sm:$0xff] (!%p159_p3) }
   0x7   : > { %162 = sbr.rel (%p159_p3) target bundleno = 298 (0x12a), region = 32  ;;  %384 = vmatprep.mubr.f32.mxu0 (!%p159_p3), %v1032_v0  ;;  %497 = vmatprep.mubr.f32.mxu1 (!%p159_p3), %v1032_v0  ;;  %v225_v5 = vld [vmem:[%s1359_s2 + $0x18] sm:$0xff] (!%p159_p3)  ;;  %vm303_vm0 = vcmask (!%p159_p3), 1043456   ;;  %v210_v12 = vld [vmem:[%s1358_s1] sm:$0xff] (!%p159_p3)  ;;  %vm278_vm1 = vcmask (!%p159_p3), 31744   ;;  %v211_v15 = vld [vmem:[%s1358_s1 + $0x8] sm:$0xff] (!%p159_p3) }
   0x8   : > { %1002 = vset.pattern.permute.xlu0 (!%p159_p3), %v1033_v1  ;;  %1003 = vset.pattern.permute.xlu1 (!%p159_p3), %v1033_v1  ;;  %v226_v16 = vld [vmem:[%s1359_s2 + $0x20] sm:$0xff] (!%p159_p3)  ;;  %v227_v17 = vld [vmem:[%s1359_s2 + $0x28] sm:$0xff] (!%p159_p3)  ;;  %v212_v18 = vld [vmem:[%s1358_s1 + $0x10] sm:$0xff] (!%p159_p3) }
   0x9   : > { %232 = vperm.xlu0 (!%p159_p3), %1002, %v222_v2   ;;  %242 = vperm.xlu1 (!%p159_p3), %1003, %v224_v3   ;;  %v228_v19 = vld [vmem:[%s1359_s2 + $0x30] sm:$0xff] (!%p159_p3)  ;;  %v229_v20 = vld [vmem:[%s1359_s2 + $0x38] sm:$0xff] (!%p159_p3)  ;;  %v214_v22 = vld [vmem:[%s1358_s1 + $0x20] sm:$0xff] (!%p159_p3) }
   0xa   : > { %v213_v21 = vld [vmem:[%s1358_s1 + $0x18] sm:$0xff] (!%p159_p3)  ;;  %v215_v23 = vld [vmem:[%s1358_s1 + $0x28] sm:$0xff] (!%p159_p3)  ;;  %v216_v24 = vld [vmem:[%s1358_s1 + $0x30] sm:$0xff] (!%p159_p3) }
   0xb   : > { %v217_v25 = vld [vmem:[%s1358_s1 + $0x38] sm:$0xff] (!%p159_p3) }
   0xd   : > { %237 = vperm.xlu0 (!%p159_p3), %1002, %v223_v4   ;;  %247 = vperm.xlu1 (!%p159_p3), %1003, %v225_v5  }
   0xe   : > { %s1366_s12 = smov (!%p191_p4, %s1022_s12), 1 }
   0xf   : > { %s974_s20 = sshll.u32 %s1366_s12, 5  ;;  %s975_s29 = sshll.u32 %s1366_s12, 9 }
  0x10   : > { %s198_s23 = scalar_lea.vmem %s1357_s0, %s974_s20  ;;  %s1204_s5 = scalar_lea.vmem %s1360_s3, %s975_s29 }
  0x11   : > { %v218_v6 = vld [vmem:[%s198_s23] sm:$0xff]  ;;  %v219_v7 = vld [vmem:[%s198_s23 + $0x8] sm:$0xff]  ;;  %v220_v8 = vld [vmem:[%s198_s23 + $0x10] sm:$0xff]  ;;  %252 = vperm.xlu0 %1002, %v226_v16   ;;  %257 = vperm.xlu1 %1003, %v227_v17  }
  0x12   : > { %v274_v9 = vcombine.high %v218_v6, %v218_v6  ;;  %v275_v10 = vcombine.high %v219_v7, %v219_v7  ;;  %v221_v11 = vld [vmem:[%s198_s23 + $0x18] sm:$0xff]  ;;  %v276_v13 = vcombine.high %v220_v8, %v220_v8 }
  0x13   : > { %v277_v14 = vcombine.high %v221_v11, %v221_v11 }
  0x14   : > { %932 = vmatprep.subr.msk.mxu0 %vm303_vm0, %v274_v9  ;;  %942 = vmatprep.subr.msk.mxu1 %vm303_vm0, %v275_v10 }
  0x15   : > { %933 = vmatpush1.msk.msra.mxu0 %vm303_vm0, %v218_v6  ;;  %943 = vmatpush1.msk.msra.mxu1 %vm303_vm0, %v219_v7 }
  0x16   : > { %934 = vmatmul.mubr.msk.f32.vlgmr.msra.gmra.mrb[0].mxu0 %vm278_vm1, %v210_v12  ;;  %944 = vmatmul.mubr.msk.f32.vlgmr.msra.gmra.mrb[0].mxu1 %vm278_vm1, %v210_v12 }
  0x17   : > { %952 = vmatprep.subr.msk.mxu0 %vm303_vm0, %v276_v13  ;;  %962 = vmatprep.subr.msk.mxu1 %vm303_vm0, %v277_v14 }
  0x18   : > { %953 = vmatpush1.msk.msra.mxu0 %vm303_vm0, %v220_v8  ;;  %963 = vmatpush1.msk.msra.mxu1 %vm303_vm0, %v221_v11 }
  0x19   : > { %390 = vmatprep.mubr.f32.mxu0 %v1032_v0  ;;  %503 = vmatprep.mubr.f32.mxu1 %v1032_v0 }
  0x1a   : > { %935 = vmatmul.mubr.msk.f32.gmra.mrb[2].mxu0 %vm278_vm1, %v211_v15  ;;  %945 = vmatmul.mubr.msk.f32.gmra.mrb[2].mxu1 %vm278_vm1, %v211_v15 }
  0x1b   : > { %396 = vmatprep.mubr.f32.mxu0 %v1032_v0  ;;  %509 = vmatprep.mubr.f32.mxu1 %v1032_v0 }
  0x1c   : > { %262 = vperm.xlu0 %1002, %v228_v19   ;;  %267 = vperm.xlu1 %1003, %v229_v20  }
  0x1e   : > { %936 = vmatmul.mubr.msk.f32.gmra.mrb[4].mxu0 %vm278_vm1, %v212_v18  ;;  %946 = vmatmul.mubr.msk.f32.gmra.mrb[4].mxu1 %vm278_vm1, %v212_v18 }
  0x1f   : > { %402 = vmatprep.mubr.f32.mxu0 %v1032_v0  ;;  %515 = vmatprep.mubr.f32.mxu1 %v1032_v0 }
  0x22   : > { %937 = vmatmul.mubr.msk.f32.gmra.mrb[6].mxu0 %vm278_vm1, %v213_v21  ;;  %947 = vmatmul.mubr.msk.f32.gmra.mrb[6].mxu1 %vm278_vm1, %v213_v21 }
  0x23   : > { %408 = vmatprep.mubr.f32.mxu0 %v1032_v0  ;;  %521 = vmatprep.mubr.f32.mxu1 %v1032_v0 }
  0x26   : > { %938 = vmatmul.mubr.msk.f32.gmra.mrb[8].mxu0 %vm278_vm1, %v214_v22  ;;  %948 = vmatmul.mubr.msk.f32.gmra.mrb[8].mxu1 %vm278_vm1, %v214_v22 }
  0x27   : > { %414 = vmatprep.mubr.f32.mxu0 %v1032_v0  ;;  %527 = vmatprep.mubr.f32.mxu1 %v1032_v0 }
  0x2a   : > { %939 = vmatmul.mubr.msk.f32.gmra.mrb[10].mxu0 %vm278_vm1, %v215_v23  ;;  %949 = vmatmul.mubr.msk.f32.gmra.mrb[10].mxu1 %vm278_vm1, %v215_v23 }
  0x2b   : > { %420 = vmatprep.mubr.f32.mxu0 %v1032_v0  ;;  %533 = vmatprep.mubr.f32.mxu1 %v1032_v0 }
  0x2e   : > { %940 = vmatmul.mubr.msk.f32.gmra.mrb[12].mxu0 %vm278_vm1, %v216_v24  ;;  %950 = vmatmul.mubr.msk.f32.gmra.mrb[12].mxu1 %vm278_vm1, %v216_v24 }
  0x2f   : > { %426 = vmatprep.mubr.f32.mxu0 %v1032_v0  ;;  %539 = vmatprep.mubr.f32.mxu1 %v1032_v0 }
  0x32   : > { %941 = vmatmul.mubr.msk.f32.gmra.mrb[14].mxu0 %vm278_vm1, %v217_v25  ;;  %951 = vmatmul.mubr.msk.f32.gmra.mrb[14].mxu1 %vm278_vm1, %v217_v25 }
  0x33   : > { %610 = vmatprep.mubr.f32.mxu0 %v1032_v0  ;;  %723 = vmatprep.mubr.f32.mxu1 %v1032_v0 }
  0x36   : > { %954 = vmatmul.mubr.msk.f32.vlgmr.msra.gmra.mrb[16].mxu0 %vm278_vm1, %v210_v12  ;;  %964 = vmatmul.mubr.msk.f32.vlgmr.msra.gmra.mrb[16].mxu1 %vm278_vm1, %v210_v12 }
  0x37   : > { %616 = vmatprep.mubr.f32.mxu0 %v1032_v0  ;;  %729 = vmatprep.mubr.f32.mxu1 %v1032_v0 }
  0x3a   : > { %955 = vmatmul.mubr.msk.f32.gmra.mrb[18].mxu0 %vm278_vm1, %v211_v15  ;;  %965 = vmatmul.mubr.msk.f32.gmra.mrb[18].mxu1 %vm278_vm1, %v211_v15 }
  0x3b   : > { %622 = vmatprep.mubr.f32.mxu0 %v1032_v0  ;;  %735 = vmatprep.mubr.f32.mxu1 %v1032_v0 }
  0x3e   : > { %956 = vmatmul.mubr.msk.f32.gmra.mrb[20].mxu0 %vm278_vm1, %v212_v18  ;;  %966 = vmatmul.mubr.msk.f32.gmra.mrb[20].mxu1 %vm278_vm1, %v212_v18 }
  0x3f   : > { %628 = vmatprep.mubr.f32.mxu0 %v1032_v0  ;;  %741 = vmatprep.mubr.f32.mxu1 %v1032_v0 }
  0x42   : > { %957 = vmatmul.mubr.msk.f32.gmra.mrb[22].mxu0 %vm278_vm1, %v213_v21  ;;  %967 = vmatmul.mubr.msk.f32.gmra.mrb[22].mxu1 %vm278_vm1, %v213_v21 }
  0x43   : > { %634 = vmatprep.mubr.f32.mxu0 %v1032_v0  ;;  %747 = vmatprep.mubr.f32.mxu1 %v1032_v0 }
  0x46   : > { %958 = vmatmul.mubr.msk.f32.gmra.mrb[24].mxu0 %vm278_vm1, %v214_v22  ;;  %968 = vmatmul.mubr.msk.f32.gmra.mrb[24].mxu1 %vm278_vm1, %v214_v22 }
  0x47   : > { %640 = vmatprep.mubr.f32.mxu0 %v1032_v0  ;;  %753 = vmatprep.mubr.f32.mxu1 %v1032_v0 }
  0x4a   : > { %959 = vmatmul.mubr.msk.f32.gmra.mrb[26].mxu0 %vm278_vm1, %v215_v23  ;;  %969 = vmatmul.mubr.msk.f32.gmra.mrb[26].mxu1 %vm278_vm1, %v215_v23 }
  0x4b   : > { %646 = vmatprep.mubr.f32.mxu0 %v1032_v0  ;;  %759 = vmatprep.mubr.f32.mxu1 %v1032_v0 }
  0x4e   : > { %960 = vmatmul.mubr.msk.f32.gmra.mrb[28].mxu0 %vm278_vm1, %v216_v24  ;;  %970 = vmatmul.mubr.msk.f32.gmra.mrb[28].mxu1 %vm278_vm1, %v216_v24 }
  0x4f   : > { %652 = vmatprep.mubr.f32.mxu0 %v1032_v0  ;;  %765 = vmatprep.mubr.f32.mxu1 %v1032_v0 }
  0x52   : > { %961 = vmatmul.mubr.msk.f32.gmra.mrb[30].mxu0 %vm278_vm1, %v217_v25  ;;  %971 = vmatmul.mubr.msk.f32.gmra.mrb[30].mxu1 %vm278_vm1, %v217_v25 }
  0x88   : > { %v1198_v26 = vpop.permute.xlu0 %232  ;;  %v1214_v36 = vpop.permute.xlu1 %242 }
  0x8c   : > { %v1210_v35 = vpop.permute.xlu0 %237  ;;  %v1230_v53 = vpop.permute.xlu1 %247 }
  0x90   : > { %v1240_v62 = vpop.permute.xlu0 %252  ;;  %v1250_v7 = vpop.permute.xlu1 %257 }
  0x9b   : > { %v1260_v16 = vpop.permute.xlu0 %262  ;;  %v1270_v25 = vpop.permute.xlu1 %267 }
  0xe9   : > { %v386_v27 = vpop.f32.mrb[0].mxu0  ;;  %v499_v28 = vpop.f32.mrb[0].mxu1 }
  0xea   : > { %v387_v29 = vadd.f32 %v386_v27, %v1198_v26  ;;  %v500_v30 = vadd.f32 %v499_v28, %v1198_v26  ;;  %v388_v31 = vpop.f32.mrb[1].mxu0  ;;  %v501_v32 = vpop.f32.mrb[1].mxu1 }
  0xeb   : > { %v389_v33 = vadd.f32 %v388_v31, %v1198_v26  ;;  %v502_v34 = vadd.f32 %v501_v32, %v1198_v26 }
  0xec   : > { %772 = vst [vmem:[%s1204_s5] sm:$0xff] %v387_v29  ;;  %774 = vst [vmem:[%s1204_s5 + $0x10] sm:$0xff] %v500_v30 }
  0xed   : > { %773 = vst [vmem:[%s1204_s5 + $0x8] sm:$0xff] %v389_v33  ;;  %775 = vst [vmem:[%s1204_s5 + $0x18] sm:$0xff] %v502_v34  ;;  %v392_v37 = vpop.f32.mrb[2].mxu0  ;;  %v505_v38 = vpop.f32.mrb[2].mxu1 }
  0xee   : > { %v393_v39 = vadd.f32 %v392_v37, %v1210_v35  ;;  %v506_v40 = vadd.f32 %v505_v38, %v1210_v35  ;;  %v394_v41 = vpop.f32.mrb[3].mxu0  ;;  %v507_v42 = vpop.f32.mrb[3].mxu1 }
  0xef   : > { %v395_v43 = vadd.f32 %v394_v41, %v1210_v35  ;;  %v508_v44 = vadd.f32 %v507_v42, %v1210_v35 }
  0xf0   : > { %780 = vst [vmem:[%s1204_s5 + $0x40] sm:$0xff] %v393_v39  ;;  %782 = vst [vmem:[%s1204_s5 + $0x50] sm:$0xff] %v506_v40 }
  0xf1   : > { %781 = vst [vmem:[%s1204_s5 + $0x48] sm:$0xff] %v395_v43  ;;  %783 = vst [vmem:[%s1204_s5 + $0x58] sm:$0xff] %v508_v44  ;;  %v398_v45 = vpop.f32.mrb[4].mxu0  ;;  %v511_v46 = vpop.f32.mrb[4].mxu1 }
  0xf2   : > { %v399_v47 = vadd.f32 %v398_v45, %v1214_v36  ;;  %v512_v48 = vadd.f32 %v511_v46, %v1214_v36  ;;  %v400_v49 = vpop.f32.mrb[5].mxu0  ;;  %v513_v50 = vpop.f32.mrb[5].mxu1 }
  0xf3   : > { %v401_v51 = vadd.f32 %v400_v49, %v1214_v36  ;;  %v514_v52 = vadd.f32 %v513_v50, %v1214_v36 }
  0xf4   : > { %788 = vst [vmem:[%s1204_s5 + $0x80] sm:$0xff] %v399_v47  ;;  %790 = vst [vmem:[%s1204_s5 + $0x90] sm:$0xff] %v512_v48 }
  0xf5   : > { %789 = vst [vmem:[%s1204_s5 + $0x88] sm:$0xff] %v401_v51  ;;  %791 = vst [vmem:[%s1204_s5 + $0x98] sm:$0xff] %v514_v52  ;;  %v404_v54 = vpop.f32.mrb[6].mxu0  ;;  %v517_v55 = vpop.f32.mrb[6].mxu1 }
  0xf6   : > { %v405_v56 = vadd.f32 %v404_v54, %v1230_v53  ;;  %v518_v57 = vadd.f32 %v517_v55, %v1230_v53  ;;  %v406_v58 = vpop.f32.mrb[7].mxu0  ;;  %v519_v59 = vpop.f32.mrb[7].mxu1 }
  0xf7   : > { %v407_v60 = vadd.f32 %v406_v58, %v1230_v53  ;;  %v520_v61 = vadd.f32 %v519_v59, %v1230_v53 }
  0xf8   : > { %796 = vst [vmem:[%s1204_s5 + $0xc0] sm:$0xff] %v405_v56  ;;  %798 = vst [vmem:[%s1204_s5 + $0xd0] sm:$0xff] %v518_v57 }
  0xf9   : > { %797 = vst [vmem:[%s1204_s5 + $0xc8] sm:$0xff] %v407_v60  ;;  %799 = vst [vmem:[%s1204_s5 + $0xd8] sm:$0xff] %v520_v61  ;;  %v410_v63 = vpop.f32.mrb[8].mxu0  ;;  %v523_v0 = vpop.f32.mrb[8].mxu1 }
  0xfa   : > { %v411_v1 = vadd.f32 %v410_v63, %v1240_v62  ;;  %v524_v2 = vadd.f32 %v523_v0, %v1240_v62  ;;  %v412_v3 = vpop.f32.mrb[9].mxu0  ;;  %v525_v4 = vpop.f32.mrb[9].mxu1 }
  0xfb   : > { %v413_v5 = vadd.f32 %v412_v3, %v1240_v62  ;;  %v526_v6 = vadd.f32 %v525_v4, %v1240_v62 }
  0xfc   : > { %804 = vst [vmem:[%s1204_s5 + $0x100] sm:$0xff] %v411_v1  ;;  %806 = vst [vmem:[%s1204_s5 + $0x110] sm:$0xff] %v524_v2 }
  0xfd   : > { %805 = vst [vmem:[%s1204_s5 + $0x108] sm:$0xff] %v413_v5  ;;  %807 = vst [vmem:[%s1204_s5 + $0x118] sm:$0xff] %v526_v6  ;;  %v416_v8 = vpop.f32.mrb[10].mxu0  ;;  %v529_v9 = vpop.f32.mrb[10].mxu1 }
  0xfe   : > { %v417_v10 = vadd.f32 %v416_v8, %v1250_v7  ;;  %v530_v11 = vadd.f32 %v529_v9, %v1250_v7  ;;  %v418_v12 = vpop.f32.mrb[11].mxu0  ;;  %v531_v13 = vpop.f32.mrb[11].mxu1 }
  0xff   : > { %v419_v14 = vadd.f32 %v418_v12, %v1250_v7  ;;  %v532_v15 = vadd.f32 %v531_v13, %v1250_v7 }
 0x100   : > { %812 = vst [vmem:[%s1204_s5 + $0x140] sm:$0xff] %v417_v10  ;;  %814 = vst [vmem:[%s1204_s5 + $0x150] sm:$0xff] %v530_v11 }
 0x101   : > { %813 = vst [vmem:[%s1204_s5 + $0x148] sm:$0xff] %v419_v14  ;;  %815 = vst [vmem:[%s1204_s5 + $0x158] sm:$0xff] %v532_v15  ;;  %v422_v17 = vpop.f32.mrb[12].mxu0  ;;  %v535_v18 = vpop.f32.mrb[12].mxu1 }
 0x102   : > { %v423_v19 = vadd.f32 %v422_v17, %v1260_v16  ;;  %v536_v20 = vadd.f32 %v535_v18, %v1260_v16  ;;  %v424_v21 = vpop.f32.mrb[13].mxu0  ;;  %v537_v22 = vpop.f32.mrb[13].mxu1 }
 0x103   : > { %v425_v23 = vadd.f32 %v424_v21, %v1260_v16  ;;  %v538_v24 = vadd.f32 %v537_v22, %v1260_v16 }
 0x104   : > { %820 = vst [vmem:[%s1204_s5 + $0x180] sm:$0xff] %v423_v19  ;;  %822 = vst [vmem:[%s1204_s5 + $0x190] sm:$0xff] %v536_v20 }
 0x105   : > { %821 = vst [vmem:[%s1204_s5 + $0x188] sm:$0xff] %v425_v23  ;;  %823 = vst [vmem:[%s1204_s5 + $0x198] sm:$0xff] %v538_v24  ;;  %v428_v27 = vpop.f32.mrb[14].mxu0  ;;  %v541_v28 = vpop.f32.mrb[14].mxu1 }
 0x106   : > { %v429_v29 = vadd.f32 %v428_v27, %v1270_v25  ;;  %v542_v30 = vadd.f32 %v541_v28, %v1270_v25  ;;  %v430_v31 = vpop.f32.mrb[15].mxu0  ;;  %v543_v32 = vpop.f32.mrb[15].mxu1 }
 0x107   : > { %v431_v33 = vadd.f32 %v430_v31, %v1270_v25  ;;  %v544_v34 = vadd.f32 %v543_v32, %v1270_v25 }
 0x108   : > { %828 = vst [vmem:[%s1204_s5 + $0x1c0] sm:$0xff] %v429_v29  ;;  %830 = vst [vmem:[%s1204_s5 + $0x1d0] sm:$0xff] %v542_v30 }
 0x109   : > { %829 = vst [vmem:[%s1204_s5 + $0x1c8] sm:$0xff] %v431_v33  ;;  %831 = vst [vmem:[%s1204_s5 + $0x1d8] sm:$0xff] %v544_v34  ;;  %v612_v37 = vpop.f32.mrb[16].mxu0  ;;  %v725_v38 = vpop.f32.mrb[16].mxu1 }
 0x10a   : > { %v613_v39 = vadd.f32 %v612_v37, %v1198_v26  ;;  %v726_v40 = vadd.f32 %v725_v38, %v1198_v26  ;;  %v614_v41 = vpop.f32.mrb[17].mxu0  ;;  %v727_v42 = vpop.f32.mrb[17].mxu1 }
 0x10b   : > { %v615_v43 = vadd.f32 %v614_v41, %v1198_v26  ;;  %v728_v44 = vadd.f32 %v727_v42, %v1198_v26 }
 0x10c   : > { %776 = vst [vmem:[%s1204_s5 + $0x20] sm:$0xff] %v613_v39  ;;  %778 = vst [vmem:[%s1204_s5 + $0x30] sm:$0xff] %v726_v40 }
 0x10d   : > { %777 = vst [vmem:[%s1204_s5 + $0x28] sm:$0xff] %v615_v43  ;;  %779 = vst [vmem:[%s1204_s5 + $0x38] sm:$0xff] %v728_v44  ;;  %v618_v45 = vpop.f32.mrb[18].mxu0  ;;  %v731_v46 = vpop.f32.mrb[18].mxu1 }
 0x10e   : > { %v619_v47 = vadd.f32 %v618_v45, %v1210_v35  ;;  %v732_v48 = vadd.f32 %v731_v46, %v1210_v35  ;;  %v620_v49 = vpop.f32.mrb[19].mxu0  ;;  %v733_v50 = vpop.f32.mrb[19].mxu1 }
 0x10f   : > { %v621_v51 = vadd.f32 %v620_v49, %v1210_v35  ;;  %v734_v26 = vadd.f32 %v733_v50, %v1210_v35 }
 0x110   : > { %784 = vst [vmem:[%s1204_s5 + $0x60] sm:$0xff] %v619_v47  ;;  %786 = vst [vmem:[%s1204_s5 + $0x70] sm:$0xff] %v732_v48 }
 0x111   : > { %785 = vst [vmem:[%s1204_s5 + $0x68] sm:$0xff] %v621_v51  ;;  %787 = vst [vmem:[%s1204_s5 + $0x78] sm:$0xff] %v734_v26  ;;  %v624_v52 = vpop.f32.mrb[20].mxu0  ;;  %v737_v54 = vpop.f32.mrb[20].mxu1 }
 0x112   : > { %v625_v55 = vadd.f32 %v624_v52, %v1214_v36  ;;  %v738_v56 = vadd.f32 %v737_v54, %v1214_v36  ;;  %v626_v57 = vpop.f32.mrb[21].mxu0  ;;  %v739_v58 = vpop.f32.mrb[21].mxu1 }
 0x113   : > { %v627_v59 = vadd.f32 %v626_v57, %v1214_v36  ;;  %v740_v35 = vadd.f32 %v739_v58, %v1214_v36 }
 0x114   : > { %792 = vst [vmem:[%s1204_s5 + $0xa0] sm:$0xff] %v625_v55  ;;  %794 = vst [vmem:[%s1204_s5 + $0xb0] sm:$0xff] %v738_v56 }
 0x115   : > { %793 = vst [vmem:[%s1204_s5 + $0xa8] sm:$0xff] %v627_v59  ;;  %795 = vst [vmem:[%s1204_s5 + $0xb8] sm:$0xff] %v740_v35  ;;  %v630_v60 = vpop.f32.mrb[22].mxu0  ;;  %v743_v61 = vpop.f32.mrb[22].mxu1 }
 0x116   : > { %v631_v63 = vadd.f32 %v630_v60, %v1230_v53  ;;  %v744_v0 = vadd.f32 %v743_v61, %v1230_v53  ;;  %v632_v1 = vpop.f32.mrb[23].mxu0  ;;  %v745_v2 = vpop.f32.mrb[23].mxu1 }
 0x117   : > { %v633_v3 = vadd.f32 %v632_v1, %v1230_v53  ;;  %v746_v36 = vadd.f32 %v745_v2, %v1230_v53 }
 0x118   : > { %800 = vst [vmem:[%s1204_s5 + $0xe0] sm:$0xff] %v631_v63  ;;  %802 = vst [vmem:[%s1204_s5 + $0xf0] sm:$0xff] %v744_v0 }
 0x119   : > { %801 = vst [vmem:[%s1204_s5 + $0xe8] sm:$0xff] %v633_v3  ;;  %803 = vst [vmem:[%s1204_s5 + $0xf8] sm:$0xff] %v746_v36  ;;  %v636_v4 = vpop.f32.mrb[24].mxu0  ;;  %v749_v5 = vpop.f32.mrb[24].mxu1 }
 0x11a   : > { %v637_v6 = vadd.f32 %v636_v4, %v1240_v62  ;;  %v750_v8 = vadd.f32 %v749_v5, %v1240_v62  ;;  %v638_v9 = vpop.f32.mrb[25].mxu0  ;;  %v751_v10 = vpop.f32.mrb[25].mxu1 }
 0x11b   : > { %v639_v11 = vadd.f32 %v638_v9, %v1240_v62  ;;  %v752_v53 = vadd.f32 %v751_v10, %v1240_v62 }
 0x11c   : > { %808 = vst [vmem:[%s1204_s5 + $0x120] sm:$0xff] %v637_v6  ;;  %810 = vst [vmem:[%s1204_s5 + $0x130] sm:$0xff] %v750_v8 }
 0x11d   : > { %809 = vst [vmem:[%s1204_s5 + $0x128] sm:$0xff] %v639_v11  ;;  %811 = vst [vmem:[%s1204_s5 + $0x138] sm:$0xff] %v752_v53  ;;  %v642_v12 = vpop.f32.mrb[26].mxu0  ;;  %v755_v13 = vpop.f32.mrb[26].mxu1 }
 0x11e   : > { %v643_v14 = vadd.f32 %v642_v12, %v1250_v7  ;;  %v756_v15 = vadd.f32 %v755_v13, %v1250_v7  ;;  %v644_v17 = vpop.f32.mrb[27].mxu0  ;;  %v757_v18 = vpop.f32.mrb[27].mxu1 }
 0x11f   : > { %v645_v19 = vadd.f32 %v644_v17, %v1250_v7  ;;  %v758_v62 = vadd.f32 %v757_v18, %v1250_v7 }
 0x120   : > { %816 = vst [vmem:[%s1204_s5 + $0x160] sm:$0xff] %v643_v14  ;;  %818 = vst [vmem:[%s1204_s5 + $0x170] sm:$0xff] %v756_v15 }
 0x121   : > { %817 = vst [vmem:[%s1204_s5 + $0x168] sm:$0xff] %v645_v19  ;;  %819 = vst [vmem:[%s1204_s5 + $0x178] sm:$0xff] %v758_v62  ;;  %v648_v20 = vpop.f32.mrb[28].mxu0  ;;  %v761_v21 = vpop.f32.mrb[28].mxu1 }
 0x122   : > { %v649_v22 = vadd.f32 %v648_v20, %v1260_v16  ;;  %v762_v23 = vadd.f32 %v761_v21, %v1260_v16  ;;  %v650_v24 = vpop.f32.mrb[29].mxu0  ;;  %v763_v27 = vpop.f32.mrb[29].mxu1 }
 0x123   : > { %v651_v28 = vadd.f32 %v650_v24, %v1260_v16  ;;  %v764_v7 = vadd.f32 %v763_v27, %v1260_v16 }
 0x124   : > { %824 = vst [vmem:[%s1204_s5 + $0x1a0] sm:$0xff] %v649_v22  ;;  %826 = vst [vmem:[%s1204_s5 + $0x1b0] sm:$0xff] %v762_v23 }
 0x125   : > { %825 = vst [vmem:[%s1204_s5 + $0x1a8] sm:$0xff] %v651_v28  ;;  %827 = vst [vmem:[%s1204_s5 + $0x1b8] sm:$0xff] %v764_v7  ;;  %v654_v29 = vpop.f32.mrb[30].mxu0  ;;  %v767_v30 = vpop.f32.mrb[30].mxu1 }
 0x126   : > { %v655_v31 = vadd.f32 %v654_v29, %v1270_v25  ;;  %v768_v32 = vadd.f32 %v767_v30, %v1270_v25  ;;  %v656_v33 = vpop.f32.mrb[31].mxu0  ;;  %v769_v34 = vpop.f32.mrb[31].mxu1 }
 0x127   : > { %v657_v37 = vadd.f32 %v656_v33, %v1270_v25  ;;  %v770_v38 = vadd.f32 %v769_v34, %v1270_v25 }
 0x128   : > { %832 = vst [vmem:[%s1204_s5 + $0x1e0] sm:$0xff] %v655_v31  ;;  %834 = vst [vmem:[%s1204_s5 + $0x1f0] sm:$0xff] %v768_v32 }
 0x129   : > { %833 = vst [vmem:[%s1204_s5 + $0x1e8] sm:$0xff] %v657_v37  ;;  %835 = vst [vmem:[%s1204_s5 + $0x1f8] sm:$0xff] %v770_v38 }
 0x12a PF: > { %s13_s14 = sadd.s32 1, %s1030_s14   ;;  %s1361_s12 = smov %s1026_s13 }
 0x12b   : > { %p10_p5 = scmp.ge.s32.totalorder %s13_s14, 4   ;;  %s1362_s13 = smov %s1364_s15 }
 0x12d   :  { %12 = sbr.rel (!%p10_p5) target bundleno = 2 (0x2), region = 62 }

// kernel: adaptive_transposed_conv_upsample.4
= control target key start
LH: loop header
LB: loop body
LE: loop exit
PB: predicated region body
PF: predicated region fallthrough
CT: control target
= control target key end

     0   :  { %s12355_s27 = smov 0   ;;  %s12357_s28 = smov 0   ;;  %s13677_s0 = inlined_call_operand.vmem [shape: f32[2,10,8,1190], index: 0, kind: input, shape index: {}, may-alias: {0,1,2}]   ;;  %s13678_s1 = inlined_call_operand.vmem [shape: f32[2,10,8,1190], index: 1, kind: input, shape index: {}, may-alias: {0,1,2}]   ;;  %s13679_s2 = inlined_call_operand.vmem [shape: f32[2,10,8,1190], index: 2, kind: input, shape index: {}, may-alias: {0,1,2}]   ;;  %s13680_s3 = inlined_call_operand.vmem [shape: f32[27,8,8], index: 3, kind: input, shape index: {}]   ;;  %s13681_s4 = inlined_call_operand.vmem [shape: f32[8,1], index: 4, kind: input, shape index: {}]   ;;  %s13682_s5 = inlined_call_operand.vmem [shape: f32[1,1088], index: 5, kind: input, shape index: {}]   ;;  %s13683_s6 = inlined_call_operand.vmem [shape: f32[2,8,8,1088], index: 6, kind: output, shape index: {0}]   ;;  %s13684_s7 = inlined_call_operand.vmem [shape: f32[2,8,1], index: 7, kind: output, shape index: {1}]   ;;  %s13685_s8 = inlined_call_operand.vmem [shape: f32[2,8,1], index: 8, kind: output, shape index: {2}]  }
   0x1   :  { %s12359_s29 = smov 0   ;;  %s12361_s30 = smov 0  }
   0x2   :  { %s12363_s9 = smov 0  }
   0x3 LB: > { %s28_s10 = sadd.s32 1, %s12288_s29  ;;  %s31_s11 = sadd.s32 1, %s12292_s30  ;;  %s12296_s9 = sphi %s12363_s9, %s19_s9   ;;  %s12292_s30 = sphi %s12361_s30, %s13699_s30   ;;  %s12288_s29 = sphi %s12359_s29, %s13698_s29   ;;  %s12284_s28 = sphi %s12357_s28, %s13697_s28   ;;  %s12280_s27 = sphi %s12355_s27, %s13696_s27  }
   0x4   : > { %p29_p0 = scmp.ge.s32.totalorder %s28_s10, 8  ;;  %p11629_p1 = scmp.ge.s32.totalorder %s12296_s9, 1 }
   0x5   : > { %p327_p2 = scmp.lt.s32.totalorder %s12296_s9, 17 }
   0x6   : > { %s13701_s10 = smov (%p29_p0, %s28_s10), 0  ;;  %s13703_s11 = smov (!%p29_p0, %s31_s11), %s12292_s30 }
   0x7   : > { %p328_p3 = pnand %p11629_p1, %p327_p2  ;;  %p33_p4 = scmp.ge.s32.totalorder %s13703_s11, 2 }
   0x8   : > { %p397_p5 = scmp.lt.s32.totalorder (!%p328_p3), %s12284_s28, 1  ;;  %p399_p6 = scmp.lt.s32.totalorder (!%p328_p3), %s12280_s27, 9  ;;  %v12298_v0 = vmov (!%p328_p3), 0.0   ;;  %vm485_vm0 = vcmask (!%p328_p3), 1039360   ;;  %v11636_v16 = vld [vmem:[%s13680_s3 + $0x8] sm:$0xff] (!%p328_p3)  ;;  %vm503_vm1 = vcmask (!%p328_p3), 64512  }
   0x9   : > { %s13705_s11 = smov (%p33_p4, %s13703_s11), 0  ;;  %331 = sbr.rel (%p328_p3) target bundleno = 971 (0x3cb), region = 44 }
   0xa   : > { %571 = vmatprep.mubr.f32.mxu0 (!%p328_p3), %v12298_v0  ;;  %642 = vmatprep.mubr.f32.mxu1 (!%p328_p3), %v12298_v0  ;;  %s12302_s16 = smov (!%p328_p3), 93   ;;  %s13690_s17 = smov (!%p328_p3), 92   ;;  %vm12307_vm2 = vmmov (!%p328_p3), 0   ;;  %v455_v32 = vld [vmem:[%s13680_s3] sm:$0xff] (!%p328_p3)  ;;  %vm1238_vm3 = vcmask (!%p328_p3), 1031168   ;;  %v11647_v43 = vld [vmem:[%s13680_s3 + $0x10] sm:$0xff] (!%p328_p3) }
   0xb   : > { %s13688_s19 = smov (!%p328_p3), 60   ;;  %s13686_s20 = smov (!%p328_p3), 59   ;;  %vm1642_vm4 = vcmask (!%p328_p3), 769024   ;;  %v11653_v63 = vld [vmem:[%s13680_s3 + $0x18] sm:$0xff] (!%p328_p3)  ;;  %vm2046_vm5 = vcmask (!%p328_p3), 760832   ;;  %vm2450_vm6 = vcmask (!%p328_p3), 752640  }
   0xc   : > { %s406_s24 = sadd.s32 (!%p328_p3), 1, %s12280_s27  ;;  %vm2857_vm7 = vcmask (!%p328_p3), 490496   ;;  %vm3264_vm8 = vcmask (!%p328_p3), 482304   ;;  %vm3671_vm9 = vcmask (!%p328_p3), 474112   ;;  %p430_p9 = scmp.lt.s32.totalorder (!%p328_p3), %s12280_s27, 7  ;;  %vm11321_vm10 = vcmask (!%p328_p3), 523264  }
   0xd   : > { %p12587_p7 = scmp.lt.s32.totalorder (!%p328_p3), %s406_s24, 9  ;;  %p11798_p10 = scmp.ne.s32.totalorder (!%p328_p3), %s12280_s27, 0 }
  0x10   : > { %s13707_s28 = smov (!%p397_p5, %s12284_s28), 1  ;;  %s13709_s24 = smov (!%p12587_p7, %s406_s24), 9 }
  0x11   : > { %s400_s12 = scalar_select %p399_p6, %s12280_s27, 9 }
  0x12   : > { %s12392_s13 = smul.u32 100, %s13707_s28  ;;  %s11634_s14 = sshll.u32 %s13707_s28, 3  ;;  %vm11416_vm11 = vcmask (!%p11798_p10), 7168  }
  0x13   : > { %s12198_s15 = smul.u32 10, %s400_s12  ;;  %s12398_s18 = scalar_lea.vmem %s13684_s7, %s11634_s14 }
  0x14   : > { %s12403_s21 = scalar_lea.vmem %s13685_s8, %s11634_s14  ;;  %s12299_s12 = smov 127  }
  0x15   : > { %s403_s22 = sadd.s32 %s12392_s13, %s12198_s15  ;;  %s12300_s14 = smov 126  }
  0x16   : > { %s11630_s23 = sshll.u32 %s403_s22, 3  ;;  %s12301_s15 = smov 94  }
  0x17   : > { %s12409_s26 = scalar_lea.vmem %s13677_s0, %s11630_s23  ;;  %s12200_s25 = smul.u32 10, %s13709_s24 }
  0x18   : > { %v12414_v1 = vld [vmem:[%s12409_s26 + $0x8] sm:$0xff]  ;;  %v12417_v2 = vld [vmem:[%s12409_s26] sm:$0xff]  ;;  %v12424_v3 = vld [vmem:[%s12409_s26 + $0x10] sm:$0xff] }
  0x19   : > { %469 = vrot.lane.b32.xlu0 %v12414_v1, %s12299_s12  ;;  %467 = vrot.lane.b32.xlu1 %v12417_v2, %s12299_s12  ;;  %v12427_v4 = vld [vmem:[%s12409_s26 + $0x18] sm:$0xff]  ;;  %v12434_v5 = vld [vmem:[%s12409_s26 + $0x20] sm:$0xff]  ;;  %s413_s24 = sadd.s32 %s12200_s25, %s12392_s13 }
  0x1a   : > { %v12437_v6 = vld [vmem:[%s12409_s26 + $0x28] sm:$0xff]  ;;  %v12444_v7 = vld [vmem:[%s12409_s26 + $0x30] sm:$0xff]  ;;  %v12447_v8 = vld [vmem:[%s12409_s26 + $0x38] sm:$0xff]  ;;  %s11631_s22 = sshll.u32 %s413_s24, 3 }
  0x1b   : > { %v12454_v9 = vld [vmem:[%s12409_s26 + $0x40] sm:$0xff]  ;;  %v12549_v10 = vld [vmem:[%s12409_s26 + $0x48] sm:$0xff]  ;;  %s12306_s26 = smov 58   ;;  %s12644_s24 = scalar_lea.vmem %s13678_s1, %s11631_s22 }
  0x1c   : > { %v12657_v44 = vld [vmem:[%s12644_s24 + $0x8] sm:$0xff]  ;;  %v12674_v50 = vld [vmem:[%s12644_s24 + $0x10] sm:$0xff]  ;;  %v12677_v51 = vld [vmem:[%s12644_s24] sm:$0xff] }
  0x1d   : > { %471 = vrot.lane.b32.xlu0 %v12424_v3, %s12299_s12  ;;  %473 = vrot.lane.b32.xlu1 %v12427_v4, %s12299_s12  ;;  %v12692_v58 = vld [vmem:[%s12644_s24 + $0x18] sm:$0xff]  ;;  %v12695_v59 = vld [vmem:[%s12644_s24 + $0x20] sm:$0xff] }
  0x21   : > { %475 = vrot.lane.b32.xlu0 %v12434_v5, %s12299_s12  ;;  %477 = vrot.lane.b32.xlu1 %v12437_v6, %s12299_s12 }
  0x25   : > { %479 = vrot.lane.b32.xlu0 %v12444_v7, %s12299_s12  ;;  %481 = vrot.lane.b32.xlu1 %v12447_v8, %s12299_s12 }
  0x29   : > { %483 = vrot.lane.b32.xlu0 %v12454_v9, %s12299_s12  ;;  %1222 = vrot.lane.b32.xlu1 %v12414_v1, %s12300_s14 }
  0x2d   : > { %1224 = vrot.lane.b32.xlu0 %v12424_v3, %s12300_s14  ;;  %1220 = vrot.lane.b32.xlu1 %v12417_v2, %s12300_s14 }
  0x31   : > { %1226 = vrot.lane.b32.xlu0 %v12427_v4, %s12300_s14  ;;  %1228 = vrot.lane.b32.xlu1 %v12434_v5, %s12300_s14 }
  0x35   : > { %1230 = vrot.lane.b32.xlu0 %v12437_v6, %s12300_s14  ;;  %1232 = vrot.lane.b32.xlu1 %v12444_v7, %s12300_s14 }
  0x39   : > { %1234 = vrot.lane.b32.xlu0 %v12447_v8, %s12300_s14  ;;  %1236 = vrot.lane.b32.xlu1 %v12454_v9, %s12300_s14 }
  0x3d   : > { %1630 = vrot.lane.b32.xlu0 %v12427_v4, %s12301_s15  ;;  %1632 = vrot.lane.b32.xlu1 %v12434_v5, %s12301_s15 }
  0x41   : > { %1626 = vrot.lane.b32.xlu0 %v12414_v1, %s12301_s15  ;;  %1628 = vrot.lane.b32.xlu1 %v12424_v3, %s12301_s15 }
  0x45   : > { %1624 = vrot.lane.b32.xlu0 %v12417_v2, %s12301_s15  ;;  %1638 = vrot.lane.b32.xlu1 %v12447_v8, %s12301_s15 }
  0x49   : > { %1640 = vrot.lane.b32.xlu0 %v12454_v9, %s12301_s15  ;;  %1634 = vrot.lane.b32.xlu1 %v12437_v6, %s12301_s15 }
  0x4d   : > { %1636 = vrot.lane.b32.xlu0 %v12444_v7, %s12301_s15  ;;  %2030 = vrot.lane.b32.xlu1 %v12414_v1, %s12302_s16 }
  0x51   : > { %2032 = vrot.lane.b32.xlu0 %v12424_v3, %s12302_s16  ;;  %2028 = vrot.lane.b32.xlu1 %v12417_v2, %s12302_s16 }
  0x55   : > { %2034 = vrot.lane.b32.xlu0 %v12427_v4, %s12302_s16  ;;  %2036 = vrot.lane.b32.xlu1 %v12434_v5, %s12302_s16 }
  0x59   : > { %2038 = vrot.lane.b32.xlu0 %v12437_v6, %s12302_s16  ;;  %2040 = vrot.lane.b32.xlu1 %v12444_v7, %s12302_s16 }
  0x5d   : > { %2042 = vrot.lane.b32.xlu0 %v12447_v8, %s12302_s16  ;;  %2044 = vrot.lane.b32.xlu1 %v12454_v9, %s12302_s16 }
  0x61   : > { %2438 = vrot.lane.b32.xlu0 %v12427_v4, %s13690_s17  ;;  %2440 = vrot.lane.b32.xlu1 %v12434_v5, %s13690_s17 }
  0x65   : > { %2434 = vrot.lane.b32.xlu0 %v12414_v1, %s13690_s17  ;;  %2436 = vrot.lane.b32.xlu1 %v12424_v3, %s13690_s17 }
  0x69   : > { %2432 = vrot.lane.b32.xlu0 %v12417_v2, %s13690_s17  ;;  %2446 = vrot.lane.b32.xlu1 %v12447_v8, %s13690_s17 }
  0x6d   : > { %2448 = vrot.lane.b32.xlu0 %v12454_v9, %s13690_s17  ;;  %2442 = vrot.lane.b32.xlu1 %v12437_v6, %s13690_s17 }
  0x71   : > { %2444 = vrot.lane.b32.xlu0 %v12444_v7, %s13690_s17  ;;  %2839 = vrot.lane.b32.xlu1 %v12414_v1, %s13688_s19 }
  0x75   : > { %2841 = vrot.lane.b32.xlu0 %v12424_v3, %s13688_s19  ;;  %2837 = vrot.lane.b32.xlu1 %v12417_v2, %s13688_s19 }
  0x79   : > { %2843 = vrot.lane.b32.xlu0 %v12427_v4, %s13688_s19  ;;  %2845 = vrot.lane.b32.xlu1 %v12434_v5, %s13688_s19 }
  0x7d   : > { %2847 = vrot.lane.b32.xlu0 %v12437_v6, %s13688_s19  ;;  %2849 = vrot.lane.b32.xlu1 %v12444_v7, %s13688_s19 }
  0x81   : > { %2851 = vrot.lane.b32.xlu0 %v12447_v8, %s13688_s19  ;;  %2853 = vrot.lane.b32.xlu1 %v12454_v9, %s13688_s19 }
  0x85   : > { %2855 = vrot.lane.b32.xlu0 %v12549_v10, %s13688_s19  ;;  %3250 = vrot.lane.b32.xlu1 %v12427_v4, %s13686_s20  ;;  %s13693_s19 = smov 60  }
  0x89   : > { %3252 = vrot.lane.b32.xlu0 %v12434_v5, %s13686_s20  ;;  %3246 = vrot.lane.b32.xlu1 %v12414_v1, %s13686_s20 }
  0x8b   : > { %v470_v11 = vpop.permute.xlu0 %469  ;;  %v468_v12 = vpop.permute.xlu1 %467 }
  0x8c   : > { %v486_v17 = vsel %vm485_vm0, %v468_v12, %v470_v11 }
  0x8d   : > { %3248 = vrot.lane.b32.xlu0 %v12424_v3, %s13686_s20  ;;  %3244 = vrot.lane.b32.xlu1 %v12417_v2, %s13686_s20 }
  0x8f   : > { %v472_v13 = vpop.permute.xlu0 %471  ;;  %v474_v14 = vpop.permute.xlu1 %473 }
  0x90   : > { %v487_v15 = vsel %vm485_vm0, %v470_v11, %v472_v13  ;;  %v488_v21 = vsel %vm485_vm0, %v472_v13, %v474_v14 }
  0x91   : > { %507 = vmatprep.subr.mxu0 %v487_v15  ;;  %3258 = vrot.lane.b32.xlu0 %v12447_v8, %s13686_s20 }
  0x92   : > { %3260 = vrot.lane.b32.xlu1 %v12454_v9, %s13686_s20  ;;  %508 = vmatpush1.msra.mxu0 %v486_v17  ;;  %v11659_v17 = vld [vmem:[%s13680_s3 + $0x20] sm:$0xff] }
  0x93   : > { %v476_v18 = vpop.permute.xlu0 %475  ;;  %v478_v19 = vpop.permute.xlu1 %477  ;;  %11637 = vmatmul.mubr.msk.f32.vlgmr.msra.gmra.mrb[0].mxu0 %vm503_vm1, %v11636_v16 }
  0x94   : > { %v489_v20 = vsel %vm485_vm0, %v474_v14, %v476_v18  ;;  %713 = vmatprep.mubr.f32.mxu0 %v12298_v0  ;;  %v490_v25 = vsel %vm485_vm0, %v476_v18, %v478_v19 }
  0x95   : > { %3254 = vrot.lane.b32.xlu0 %v12437_v6, %s13686_s20  ;;  %578 = vmatprep.subr.mxu1 %v489_v20 }
  0x96   : > { %3256 = vrot.lane.b32.xlu1 %v12444_v7, %s13686_s20  ;;  %579 = vmatpush1.msra.mxu1 %v488_v21 }
  0x97   : > { %v480_v22 = vpop.permute.xlu0 %479  ;;  %v482_v23 = vpop.permute.xlu1 %481  ;;  %11638 = vmatmul.mubr.msk.f32.vlgmr.msra.gmra.mrb[0].mxu1 %vm503_vm1, %v11636_v16 }
  0x98   : > { %v491_v24 = vsel %vm485_vm0, %v478_v19, %v480_v22  ;;  %784 = vmatprep.mubr.f32.mxu1 %v12298_v0  ;;  %v492_v29 = vsel %vm485_vm0, %v480_v22, %v482_v23 }
  0x99   : > { %3262 = vrot.lane.b32.xlu0 %v12549_v10, %s13686_s20  ;;  %649 = vmatprep.subr.mxu0 %v491_v24  ;;  %s417_s20 = sadd.s32 2, %s12280_s27 }
  0x9a   : > { %3653 = vrot.lane.b32.xlu1 %v12414_v1, %s12306_s26  ;;  %650 = vmatpush1.msra.mxu0 %v490_v25  ;;  %p420_p8 = scmp.lt.s32.totalorder %s417_s20, 9 }
  0x9b   : > { %v484_v26 = vpop.permute.xlu0 %483  ;;  %11639 = vmatmul.mubr.msk.f32.vlgmr.msra.gmra.mrb[2].mxu0 %vm503_vm1, %v11636_v16  ;;  %11855 = vmatprep.subr.mxu0 %v12298_v0  ;;  %v1223_v27 = vpop.permute.xlu1 %1222 }
  0x9c   : > { %11856 = vmatpush3.msra.mxu0 %v484_v26  ;;  %v493_v28 = vsel %vm485_vm0, %v482_v23, %v484_v26  ;;  %11857 = vmatprep.mubr.msk.f32.mxu0 %vm12307_vm2, %v12298_v0  ;;  %s13711_s20 = smov (!%p420_p8, %s417_s20), 9 }
  0x9d   : > { %3655 = vrot.lane.b32.xlu0 %v12424_v3, %s12306_s26  ;;  %720 = vmatprep.subr.mxu1 %v493_v28  ;;  %s12201_s25 = smul.u32 10, %s13711_s20 }
  0x9e   : > { %3651 = vrot.lane.b32.xlu1 %v12417_v2, %s12306_s26  ;;  %721 = vmatpush1.msra.mxu1 %v492_v29 }
  0x9f   : > { %v1225_v30 = vpop.permute.xlu0 %1224  ;;  %11640 = vmatmul.mubr.msk.f32.vlgmr.msra.gmra.mrb[2].mxu1 %vm503_vm1, %v11636_v16  ;;  %11858 = vmatmul.mubr.msk.f32.vlgmr.msra.gmra.mrb[4].mxu0 %vm503_vm1, %v11636_v16  ;;  %v1221_v31 = vpop.permute.xlu1 %1220  ;;  %s424_s23 = sadd.s32 %s12201_s25, %s12392_s13 }
  0xa0   : > { %864 = vmatprep.subr.mxu0 %v12414_v1  ;;  %935 = vmatprep.subr.mxu1 %v12427_v4  ;;  %v1240_v35 = vsel %vm1238_vm3, %v1223_v27, %v1225_v30  ;;  %v1239_v38 = vsel %vm1238_vm3, %v1221_v31, %v1223_v27  ;;  %v12709_v1 = vld [vmem:[%s12644_s24 + $0x28] sm:$0xff]  ;;  %s431_s25 = scalar_select %p430_p9, %s12280_s27, 7 }
  0xa1   : > { %3657 = vrot.lane.b32.xlu0 %v12427_v4, %s12306_s26  ;;  %865 = vmatpush1.msra.mxu0 %v12417_v2  ;;  %v12712_v2 = vld [vmem:[%s12644_s24 + $0x30] sm:$0xff] }
  0xa2   : > { %3659 = vrot.lane.b32.xlu1 %v12434_v5, %s12306_s26  ;;  %928 = vmatprep.mubr.f32.mxu0 %v12298_v0 }
  0xa3   : > { %936 = vmatpush1.msra.mxu1 %v12424_v3  ;;  %999 = vmatprep.mubr.f32.mxu1 %v12298_v0  ;;  %v1227_v33 = vpop.permute.xlu0 %1226  ;;  %v1229_v34 = vpop.permute.xlu1 %1228 }
  0xa4   : > { %1006 = vmatprep.subr.mxu0 %v12437_v6  ;;  %11642 = vmatmul.mubr.msk.f32.vlgmr.msra.gmra.mrb[0].mxu0 %vm503_vm1, %v455_v32  ;;  %v1242_v40 = vsel %vm1238_vm3, %v1227_v33, %v1229_v34  ;;  %v1241_v45 = vsel %vm1238_vm3, %v1225_v30, %v1227_v33 }
  0xa5   : > { %11643 = vmatmul.mubr.msk.f32.vlgmr.msra.gmra.mrb[0].mxu1 %vm503_vm1, %v455_v32  ;;  %1007 = vmatpush1.msra.mxu0 %v12434_v5 }
  0xa6   : > { %1077 = vmatprep.subr.mxu1 %v12447_v8  ;;  %1259 = vmatprep.subr.mxu0 %v1240_v35 }
  0xa7   : > { %3661 = vrot.lane.b32.xlu0 %v12437_v6, %s12306_s26  ;;  %3663 = vrot.lane.b32.xlu1 %v12444_v7, %s12306_s26  ;;  %v1231_v36 = vpop.permute.xlu0 %1230  ;;  %v1233_v37 = vpop.permute.xlu1 %1232  ;;  %v12724_v6 = vld [vmem:[%s12644_s24 + $0x38] sm:$0xff] }
  0xa8   : > { %1078 = vmatpush1.msra.mxu1 %v12444_v7  ;;  %1070 = vmatprep.mubr.f32.mxu0 %v12298_v0  ;;  %v1244_v39 = vsel %vm1238_vm3, %v1231_v36, %v1233_v37  ;;  %v1243_v46 = vsel %vm1238_vm3, %v1229_v34, %v1231_v36  ;;  %v12727_v7 = vld [vmem:[%s12644_s24 + $0x40] sm:$0xff] }
  0xa9   : > { %1141 = vmatprep.mubr.f32.mxu1 %v12298_v0  ;;  %11860 = vmatprep.subr.mxu1 %v12298_v0 }
  0xaa   : > { %11644 = vmatmul.mubr.msk.f32.vlgmr.msra.gmra.mrb[2].mxu0 %vm503_vm1, %v455_v32  ;;  %11645 = vmatmul.mubr.msk.f32.vlgmr.msra.gmra.mrb[2].mxu1 %vm503_vm1, %v455_v32 }
  0xab   : > { %11861 = vmatpush3.msra.mxu1 %v12454_v9  ;;  %1260 = vmatpush1.msra.mxu0 %v1239_v38  ;;  %v1235_v41 = vpop.permute.xlu0 %1234  ;;  %v1237_v42 = vpop.permute.xlu1 %1236 }
  0xac   : > { %1330 = vmatprep.subr.mxu1 %v1242_v40  ;;  %3665 = vrot.lane.b32.xlu0 %v12447_v8, %s12306_s26  ;;  %v1246_v47 = vsel %vm1238_vm3, %v1235_v41, %v1237_v42  ;;  %v1245_v54 = vsel %vm1238_vm3, %v1233_v37, %v1235_v41  ;;  %v11665_v37 = vld [vmem:[%s13680_s3 + $0x28] sm:$0xff] }
  0xad   : > { %3667 = vrot.lane.b32.xlu1 %v12454_v9, %s12306_s26  ;;  %1401 = vmatprep.subr.mxu0 %v1244_v39 }
  0xae   : > { %11862 = vmatprep.mubr.msk.f32.mxu1 %vm12307_vm2, %v12298_v0  ;;  %1323 = vmatprep.mubr.f32.mxu0 %v12298_v0 }
  0xaf   : > { %11863 = vmatmul.mubr.msk.f32.vlgmr.msra.gmra.mrb[4].mxu1 %vm503_vm1, %v455_v32  ;;  %11648 = vmatmul.mubr.msk.f32.vlgmr.msra.gmra.mrb[0].mxu0 %vm503_vm1, %v11647_v43  ;;  %v1631_v48 = vpop.permute.xlu0 %1630  ;;  %v12664_v49 = vpop.permute.xlu1 %1632 }
  0xb0   : > { %1331 = vmatpush1.msra.mxu1 %v1241_v45  ;;  %1402 = vmatpush1.msra.mxu0 %v1243_v46  ;;  %v1646_v55 = vsel %vm1642_vm4, %v1631_v48, %v12664_v49 }
  0xb1   : > { %3669 = vrot.lane.b32.xlu0 %v12549_v10, %s12306_s26  ;;  %4447 = vrot.lane.b32.xlu1 %v12657_v44, %s12299_s12 }
  0xb2   : > { %1472 = vmatprep.subr.mxu1 %v1246_v47  ;;  %1394 = vmatprep.mubr.f32.mxu1 %v12298_v0 }
  0xb3   : > { %1465 = vmatprep.mubr.f32.mxu0 %v12298_v0  ;;  %11865 = vmatprep.subr.mxu0 %v12298_v0  ;;  %v1627_v52 = vpop.permute.xlu0 %1626  ;;  %v1629_v53 = vpop.permute.xlu1 %1628 }
  0xb4   : > { %11649 = vmatmul.mubr.msk.f32.vlgmr.msra.gmra.mrb[0].mxu1 %vm503_vm1, %v11647_v43  ;;  %11650 = vmatmul.mubr.msk.f32.vlgmr.msra.gmra.mrb[2].mxu0 %vm503_vm1, %v11647_v43  ;;  %v1644_v56 = vsel %vm1642_vm4, %v1627_v52, %v1629_v53  ;;  %v1645_v57 = vsel %vm1642_vm4, %v1629_v53, %v1631_v48 }
  0xb5   : > { %1473 = vmatpush1.msra.mxu1 %v1245_v54  ;;  %11866 = vmatpush3.msra.mxu0 %v1237_v42 }
  0xb6   : > { %4449 = vrot.lane.b32.xlu0 %v12674_v50, %s12299_s12  ;;  %4445 = vrot.lane.b32.xlu1 %v12677_v51, %s12299_s12 }
  0xb7   : > { %1734 = vmatprep.subr.mxu1 %v1646_v55  ;;  %1536 = vmatprep.mubr.f32.mxu1 %v12298_v0  ;;  %v1625_v60 = vpop.permute.xlu0 %1624  ;;  %v1639_v61 = vpop.permute.xlu1 %1638 }
  0xb8   : > { %11651 = vmatmul.mubr.msk.f32.vlgmr.msra.gmra.mrb[2].mxu1 %vm503_vm1, %v11647_v43  ;;  %1663 = vmatprep.subr.mxu0 %v1644_v56  ;;  %v1643_v62 = vsel %vm1642_vm4, %v1625_v60, %v1627_v52  ;;  %v11671_v56 = vld [vmem:[%s13680_s3 + $0x30] sm:$0xff] }
  0xb9   : > { %1735 = vmatpush1.msra.mxu1 %v1645_v57  ;;  %11867 = vmatprep.mubr.msk.f32.mxu0 %vm12307_vm2, %v12298_v0 }
  0xba   : > { %4451 = vrot.lane.b32.xlu0 %v12692_v58, %s12299_s12  ;;  %4453 = vrot.lane.b32.xlu1 %v12695_v59, %s12299_s12 }
  0xbb   : > { %11868 = vmatmul.mubr.msk.f32.vlgmr.msra.gmra.mrb[6].mxu0 %vm503_vm1, %v11647_v43  ;;  %v1641_v3 = vpop.permute.xlu0 %1640  ;;  %v1635_v4 = vpop.permute.xlu1 %1634  ;;  %1798 = vmatprep.mubr.f32.mxu1 %v12298_v0 }
  0xbc   : > { %1664 = vmatpush1.msra.mxu0 %v1643_v62  ;;  %v1650_v5 = vsel %vm1642_vm4, %v1639_v61, %v1641_v3  ;;  %11655 = vmatmul.mubr.msk.f32.vlgmr.msra.gmra.mrb[0].mxu1 %vm503_vm1, %v11653_v63  ;;  %v1647_v12 = vsel %vm1642_vm4, %v12664_v49, %v1635_v4 }
  0xbd   : > { %1876 = vmatprep.subr.mxu1 %v1650_v5  ;;  %1727 = vmatprep.mubr.f32.mxu0 %v12298_v0 }
  0xbe   : > { %4455 = vrot.lane.b32.xlu0 %v12709_v1, %s12299_s12  ;;  %4457 = vrot.lane.b32.xlu1 %v12712_v2, %s12299_s12 }
  0xbf   : > { %v1637_v8 = vpop.permute.xlu0 %1636  ;;  %v2031_v9 = vpop.permute.xlu1 %2030  ;;  %11654 = vmatmul.mubr.msk.f32.vlgmr.msra.gmra.mrb[0].mxu0 %vm503_vm1, %v11653_v63  ;;  %1940 = vmatprep.mubr.f32.mxu1 %v12298_v0 }
  0xc0   : > { %v1648_v10 = vsel %vm1642_vm4, %v1635_v4, %v1637_v8  ;;  %v1649_v11 = vsel %vm1642_vm4, %v1637_v8, %v1639_v61  ;;  %1869 = vmatprep.mubr.f32.mxu0 %v12298_v0 }
  0xc1   : > { %1805 = vmatprep.subr.mxu0 %v1648_v10  ;;  %1877 = vmatpush1.msra.mxu1 %v1649_v11 }
  0xc2   : > { %4459 = vrot.lane.b32.xlu0 %v12724_v6, %s12299_s12  ;;  %4461 = vrot.lane.b32.xlu1 %v12727_v7, %s12299_s12 }
  0xc3   : > { %1806 = vmatpush1.msra.mxu0 %v1647_v12  ;;  %11870 = vmatprep.subr.mxu1 %v12298_v0  ;;  %v2033_v13 = vpop.permute.xlu0 %2032  ;;  %v2029_v14 = vpop.permute.xlu1 %2028 }
  0xc4   : > { %11657 = vmatmul.mubr.msk.f32.vlgmr.msra.gmra.mrb[2].mxu1 %vm503_vm1, %v11653_v63  ;;  %v2047_v15 = vsel %vm2046_vm5, %v2029_v14, %v2031_v9  ;;  %v2048_v16 = vsel %vm2046_vm5, %v2031_v9, %v2033_v13  ;;  %11656 = vmatmul.mubr.msk.f32.vlgmr.msra.gmra.mrb[2].mxu0 %vm503_vm1, %v11653_v63 }
  0xc5   : > { %11871 = vmatpush3.msra.mxu1 %v1641_v3  ;;  %2067 = vmatprep.subr.mxu0 %v2048_v16 }
  0xc6   : > { %4854 = vrot.lane.b32.xlu0 %v12692_v58, %s12300_s14  ;;  %4856 = vrot.lane.b32.xlu1 %v12695_v59, %s12300_s14 }
  0xc7   : > { %2068 = vmatpush1.msra.mxu0 %v2047_v15  ;;  %v2035_v18 = vpop.permute.xlu0 %2034  ;;  %v2037_v19 = vpop.permute.xlu1 %2036  ;;  %11872 = vmatprep.mubr.msk.f32.mxu1 %vm12307_vm2, %v12298_v0 }
  0xc8   : > { %v2050_v20 = vsel %vm2046_vm5, %v2035_v18, %v2037_v19  ;;  %11873 = vmatmul.mubr.msk.f32.vlgmr.msra.gmra.mrb[6].mxu1 %vm503_vm1, %v11653_v63  ;;  %v2049_v21 = vsel %vm2046_vm5, %v2033_v13, %v2035_v18  ;;  %2131 = vmatprep.mubr.f32.mxu0 %v12298_v0 }
  0xc9   : > { %2138 = vmatprep.subr.mxu1 %v2050_v20  ;;  %11660 = vmatmul.mubr.msk.f32.vlgmr.msra.gmra.mrb[0].mxu0 %vm503_vm1, %v11659_v17 }
  0xca   : > { %4850 = vrot.lane.b32.xlu0 %v12657_v44, %s12300_s14  ;;  %4852 = vrot.lane.b32.xlu1 %v12674_v50, %s12300_s14 }
  0xcb   : > { %2139 = vmatpush1.msra.mxu1 %v2049_v21  ;;  %v2039_v22 = vpop.permute.xlu0 %2038  ;;  %v2041_v23 = vpop.permute.xlu1 %2040  ;;  %2202 = vmatprep.mubr.f32.mxu1 %v12298_v0 }
  0xcc   : > { %v2052_v24 = vsel %vm2046_vm5, %v2039_v22, %v2041_v23  ;;  %v2051_v25 = vsel %vm2046_vm5, %v2037_v19, %v2039_v22  ;;  %2273 = vmatprep.mubr.f32.mxu0 %v12298_v0  ;;  %11661 = vmatmul.mubr.msk.f32.vlgmr.msra.gmra.mrb[0].mxu1 %vm503_vm1, %v11659_v17 }
  0xcd   : > { %2209 = vmatprep.subr.mxu0 %v2052_v24  ;;  %2344 = vmatprep.mubr.f32.mxu1 %v12298_v0 }
  0xce   : > { %4848 = vrot.lane.b32.xlu0 %v12677_v51, %s12300_s14  ;;  %4862 = vrot.lane.b32.xlu1 %v12724_v6, %s12300_s14 }
  0xcf   : > { %2210 = vmatpush1.msra.mxu0 %v2051_v25  ;;  %v2043_v26 = vpop.permute.xlu0 %2042  ;;  %v2045_v27 = vpop.permute.xlu1 %2044 }
  0xd0   : > { %v2054_v28 = vsel %vm2046_vm5, %v2043_v26, %v2045_v27  ;;  %11875 = vmatprep.subr.mxu0 %v12298_v0  ;;  %11662 = vmatmul.mubr.msk.f32.vlgmr.msra.gmra.mrb[2].mxu0 %vm503_vm1, %v11659_v17  ;;  %v2053_v29 = vsel %vm2046_vm5, %v2041_v23, %v2043_v26  ;;  %v11677_v23 = vld [vmem:[%s13680_s3 + $0x38] sm:$0xff] }
  0xd1   : > { %2280 = vmatprep.subr.mxu1 %v2054_v28  ;;  %11876 = vmatpush3.msra.mxu0 %v2045_v27 }
  0xd2   : > { %4864 = vrot.lane.b32.xlu0 %v12727_v7, %s12300_s14  ;;  %4858 = vrot.lane.b32.xlu1 %v12709_v1, %s12300_s14 }
  0xd3   : > { %2281 = vmatpush1.msra.mxu1 %v2053_v29  ;;  %v2439_v30 = vpop.permute.xlu0 %2438  ;;  %v2441_v31 = vpop.permute.xlu1 %2440  ;;  %11877 = vmatprep.mubr.msk.f32.mxu0 %vm12307_vm2, %v12298_v0 }
  0xd4   : > { %v2454_v32 = vsel %vm2450_vm6, %v2439_v30, %v2441_v31  ;;  %11663 = vmatmul.mubr.msk.f32.vlgmr.msra.gmra.mrb[2].mxu1 %vm503_vm1, %v11659_v17  ;;  %11878 = vmatmul.mubr.msk.f32.vlgmr.msra.gmra.mrb[8].mxu0 %vm503_vm1, %v11659_v17 }
  0xd5   : > { %2542 = vmatprep.subr.mxu1 %v2454_v32  ;;  %2606 = vmatprep.mubr.f32.mxu1 %v12298_v0 }
  0xd6   : > { %4860 = vrot.lane.b32.xlu0 %v12712_v2, %s12300_s14  ;;  %5253 = vrot.lane.b32.xlu1 %v12657_v44, %s12301_s15 }
  0xd7   : > { %v2435_v33 = vpop.permute.xlu0 %2434  ;;  %v2437_v34 = vpop.permute.xlu1 %2436  ;;  %2535 = vmatprep.mubr.f32.mxu0 %v12298_v0 }
  0xd8   : > { %v2452_v35 = vsel %vm2450_vm6, %v2435_v33, %v2437_v34  ;;  %v2453_v36 = vsel %vm2450_vm6, %v2437_v34, %v2439_v30 }
  0xd9   : > { %2471 = vmatprep.subr.mxu0 %v2452_v35  ;;  %2543 = vmatpush1.msra.mxu1 %v2453_v36 }
  0xda   : > { %5255 = vrot.lane.b32.xlu0 %v12674_v50, %s12301_s15  ;;  %5251 = vrot.lane.b32.xlu1 %v12677_v51, %s12301_s15 }
  0xdb   : > { %v2433_v38 = vpop.permute.xlu0 %2432  ;;  %v2447_v39 = vpop.permute.xlu1 %2446  ;;  %11667 = vmatmul.mubr.msk.f32.vlgmr.msra.gmra.mrb[0].mxu1 %vm503_vm1, %v11665_v37 }
  0xdc   : > { %v2451_v40 = vsel %vm2450_vm6, %v2433_v38, %v2435_v33  ;;  %2748 = vmatprep.mubr.f32.mxu1 %v12298_v0 }
  0xdd   : > { %2472 = vmatpush1.msra.mxu0 %v2451_v40 }
  0xde   : > { %5257 = vrot.lane.b32.xlu0 %v12692_v58, %s12301_s15  ;;  %5259 = vrot.lane.b32.xlu1 %v12695_v59, %s12301_s15 }
  0xdf   : > { %v2449_v41 = vpop.permute.xlu0 %2448  ;;  %v2443_v42 = vpop.permute.xlu1 %2442  ;;  %11666 = vmatmul.mubr.msk.f32.vlgmr.msra.gmra.mrb[0].mxu0 %vm503_vm1, %v11665_v37 }
  0xe0   : > { %v2458_v43 = vsel %vm2450_vm6, %v2447_v39, %v2449_v41  ;;  %2677 = vmatprep.mubr.f32.mxu0 %v12298_v0  ;;  %v2455_v49 = vsel %vm2450_vm6, %v2441_v31, %v2443_v42 }
  0xe1   : > { %2684 = vmatprep.subr.mxu1 %v2458_v43 }
  0xe2   : > { %5261 = vrot.lane.b32.xlu0 %v12709_v1, %s12301_s15  ;;  %5263 = vrot.lane.b32.xlu1 %v12712_v2, %s12301_s15 }
  0xe3   : > { %v2445_v45 = vpop.permute.xlu0 %2444  ;;  %v2840_v46 = vpop.permute.xlu1 %2839 }
  0xe4   : > { %v2456_v47 = vsel %vm2450_vm6, %v2443_v42, %v2445_v45  ;;  %v2457_v48 = vsel %vm2450_vm6, %v2445_v45, %v2447_v39  ;;  %v11683_v39 = vld [vmem:[%s13680_s3 + $0x40] sm:$0xff] }
  0xe5   : > { %2613 = vmatprep.subr.mxu0 %v2456_v47  ;;  %2685 = vmatpush1.msra.mxu1 %v2457_v48 }
  0xe6   : > { %5265 = vrot.lane.b32.xlu0 %v12724_v6, %s12301_s15  ;;  %5267 = vrot.lane.b32.xlu1 %v12727_v7, %s12301_s15 }
  0xe7   : > { %2614 = vmatpush1.msra.mxu0 %v2455_v49  ;;  %11880 = vmatprep.subr.mxu1 %v12298_v0  ;;  %v2842_v52 = vpop.permute.xlu0 %2841  ;;  %v2838_v53 = vpop.permute.xlu1 %2837  ;;  %v12943_v49 = vld [vmem:[%s12644_s24 + $0x48] sm:$0xff]  ;;  %s13694_s24 = smov 59  }
  0xe8   : > { %11669 = vmatmul.mubr.msk.f32.vlgmr.msra.gmra.mrb[2].mxu1 %vm503_vm1, %v11665_v37  ;;  %v2858_v54 = vsel %vm2857_vm7, %v2838_v53, %v2840_v46  ;;  %v2859_v55 = vsel %vm2857_vm7, %v2840_v46, %v2842_v52  ;;  %11668 = vmatmul.mubr.msk.f32.vlgmr.msra.gmra.mrb[2].mxu0 %vm503_vm1, %v11665_v37 }
  0xe9   : > { %11881 = vmatpush3.msra.mxu1 %v2449_v41  ;;  %2879 = vmatprep.subr.mxu0 %v2859_v55 }
  0xea   : > { %5660 = vrot.lane.b32.xlu0 %v12692_v58, %s12302_s16  ;;  %5662 = vrot.lane.b32.xlu1 %v12695_v59, %s12302_s16 }
  0xeb   : > { %2880 = vmatpush1.msra.mxu0 %v2858_v54  ;;  %v2844_v57 = vpop.permute.xlu0 %2843  ;;  %v2846_v60 = vpop.permute.xlu1 %2845  ;;  %11882 = vmatprep.mubr.msk.f32.mxu1 %vm12307_vm2, %v12298_v0 }
  0xec   : > { %v2861_v61 = vsel %vm2857_vm7, %v2844_v57, %v2846_v60  ;;  %11883 = vmatmul.mubr.msk.f32.vlgmr.msra.gmra.mrb[8].mxu1 %vm503_vm1, %v11665_v37  ;;  %v2860_v62 = vsel %vm2857_vm7, %v2842_v52, %v2844_v57  ;;  %2943 = vmatprep.mubr.f32.mxu0 %v12298_v0 }
  0xed   : > { %2950 = vmatprep.subr.mxu1 %v2861_v61  ;;  %11672 = vmatmul.mubr.msk.f32.vlgmr.msra.gmra.mrb[0].mxu0 %vm503_vm1, %v11671_v56  ;;  %v11689_v61 = vld [vmem:[%s13680_s3 + $0x48] sm:$0xff] }
  0xee   : > { %5656 = vrot.lane.b32.xlu0 %v12657_v44, %s12302_s16  ;;  %5658 = vrot.lane.b32.xlu1 %v12674_v50, %s12302_s16 }
  0xef   : > { %2951 = vmatpush1.msra.mxu1 %v2860_v62  ;;  %v2848_v63 = vpop.permute.xlu0 %2847  ;;  %v2850_v3 = vpop.permute.xlu1 %2849  ;;  %3014 = vmatprep.mubr.f32.mxu1 %v12298_v0 }
  0xf0   : > { %v2863_v4 = vsel %vm2857_vm7, %v2848_v63, %v2850_v3  ;;  %v2862_v5 = vsel %vm2857_vm7, %v2846_v60, %v2848_v63  ;;  %11673 = vmatmul.mubr.msk.f32.vlgmr.msra.gmra.mrb[0].mxu1 %vm503_vm1, %v11671_v56  ;;  %3085 = vmatprep.mubr.f32.mxu0 %v12298_v0 }
  0xf1   : > { %3021 = vmatprep.subr.mxu0 %v2863_v4  ;;  %3156 = vmatprep.mubr.f32.mxu1 %v12298_v0 }
  0xf2   : > { %5654 = vrot.lane.b32.xlu0 %v12677_v51, %s12302_s16  ;;  %5668 = vrot.lane.b32.xlu1 %v12724_v6, %s12302_s16 }
  0xf3   : > { %3022 = vmatpush1.msra.mxu0 %v2862_v5  ;;  %v2852_v8 = vpop.permute.xlu0 %2851  ;;  %v2854_v9 = vpop.permute.xlu1 %2853 }
  0xf4   : > { %v2865_v10 = vsel %vm2857_vm7, %v2852_v8, %v2854_v9  ;;  %v2864_v11 = vsel %vm2857_vm7, %v2850_v3, %v2852_v8  ;;  %11885 = vmatprep.subr.mxu0 %v12298_v0  ;;  %11674 = vmatmul.mubr.msk.f32.vlgmr.msra.gmra.mrb[2].mxu0 %vm503_vm1, %v11671_v56 }
  0xf5   : > { %3092 = vmatprep.subr.mxu1 %v2865_v10  ;;  %11887 = vmatprep.mubr.msk.f32.mxu0 %vm12307_vm2, %v12298_v0 }
  0xf6   : > { %5670 = vrot.lane.b32.xlu0 %v12727_v7, %s12302_s16  ;;  %5664 = vrot.lane.b32.xlu1 %v12709_v1, %s12302_s16 }
  0xf7   : > { %3093 = vmatpush1.msra.mxu1 %v2864_v11  ;;  %v2856_v12 = vpop.permute.xlu0 %2855  ;;  %v3251_v13 = vpop.permute.xlu1 %3250 }
  0xf8   : > { %v2866_v14 = vsel %vm2857_vm7, %v2854_v9, %v2856_v12  ;;  %11675 = vmatmul.mubr.msk.f32.vlgmr.msra.gmra.mrb[2].mxu1 %vm503_vm1, %v11671_v56 }
  0xf9   : > { %11886 = vmatpush3.msra.mxu0 %v2866_v14  ;;  %3421 = vmatprep.mubr.f32.mxu1 %v12298_v0  ;;  %v11695_v14 = vld [vmem:[%s13680_s3 + $0x50] sm:$0xff] }
  0xfa   : > { %5666 = vrot.lane.b32.xlu0 %v12712_v2, %s12302_s16  ;;  %6059 = vrot.lane.b32.xlu1 %v12657_v44, %s13690_s17 }
  0xfb   : > { %v3253_v15 = vpop.permute.xlu0 %3252  ;;  %v3247_v16 = vpop.permute.xlu1 %3246  ;;  %11888 = vmatmul.mubr.msk.f32.vlgmr.msra.gmra.mrb[10].mxu0 %vm503_vm1, %v11671_v56 }
  0xfc   : > { %v3268_v17 = vsel %vm3264_vm8, %v3251_v13, %v3253_v15  ;;  %3350 = vmatprep.mubr.f32.mxu0 %v12298_v0 }
  0xfd   : > { %3357 = vmatprep.subr.mxu1 %v3268_v17 }
  0xfe   : > { %6061 = vrot.lane.b32.xlu0 %v12674_v50, %s13690_s17  ;;  %6057 = vrot.lane.b32.xlu1 %v12677_v51, %s13690_s17 }
  0xff   : > { %v3249_v18 = vpop.permute.xlu0 %3248  ;;  %v3245_v19 = vpop.permute.xlu1 %3244 }
 0x100   : > { %v3265_v20 = vsel %vm3264_vm8, %v3245_v19, %v3247_v16  ;;  %v3266_v21 = vsel %vm3264_vm8, %v3247_v16, %v3249_v18  ;;  %v3267_v22 = vsel %vm3264_vm8, %v3249_v18, %v3251_v13 }
 0x101   : > { %3286 = vmatprep.subr.mxu0 %v3266_v21  ;;  %3358 = vmatpush1.msra.mxu1 %v3267_v22 }
 0x102   : > { %6063 = vrot.lane.b32.xlu0 %v12692_v58, %s13690_s17  ;;  %6065 = vrot.lane.b32.xlu1 %v12695_v59, %s13690_s17 }
 0x103   : > { %3287 = vmatpush1.msra.mxu0 %v3265_v20  ;;  %v3259_v24 = vpop.permute.xlu0 %3258  ;;  %11679 = vmatmul.mubr.msk.f32.vlgmr.msra.gmra.mrb[0].mxu1 %vm503_vm1, %v11677_v23 }
 0x104   : > { %v3261_v25 = vpop.permute.xlu1 %3260  ;;  %11678 = vmatmul.mubr.msk.f32.vlgmr.msra.gmra.mrb[0].mxu0 %vm503_vm1, %v11677_v23  ;;  %3563 = vmatprep.mubr.f32.mxu1 %v12298_v0 }
 0x105   : > { %v3272_v26 = vsel %vm3264_vm8, %v3259_v24, %v3261_v25  ;;  %3492 = vmatprep.mubr.f32.mxu0 %v12298_v0 }
 0x106   : > { %6067 = vrot.lane.b32.xlu0 %v12709_v1, %s13690_s17  ;;  %6069 = vrot.lane.b32.xlu1 %v12712_v2, %s13690_s17 }
 0x107   : > { %3499 = vmatprep.subr.mxu1 %v3272_v26  ;;  %v3255_v27 = vpop.permute.xlu0 %3254 }
 0x108   : > { %v3257_v28 = vpop.permute.xlu1 %3256  ;;  %v3269_v31 = vsel %vm3264_vm8, %v3253_v15, %v3255_v27 }
 0x109   : > { %v3270_v29 = vsel %vm3264_vm8, %v3255_v27, %v3257_v28  ;;  %v3271_v30 = vsel %vm3264_vm8, %v3257_v28, %v3259_v24 }
 0x10a   : > { %6071 = vrot.lane.b32.xlu0 %v12724_v6, %s13690_s17  ;;  %6073 = vrot.lane.b32.xlu1 %v12727_v7, %s13690_s17  ;;  %s11632_s17 = sshll.u32 %s424_s23, 3 }
 0x10b   : > { %3428 = vmatprep.subr.mxu0 %v3270_v29  ;;  %3500 = vmatpush1.msra.mxu1 %v3271_v30  ;;  %v3263_v32 = vpop.permute.xlu0 %3262  ;;  %s13060_s20 = scalar_lea.vmem %s13679_s2, %s11632_s17  ;;  %s13695_s17 = smov 92  }
 0x10c   : > { %3429 = vmatpush1.msra.mxu0 %v3269_v31  ;;  %v3273_v33 = vsel %vm3264_vm8, %v3261_v25, %v3263_v32  ;;  %v3654_v34 = vpop.permute.xlu1 %3653  ;;  %11890 = vmatprep.subr.mxu1 %v12298_v0  ;;  %v13073_v31 = vld [vmem:[%s13060_s20 + $0x20] sm:$0xff] }
 0x10d   : > { %11681 = vmatmul.mubr.msk.f32.vlgmr.msra.gmra.mrb[2].mxu1 %vm503_vm1, %v11677_v23  ;;  %11680 = vmatmul.mubr.msk.f32.vlgmr.msra.gmra.mrb[2].mxu0 %vm503_vm1, %v11677_v23 }
 0x10e   : > { %6467 = vrot.lane.b32.xlu0 %v12692_v58, %s13693_s19  ;;  %6469 = vrot.lane.b32.xlu1 %v12695_v59, %s13693_s19 }
 0x10f   : > { %11891 = vmatpush3.msra.mxu1 %v3273_v33  ;;  %v3656_v35 = vpop.permute.xlu0 %3655  ;;  %11892 = vmatprep.mubr.msk.f32.mxu1 %vm12307_vm2, %v12298_v0 }
 0x110   : > { %v3652_v36 = vpop.permute.xlu1 %3651  ;;  %v3673_v37 = vsel %vm3671_vm9, %v3654_v34, %v3656_v35  ;;  %3757 = vmatprep.mubr.f32.mxu0 %v12298_v0 }
 0x111   : > { %v3672_v38 = vsel %vm3671_vm9, %v3652_v36, %v3654_v34  ;;  %3693 = vmatprep.subr.mxu0 %v3673_v37  ;;  %11893 = vmatmul.mubr.msk.f32.vlgmr.msra.gmra.mrb[10].mxu1 %vm503_vm1, %v11677_v23  ;;  %v13088_v37 = vld [vmem:[%s13060_s20 + $0x10] sm:$0xff] }
 0x112   : > { %6463 = vrot.lane.b32.xlu0 %v12657_v44, %s13693_s19  ;;  %6465 = vrot.lane.b32.xlu1 %v12674_v50, %s13693_s19 }
 0x113   : > { %3694 = vmatpush1.msra.mxu0 %v3672_v38  ;;  %v3658_v40 = vpop.permute.xlu0 %3657  ;;  %3828 = vmatprep.mubr.f32.mxu1 %v12298_v0  ;;  %v11707_v38 = vld [vmem:[%s13680_s3 + $0x60] sm:$0xff] }
 0x114   : > { %v3660_v41 = vpop.permute.xlu1 %3659  ;;  %11684 = vmatmul.mubr.msk.f32.vlgmr.msra.gmra.mrb[0].mxu0 %vm503_vm1, %v11683_v39  ;;  %v3674_v43 = vsel %vm3671_vm9, %v3656_v35, %v3658_v40  ;;  %v13084_v35 = vld [vmem:[%s13060_s20 + $0x8] sm:$0xff] }
 0x115   : > { %v3675_v42 = vsel %vm3671_vm9, %v3658_v40, %v3660_v41  ;;  %3899 = vmatprep.mubr.f32.mxu0 %v12298_v0 }
 0x116   : > { %6461 = vrot.lane.b32.xlu0 %v12677_v51, %s13693_s19  ;;  %6475 = vrot.lane.b32.xlu1 %v12724_v6, %s13693_s19 }
 0x117   : > { %3764 = vmatprep.subr.mxu1 %v3675_v42 }
 0x118   : > { %3765 = vmatpush1.msra.mxu1 %v3674_v43 }
 0x119   : > { %v3662_v45 = vpop.permute.xlu0 %3661  ;;  %v3664_v46 = vpop.permute.xlu1 %3663  ;;  %11685 = vmatmul.mubr.msk.f32.vlgmr.msra.gmra.mrb[0].mxu1 %vm503_vm1, %v11683_v39 }
 0x11a   : > { %6477 = vrot.lane.b32.xlu0 %v12727_v7, %s13693_s19  ;;  %6471 = vrot.lane.b32.xlu1 %v12709_v1, %s13693_s19  ;;  %v3677_v47 = vsel %vm3671_vm9, %v3662_v45, %v3664_v46  ;;  %v3676_v48 = vsel %vm3671_vm9, %v3660_v41, %v3662_v45  ;;  %v13102_v41 = vld [vmem:[%s13060_s20] sm:$0xff]  ;;  %v13108_v45 = vld [vmem:[%s13060_s20 + $0x38] sm:$0xff] }
 0x11b   : > { %3835 = vmatprep.subr.mxu0 %v3677_v47  ;;  %3970 = vmatprep.mubr.f32.mxu1 %v12298_v0 }
 0x11c   : > { %3836 = vmatpush1.msra.mxu0 %v3676_v48  ;;  %v13118_v48 = vld [vmem:[%s13060_s20 + $0x40] sm:$0xff] }
 0x11d   : > { %11686 = vmatmul.mubr.msk.f32.vlgmr.msra.gmra.mrb[2].mxu0 %vm503_vm1, %v11683_v39  ;;  %11895 = vmatprep.subr.mxu0 %v12298_v0 }
 0x11e   : > { %6473 = vrot.lane.b32.xlu0 %v12712_v2, %s13693_s19  ;;  %6479 = vrot.lane.b32.xlu1 %v12943_v49, %s13693_s19  ;;  %v3666_v52 = vpop.permute.xlu0 %3665 }
 0x11f   : > { %v3668_v53 = vpop.permute.xlu1 %3667  ;;  %11897 = vmatprep.mubr.msk.f32.mxu0 %vm12307_vm2, %v12298_v0  ;;  %v3678_v55 = vsel %vm3671_vm9, %v3664_v46, %v3666_v52 }
 0x120   : > { %v3679_v54 = vsel %vm3671_vm9, %v3666_v52, %v3668_v53 }
 0x121   : > { %3906 = vmatprep.subr.mxu1 %v3679_v54 }
 0x122   : > { %6869 = vrot.lane.b32.xlu0 %v12657_v44, %s13694_s24  ;;  %6871 = vrot.lane.b32.xlu1 %v12674_v50, %s13694_s24 }
 0x123   : > { %3907 = vmatpush1.msra.mxu1 %v3678_v55  ;;  %v3670_v56 = vpop.permute.xlu0 %3669  ;;  %v4448_v57 = vpop.permute.xlu1 %4447 }
 0x124   : > { %v3680_v60 = vsel %vm3671_vm9, %v3668_v53, %v3670_v56  ;;  %11687 = vmatmul.mubr.msk.f32.vlgmr.msra.gmra.mrb[2].mxu1 %vm503_vm1, %v11683_v39  ;;  %4142 = vmatprep.subr.mxu1 %v12692_v58  ;;  %v13124_v53 = vld [vmem:[%s13060_s20 + $0x28] sm:$0xff]  ;;  %v13133_v56 = vld [vmem:[%s13060_s20 + $0x30] sm:$0xff] }
 0x125   : > { %11896 = vmatpush3.msra.mxu0 %v3680_v60  ;;  %4143 = vmatpush1.msra.mxu1 %v12674_v50 }
 0x126   : > { %6867 = vrot.lane.b32.xlu0 %v12677_v51, %s13694_s24  ;;  %6873 = vrot.lane.b32.xlu1 %v12692_v58, %s13694_s24 }
 0x127   : > { %11898 = vmatmul.mubr.msk.f32.vlgmr.msra.gmra.mrb[12].mxu0 %vm503_vm1, %v11683_v39  ;;  %4206 = vmatprep.mubr.f32.mxu1 %v12298_v0 }
 0x128   : > { %v4450_v62 = vpop.permute.xlu0 %4449  ;;  %4071 = vmatprep.subr.mxu0 %v12657_v44  ;;  %11691 = vmatmul.mubr.msk.f32.vlgmr.msra.gmra.mrb[0].mxu1 %vm503_vm1, %v11689_v61  ;;  %v4446_v63 = vpop.permute.xlu1 %4445 }
 0x129   : > { %4072 = vmatpush1.msra.mxu0 %v12677_v51  ;;  %4135 = vmatprep.mubr.f32.mxu0 %v12298_v0  ;;  %v4464_v5 = vsel %vm485_vm0, %v4448_v57, %v4450_v62  ;;  %v4463_v11 = vsel %vm485_vm0, %v4446_v63, %v4448_v57 }
 0x12a   : > { %6875 = vrot.lane.b32.xlu0 %v12695_v59, %s13694_s24  ;;  %6877 = vrot.lane.b32.xlu1 %v12709_v1, %s13694_s24 }
 0x12b   : > { %4213 = vmatprep.subr.mxu0 %v12709_v1  ;;  %4284 = vmatprep.subr.mxu1 %v12724_v6 }
 0x12c   : > { %11690 = vmatmul.mubr.msk.f32.vlgmr.msra.gmra.mrb[0].mxu0 %vm503_vm1, %v11689_v61  ;;  %4285 = vmatpush1.msra.mxu1 %v12712_v2  ;;  %v4452_v3 = vpop.permute.xlu0 %4451  ;;  %v4454_v4 = vpop.permute.xlu1 %4453 }
 0x12d   : > { %4214 = vmatpush1.msra.mxu0 %v12695_v59  ;;  %4348 = vmatprep.mubr.f32.mxu1 %v12298_v0  ;;  %v4466_v8 = vsel %vm485_vm0, %v4452_v3, %v4454_v4  ;;  %v4465_v12 = vsel %vm485_vm0, %v4450_v62, %v4452_v3 }
 0x12e   : > { %11693 = vmatmul.mubr.msk.f32.vlgmr.msra.gmra.mrb[2].mxu1 %vm503_vm1, %v11689_v61  ;;  %11900 = vmatprep.subr.mxu1 %v12298_v0 }
 0x12f   : > { %4483 = vmatprep.subr.mxu0 %v4464_v5  ;;  %11901 = vmatpush3.msra.mxu1 %v12727_v7  ;;  %v11713_v5 = vld [vmem:[%s13680_s3 + $0x68] sm:$0xff] }
 0x130   : > { %6879 = vrot.lane.b32.xlu0 %v12712_v2, %s13694_s24  ;;  %6881 = vrot.lane.b32.xlu1 %v12724_v6, %s13694_s24  ;;  %v4456_v9 = vpop.permute.xlu0 %4455  ;;  %v4458_v10 = vpop.permute.xlu1 %4457 }
 0x131   : > { %4277 = vmatprep.mubr.f32.mxu0 %v12298_v0  ;;  %4554 = vmatprep.subr.mxu1 %v4466_v8  ;;  %v4468_v13 = vsel %vm485_vm0, %v4456_v9, %v4458_v10  ;;  %v4467_v15 = vsel %vm485_vm0, %v4454_v4, %v4456_v9 }
 0x132   : > { %11692 = vmatmul.mubr.msk.f32.vlgmr.msra.gmra.mrb[2].mxu0 %vm503_vm1, %v11689_v61  ;;  %11902 = vmatprep.mubr.msk.f32.mxu1 %vm12307_vm2, %v12298_v0 }
 0x133   : > { %4484 = vmatpush1.msra.mxu0 %v4463_v11  ;;  %11903 = vmatmul.mubr.msk.f32.vlgmr.msra.gmra.mrb[12].mxu1 %vm503_vm1, %v11689_v61 }
 0x134   : > { %4555 = vmatpush1.msra.mxu1 %v4465_v12  ;;  %6883 = vrot.lane.b32.xlu0 %v12727_v7, %s13694_s24  ;;  %v4460_v16 = vpop.permute.xlu0 %4459  ;;  %v4462_v17 = vpop.permute.xlu1 %4461 }
 0x135   : > { %6885 = vrot.lane.b32.xlu1 %v12943_v49, %s13694_s24  ;;  %4547 = vmatprep.mubr.f32.mxu0 %v12298_v0  ;;  %v4470_v18 = vsel %vm485_vm0, %v4460_v16, %v4462_v17  ;;  %v4469_v19 = vsel %vm485_vm0, %v4458_v10, %v4460_v16 }
 0x136   : > { %4625 = vmatprep.subr.mxu0 %v4468_v13  ;;  %11696 = vmatmul.mubr.msk.f32.vlgmr.msra.gmra.mrb[0].mxu0 %vm503_vm1, %v11695_v14 }
 0x137   : > { %4626 = vmatpush1.msra.mxu0 %v4467_v15  ;;  %4618 = vmatprep.mubr.f32.mxu1 %v12298_v0 }
 0x138   : > { %7279 = vrot.lane.b32.xlu0 %v12692_v58, %s12306_s26  ;;  %4689 = vmatprep.mubr.f32.mxu0 %v12298_v0  ;;  %v4855_v20 = vpop.permute.xlu0 %4854  ;;  %v4857_v21 = vpop.permute.xlu1 %4856 }
 0x139   : > { %7281 = vrot.lane.b32.xlu1 %v12695_v59, %s12306_s26  ;;  %4696 = vmatprep.subr.mxu1 %v4470_v18  ;;  %v4869_v22 = vsel %vm1238_vm3, %v4855_v20, %v4857_v21 }
 0x13a   : > { %11905 = vmatprep.subr.mxu0 %v12298_v0  ;;  %11697 = vmatmul.mubr.msk.f32.vlgmr.msra.gmra.mrb[0].mxu1 %vm503_vm1, %v11695_v14 }
 0x13b   : > { %11698 = vmatmul.mubr.msk.f32.vlgmr.msra.gmra.mrb[2].mxu0 %vm503_vm1, %v11695_v14  ;;  %4697 = vmatpush1.msra.mxu1 %v4469_v19 }
 0x13c   : > { %11906 = vmatpush3.msra.mxu0 %v4462_v17  ;;  %7275 = vrot.lane.b32.xlu0 %v12657_v44, %s12306_s26  ;;  %v4851_v58 = vpop.permute.xlu0 %4850  ;;  %v4853_v23 = vpop.permute.xlu1 %4852 }
 0x13d   : > { %7277 = vrot.lane.b32.xlu1 %v12674_v50, %s12306_s26  ;;  %4957 = vmatprep.subr.mxu1 %v4869_v22  ;;  %v4867_v59 = vsel %vm1238_vm3, %v4851_v58, %v4853_v23  ;;  %v4868_v24 = vsel %vm1238_vm3, %v4853_v23, %v4855_v20  ;;  %v11701_v50 = vld [vmem:[%s13680_s3 + $0x58] sm:$0xff] }
 0x13e   : > { %4760 = vmatprep.mubr.f32.mxu1 %v12298_v0  ;;  %4886 = vmatprep.subr.mxu0 %v4867_v59 }
 0x13f   : > { %11699 = vmatmul.mubr.msk.f32.vlgmr.msra.gmra.mrb[2].mxu1 %vm503_vm1, %v11695_v14  ;;  %11907 = vmatprep.mubr.msk.f32.mxu0 %vm12307_vm2, %v12298_v0 }
 0x140   : > { %7273 = vrot.lane.b32.xlu0 %v12677_v51, %s12306_s26  ;;  %4958 = vmatpush1.msra.mxu1 %v4868_v24  ;;  %v4849_v44 = vpop.permute.xlu0 %4848  ;;  %v4863_v25 = vpop.permute.xlu1 %4862 }
 0x141   : > { %7287 = vrot.lane.b32.xlu1 %v12724_v6, %s12306_s26  ;;  %v4866_v26 = vsel %vm1238_vm3, %v4849_v44, %v4851_v58  ;;  %11908 = vmatmul.mubr.msk.f32.vlgmr.msra.gmra.mrb[14].mxu0 %vm503_vm1, %v11695_v14  ;;  %v11719_v44 = vld [vmem:[%s13680_s3 + $0x70] sm:$0xff] }
 0x142   : > { %4887 = vmatpush1.msra.mxu0 %v4866_v26  ;;  %5021 = vmatprep.mubr.f32.mxu1 %v12298_v0 }
 0x143   : > { %11703 = vmatmul.mubr.msk.f32.vlgmr.msra.gmra.mrb[0].mxu1 %vm503_vm1, %v11701_v50  ;;  %4950 = vmatprep.mubr.f32.mxu0 %v12298_v0 }
 0x144   : > { %7289 = vrot.lane.b32.xlu0 %v12727_v7, %s12306_s26  ;;  %v4865_v51 = vpop.permute.xlu0 %4864  ;;  %v4859_v27 = vpop.permute.xlu1 %4858  ;;  %5163 = vmatprep.mubr.f32.mxu1 %v12298_v0 }
 0x145   : > { %7283 = vrot.lane.b32.xlu1 %v12709_v1, %s12306_s26  ;;  %v4873_v6 = vsel %vm1238_vm3, %v4863_v25, %v4865_v51  ;;  %11702 = vmatmul.mubr.msk.f32.vlgmr.msra.gmra.mrb[0].mxu0 %vm503_vm1, %v11701_v50  ;;  %v13068_v1 = vld [vmem:[%s13060_s20 + $0x18] sm:$0xff]  ;;  %v4870_v32 = vsel %vm1238_vm3, %v4857_v21, %v4859_v27 }
 0x146   : > { %5099 = vmatprep.subr.mxu1 %v4873_v6  ;;  %5092 = vmatprep.mubr.f32.mxu0 %v12298_v0 }
 0x148   : > { %7285 = vrot.lane.b32.xlu0 %v12712_v2, %s12306_s26  ;;  %v4861_v7 = vpop.permute.xlu0 %4860  ;;  %v5254_v28 = vpop.permute.xlu1 %5253 }
 0x149   : > { %7291 = vrot.lane.b32.xlu1 %v12943_v49, %s12306_s26  ;;  %v4871_v29 = vsel %vm1238_vm3, %v4859_v27, %v4861_v7  ;;  %v4872_v30 = vsel %vm1238_vm3, %v4861_v7, %v4863_v25 }
 0x14a   : > { %5028 = vmatprep.subr.mxu0 %v4871_v29  ;;  %5100 = vmatpush1.msra.mxu1 %v4872_v30 }
 0x14b   : > { %5029 = vmatpush1.msra.mxu0 %v4870_v32  ;;  %11910 = vmatprep.subr.mxu1 %v12298_v0 }
 0x14c   : > { %8072 = vrot.lane.b32.xlu0 %v13068_v1, %s12299_s12  ;;  %v5256_v2 = vpop.permute.xlu0 %5255  ;;  %11705 = vmatmul.mubr.msk.f32.vlgmr.msra.gmra.mrb[2].mxu1 %vm503_vm1, %v11701_v50  ;;  %v5252_v33 = vpop.permute.xlu1 %5251 }
 0x14d   : > { %8074 = vrot.lane.b32.xlu1 %v13073_v31, %s12299_s12  ;;  %11911 = vmatpush3.msra.mxu1 %v4865_v51  ;;  %v5269_v34 = vsel %vm1642_vm4, %v5252_v33, %v5254_v28  ;;  %v5270_v36 = vsel %vm1642_vm4, %v5254_v28, %v5256_v2 }
 0x14e   : > { %5289 = vmatprep.subr.mxu0 %v5270_v36  ;;  %11704 = vmatmul.mubr.msk.f32.vlgmr.msra.gmra.mrb[2].mxu0 %vm503_vm1, %v11701_v50 }
 0x14f   : > { %5290 = vmatpush1.msra.mxu0 %v5269_v34  ;;  %11912 = vmatprep.mubr.msk.f32.mxu1 %vm12307_vm2, %v12298_v0 }
 0x150   : > { %8068 = vrot.lane.b32.xlu0 %v13084_v35, %s12299_s12  ;;  %v5258_v39 = vpop.permute.xlu0 %5257  ;;  %v5260_v40 = vpop.permute.xlu1 %5259  ;;  %11913 = vmatmul.mubr.msk.f32.vlgmr.msra.gmra.mrb[14].mxu1 %vm503_vm1, %v11701_v50 }
 0x151   : > { %8070 = vrot.lane.b32.xlu1 %v13088_v37, %s12299_s12  ;;  %v5272_v42 = vsel %vm1642_vm4, %v5258_v39, %v5260_v40  ;;  %v5271_v43 = vsel %vm1642_vm4, %v5256_v2, %v5258_v39  ;;  %5353 = vmatprep.mubr.f32.mxu0 %v12298_v0 }
 0x152   : > { %5360 = vmatprep.subr.mxu1 %v5272_v42  ;;  %11708 = vmatmul.mubr.msk.f32.vlgmr.msra.gmra.mrb[0].mxu0 %vm503_vm1, %v11707_v38 }
 0x153   : > { %5361 = vmatpush1.msra.mxu1 %v5271_v43  ;;  %5424 = vmatprep.mubr.f32.mxu1 %v12298_v0 }
 0x154   : > { %8066 = vrot.lane.b32.xlu0 %v13102_v41, %s12299_s12  ;;  %v5262_v46 = vpop.permute.xlu0 %5261  ;;  %v5264_v47 = vpop.permute.xlu1 %5263  ;;  %5495 = vmatprep.mubr.f32.mxu0 %v12298_v0 }
 0x155   : > { %8080 = vrot.lane.b32.xlu1 %v13108_v45, %s12299_s12  ;;  %v5274_v49 = vsel %vm1642_vm4, %v5262_v46, %v5264_v47  ;;  %v5273_v52 = vsel %vm1642_vm4, %v5260_v40, %v5262_v46  ;;  %11709 = vmatmul.mubr.msk.f32.vlgmr.msra.gmra.mrb[0].mxu1 %vm503_vm1, %v11707_v38 }
 0x156   : > { %5431 = vmatprep.subr.mxu0 %v5274_v49  ;;  %5566 = vmatprep.mubr.f32.mxu1 %v12298_v0 }
 0x157   : > { %5432 = vmatpush1.msra.mxu0 %v5273_v52 }
 0x158   : > { %8082 = vrot.lane.b32.xlu0 %v13118_v48, %s12299_s12  ;;  %v5266_v54 = vpop.permute.xlu0 %5265  ;;  %v5268_v55 = vpop.permute.xlu1 %5267  ;;  %11915 = vmatprep.subr.mxu0 %v12298_v0 }
 0x159   : > { %8076 = vrot.lane.b32.xlu1 %v13124_v53, %s12299_s12  ;;  %v5276_v57 = vsel %vm1642_vm4, %v5266_v54, %v5268_v55  ;;  %11710 = vmatmul.mubr.msk.f32.vlgmr.msra.gmra.mrb[2].mxu0 %vm503_vm1, %v11707_v38  ;;  %v5275_v60 = vsel %vm1642_vm4, %v5264_v47, %v5266_v54 }
 0x15a   : > { %5502 = vmatprep.subr.mxu1 %v5276_v57  ;;  %11916 = vmatpush3.msra.mxu0 %v5268_v55 }
 0x15b   : > { %5503 = vmatpush1.msra.mxu1 %v5275_v60  ;;  %11917 = vmatprep.mubr.msk.f32.mxu0 %vm12307_vm2, %v12298_v0 }
 0x15c   : > { %8078 = vrot.lane.b32.xlu0 %v13133_v56, %s12299_s12  ;;  %v5661_v61 = vpop.permute.xlu0 %5660  ;;  %v5663_v62 = vpop.permute.xlu1 %5662  ;;  %11711 = vmatmul.mubr.msk.f32.vlgmr.msra.gmra.mrb[2].mxu1 %vm503_vm1, %v11707_v38 }
 0x15d   : > { %8471 = vrot.lane.b32.xlu1 %v13084_v35, %s12300_s14  ;;  %v5675_v63 = vsel %vm2046_vm5, %v5661_v61, %v5663_v62  ;;  %11918 = vmatmul.mubr.msk.f32.vlgmr.msra.gmra.mrb[16].mxu0 %vm503_vm1, %v11707_v38  ;;  %v11725_v38 = vld [vmem:[%s13680_s3 + $0x78] sm:$0xff] }
 0x15e   : > { %5763 = vmatprep.subr.mxu1 %v5675_v63  ;;  %5827 = vmatprep.mubr.f32.mxu1 %v12298_v0 }
 0x15f   : > { %5756 = vmatprep.mubr.f32.mxu0 %v12298_v0 }
 0x160   : > { %8473 = vrot.lane.b32.xlu0 %v13088_v37, %s12300_s14  ;;  %v5657_v3 = vpop.permute.xlu0 %5656  ;;  %v5659_v4 = vpop.permute.xlu1 %5658 }
 0x161   : > { %8469 = vrot.lane.b32.xlu1 %v13102_v41, %s12300_s14  ;;  %v5673_v8 = vsel %vm2046_vm5, %v5657_v3, %v5659_v4  ;;  %v5674_v9 = vsel %vm2046_vm5, %v5659_v4, %v5661_v61 }
 0x162   : > { %5692 = vmatprep.subr.mxu0 %v5673_v8  ;;  %5764 = vmatpush1.msra.mxu1 %v5674_v9  ;;  %v11731_v9 = vld [vmem:[%s13680_s3 + $0x80] sm:$0xff] }
 0x163   : > { %11715 = vmatmul.mubr.msk.f32.vlgmr.msra.gmra.mrb[0].mxu1 %vm503_vm1, %v11713_v5 }
 0x164   : > { %8475 = vrot.lane.b32.xlu0 %v13068_v1, %s12300_s14  ;;  %v5655_v10 = vpop.permute.xlu0 %5654  ;;  %v5669_v11 = vpop.permute.xlu1 %5668  ;;  %5969 = vmatprep.mubr.f32.mxu1 %v12298_v0 }
 0x165   : > { %8477 = vrot.lane.b32.xlu1 %v13073_v31, %s12300_s14  ;;  %v5672_v12 = vsel %vm2046_vm5, %v5655_v10, %v5657_v3 }
 0x166   : > { %5693 = vmatpush1.msra.mxu0 %v5672_v12 }
 0x167   : > { %11714 = vmatmul.mubr.msk.f32.vlgmr.msra.gmra.mrb[0].mxu0 %vm503_vm1, %v11713_v5 }
 0x168   : > { %8479 = vrot.lane.b32.xlu0 %v13124_v53, %s12300_s14  ;;  %v5671_v13 = vpop.permute.xlu0 %5670  ;;  %v5665_v14 = vpop.permute.xlu1 %5664  ;;  %5898 = vmatprep.mubr.f32.mxu0 %v12298_v0 }
 0x169   : > { %8481 = vrot.lane.b32.xlu1 %v13133_v56, %s12300_s14  ;;  %v5679_v15 = vsel %vm2046_vm5, %v5669_v11, %v5671_v13  ;;  %v5676_v20 = vsel %vm2046_vm5, %v5663_v62, %v5665_v14 }
 0x16a   : > { %5905 = vmatprep.subr.mxu1 %v5679_v15 }
 0x16c   : > { %8483 = vrot.lane.b32.xlu0 %v13108_v45, %s12300_s14  ;;  %v5667_v16 = vpop.permute.xlu0 %5666  ;;  %v6060_v17 = vpop.permute.xlu1 %6059 }
 0x16d   : > { %8485 = vrot.lane.b32.xlu1 %v13118_v48, %s12300_s14  ;;  %v5677_v18 = vsel %vm2046_vm5, %v5665_v14, %v5667_v16  ;;  %v5678_v19 = vsel %vm2046_vm5, %v5667_v16, %v5669_v11 }
 0x16e   : > { %5834 = vmatprep.subr.mxu0 %v5677_v18  ;;  %5906 = vmatpush1.msra.mxu1 %v5678_v19 }
 0x16f   : > { %5835 = vmatpush1.msra.mxu0 %v5676_v20  ;;  %11717 = vmatmul.mubr.msk.f32.vlgmr.msra.gmra.mrb[2].mxu1 %vm503_vm1, %v11713_v5 }
 0x170   : > { %8878 = vrot.lane.b32.xlu0 %v13068_v1, %s12301_s15  ;;  %11920 = vmatprep.subr.mxu1 %v12298_v0  ;;  %v6062_v21 = vpop.permute.xlu0 %6061  ;;  %v6058_v22 = vpop.permute.xlu1 %6057 }
 0x171   : > { %8880 = vrot.lane.b32.xlu1 %v13073_v31, %s12301_s15  ;;  %11921 = vmatpush3.msra.mxu1 %v5671_v13  ;;  %v6075_v58 = vsel %vm2450_vm6, %v6058_v22, %v6060_v17  ;;  %v6076_v23 = vsel %vm2450_vm6, %v6060_v17, %v6062_v21 }
 0x172   : > { %11922 = vmatprep.mubr.msk.f32.mxu1 %vm12307_vm2, %v12298_v0  ;;  %6095 = vmatprep.subr.mxu0 %v6076_v23  ;;  %v857_v18 = vpop.f32.mrb[4].mxu0 }
 0x173   : > { %11716 = vmatmul.mubr.msk.f32.vlgmr.msra.gmra.mrb[2].mxu0 %vm503_vm1, %v11713_v5  ;;  %11923 = vmatmul.mubr.msk.f32.vlgmr.msra.gmra.mrb[16].mxu1 %vm503_vm1, %v11713_v5 }
 0x174   : > { %8874 = vrot.lane.b32.xlu0 %v13084_v35, %s12301_s15  ;;  %6096 = vmatpush1.msra.mxu0 %v6075_v58  ;;  %v6064_v59 = vpop.permute.xlu0 %6063  ;;  %v6066_v24 = vpop.permute.xlu1 %6065 }
 0x175   : > { %8876 = vrot.lane.b32.xlu1 %v13088_v37, %s12301_s15  ;;  %v6078_v25 = vsel %vm2450_vm6, %v6064_v59, %v6066_v24  ;;  %6159 = vmatprep.mubr.f32.mxu0 %v12298_v0  ;;  %v6077_v50 = vsel %vm2450_vm6, %v6062_v21, %v6064_v59  ;;  %v11859_v21 = vpop.f32.mrb[5].mxu0 }
 0x176   : > { %6166 = vmatprep.subr.mxu1 %v6078_v25  ;;  %6230 = vmatprep.mubr.f32.mxu1 %v12298_v0 }
 0x177   : > { %6167 = vmatpush1.msra.mxu1 %v6077_v50  ;;  %11720 = vmatmul.mubr.msk.f32.vlgmr.msra.gmra.mrb[0].mxu0 %vm503_vm1, %v11719_v44 }
 0x178   : > { %8872 = vrot.lane.b32.xlu0 %v13102_v41, %s12301_s15  ;;  %v6068_v26 = vpop.permute.xlu0 %6067  ;;  %v6070_v51 = vpop.permute.xlu1 %6069  ;;  %6301 = vmatprep.mubr.f32.mxu0 %v12298_v0 }
 0x179   : > { %8886 = vrot.lane.b32.xlu1 %v13108_v45, %s12301_s15  ;;  %v6080_v27 = vsel %vm2450_vm6, %v6068_v26, %v6070_v51  ;;  %v6079_v6 = vsel %vm2450_vm6, %v6066_v24, %v6068_v26  ;;  %11721 = vmatmul.mubr.msk.f32.vlgmr.msra.gmra.mrb[0].mxu1 %vm503_vm1, %v11719_v44 }
 0x17a   : > { %6237 = vmatprep.subr.mxu0 %v6080_v27  ;;  %6372 = vmatprep.mubr.f32.mxu1 %v12298_v0 }
 0x17b   : > { %6238 = vmatpush1.msra.mxu0 %v6079_v6 }
 0x17c   : > { %8888 = vrot.lane.b32.xlu0 %v13118_v48, %s12301_s15  ;;  %v6072_v7 = vpop.permute.xlu0 %6071  ;;  %11722 = vmatmul.mubr.msk.f32.vlgmr.msra.gmra.mrb[2].mxu0 %vm503_vm1, %v11719_v44  ;;  %v6074_v28 = vpop.permute.xlu1 %6073 }
 0x17d   : > { %8882 = vrot.lane.b32.xlu1 %v13124_v53, %s12301_s15  ;;  %v6082_v29 = vsel %vm2450_vm6, %v6072_v7, %v6074_v28  ;;  %11925 = vmatprep.subr.mxu0 %v12298_v0  ;;  %v6081_v30 = vsel %vm2450_vm6, %v6070_v51, %v6072_v7 }
 0x17e   : > { %6308 = vmatprep.subr.mxu1 %v6082_v29  ;;  %11926 = vmatpush3.msra.mxu0 %v6074_v28 }
 0x17f   : > { %6309 = vmatpush1.msra.mxu1 %v6081_v30  ;;  %11927 = vmatprep.mubr.msk.f32.mxu0 %vm12307_vm2, %v12298_v0 }
 0x180   : > { %8884 = vrot.lane.b32.xlu0 %v13133_v56, %s12301_s15  ;;  %v6468_v32 = vpop.permute.xlu0 %6467  ;;  %11928 = vmatmul.mubr.msk.f32.vlgmr.msra.gmra.mrb[18].mxu0 %vm503_vm1, %v11719_v44  ;;  %v6470_v2 = vpop.permute.xlu1 %6469 }
 0x181   : > { %9277 = vrot.lane.b32.xlu1 %v13084_v35, %s12302_s16  ;;  %v6484_v33 = vsel %vm2857_vm7, %v6468_v32, %v6470_v2  ;;  %11723 = vmatmul.mubr.msk.f32.vlgmr.msra.gmra.mrb[2].mxu1 %vm503_vm1, %v11719_v44 }
 0x182   : > { %6573 = vmatprep.subr.mxu1 %v6484_v33  ;;  %6637 = vmatprep.mubr.f32.mxu1 %v12298_v0  ;;  %v1214_v19 = vpop.f32.mrb[4].mxu1 }
 0x183   : > { %6566 = vmatprep.mubr.f32.mxu0 %v12298_v0  ;;  %v1215_v22 = vadd.f32 %v1214_v19, %v857_v18  ;;  %v11864_v58 = vpop.f32.mrb[5].mxu1 }
 0x184   : > { %9279 = vrot.lane.b32.xlu0 %v13088_v37, %s12302_s16  ;;  %v6464_v34 = vpop.permute.xlu0 %6463  ;;  %v6466_v36 = vpop.permute.xlu1 %6465 }
 0x185   : > { %9275 = vrot.lane.b32.xlu1 %v13102_v41, %s12302_s16  ;;  %v6482_v39 = vsel %vm2857_vm7, %v6464_v34, %v6466_v36  ;;  %v6483_v40 = vsel %vm2857_vm7, %v6466_v36, %v6468_v32 }
 0x186   : > { %6502 = vmatprep.subr.mxu0 %v6482_v39  ;;  %6574 = vmatpush1.msra.mxu1 %v6483_v40  ;;  %v11737_v40 = vld [vmem:[%s13680_s3 + $0x88] sm:$0xff] }
 0x187   : > { %11727 = vmatmul.mubr.msk.f32.vlgmr.msra.gmra.mrb[0].mxu1 %vm503_vm1, %v11725_v38 }
 0x188   : > { %9281 = vrot.lane.b32.xlu0 %v13068_v1, %s12302_s16  ;;  %v6462_v42 = vpop.permute.xlu0 %6461  ;;  %v6476_v43 = vpop.permute.xlu1 %6475  ;;  %6779 = vmatprep.mubr.f32.mxu1 %v12298_v0 }
 0x189   : > { %9283 = vrot.lane.b32.xlu1 %v13073_v31, %s12302_s16  ;;  %v6481_v46 = vsel %vm2857_vm7, %v6462_v42, %v6464_v34 }
 0x18a   : > { %6503 = vmatpush1.msra.mxu0 %v6481_v46 }
 0x18b   : > { %11726 = vmatmul.mubr.msk.f32.vlgmr.msra.gmra.mrb[0].mxu0 %vm503_vm1, %v11725_v38 }
 0x18c   : > { %9285 = vrot.lane.b32.xlu0 %v13124_v53, %s12302_s16  ;;  %v6478_v47 = vpop.permute.xlu0 %6477  ;;  %v6472_v49 = vpop.permute.xlu1 %6471  ;;  %6708 = vmatprep.mubr.f32.mxu0 %v12298_v0 }
 0x18d   : > { %9287 = vrot.lane.b32.xlu1 %v13133_v56, %s12302_s16  ;;  %v6488_v52 = vsel %vm2857_vm7, %v6476_v43, %v6478_v47  ;;  %v6485_v61 = vsel %vm2857_vm7, %v6470_v2, %v6472_v49 }
 0x18e   : > { %6715 = vmatprep.subr.mxu1 %v6488_v52  ;;  %v1609_v23 = vpop.f32.mrb[6].mxu0 }
 0x18f   : > { %v1621_v24 = vadd.f32 %v1609_v23, %v1215_v22  ;;  %v11869_v44 = vpop.f32.mrb[7].mxu0  ;;  %v11749_v23 = vld [vmem:[%s13680_s3 + $0x98] sm:$0xff] }
 0x190   : > { %9289 = vrot.lane.b32.xlu0 %v13108_v45, %s12302_s16  ;;  %v6474_v54 = vpop.permute.xlu0 %6473  ;;  %v6480_v55 = vpop.permute.xlu1 %6479 }
 0x191   : > { %9291 = vrot.lane.b32.xlu1 %v13118_v48, %s12302_s16  ;;  %v6486_v57 = vsel %vm2857_vm7, %v6472_v49, %v6474_v54  ;;  %v6487_v60 = vsel %vm2857_vm7, %v6474_v54, %v6476_v43  ;;  %v6489_v62 = vsel %vm2857_vm7, %v6478_v47, %v6480_v55  ;;  %v13339_v47 = vld [vmem:[%s13060_s20 + $0x48] sm:$0xff]  ;;  %s12202_s16 = smul.u32 9, %s431_s25 }
 0x192   : > { %6644 = vmatprep.subr.mxu0 %v6486_v57  ;;  %6716 = vmatpush1.msra.mxu1 %v6487_v60 }
 0x193   : > { %6645 = vmatpush1.msra.mxu0 %v6485_v61  ;;  %11729 = vmatmul.mubr.msk.f32.vlgmr.msra.gmra.mrb[2].mxu1 %vm503_vm1, %v11725_v38 }
 0x194   : > { %9684 = vrot.lane.b32.xlu0 %v13068_v1, %s13695_s17  ;;  %11930 = vmatprep.subr.mxu1 %v12298_v0  ;;  %v6870_v63 = vpop.permute.xlu0 %6869  ;;  %v6872_v3 = vpop.permute.xlu1 %6871 }
 0x195   : > { %9686 = vrot.lane.b32.xlu1 %v13073_v31, %s13695_s17  ;;  %11931 = vmatpush3.msra.mxu1 %v6489_v62  ;;  %v6888_v4 = vsel %vm3264_vm8, %v6870_v63, %v6872_v3 }
 0x196   : > { %11932 = vmatprep.mubr.msk.f32.mxu1 %vm12307_vm2, %v12298_v0  ;;  %6908 = vmatprep.subr.mxu0 %v6888_v4 }
 0x197   : > { %11933 = vmatmul.mubr.msk.f32.vlgmr.msra.gmra.mrb[18].mxu1 %vm503_vm1, %v11725_v38  ;;  %11728 = vmatmul.mubr.msk.f32.vlgmr.msra.gmra.mrb[2].mxu0 %vm503_vm1, %v11725_v38 }
 0x198   : > { %9680 = vrot.lane.b32.xlu0 %v13084_v35, %s13695_s17  ;;  %v6868_v5 = vpop.permute.xlu0 %6867  ;;  %v6874_v8 = vpop.permute.xlu1 %6873  ;;  %6972 = vmatprep.mubr.f32.mxu0 %v12298_v0 }
 0x199   : > { %9682 = vrot.lane.b32.xlu1 %v13088_v37, %s13695_s17  ;;  %v6887_v10 = vsel %vm3264_vm8, %v6868_v5, %v6870_v63  ;;  %7043 = vmatprep.mubr.f32.mxu1 %v12298_v0  ;;  %v6889_v14 = vsel %vm3264_vm8, %v6872_v3, %v6874_v8 }
 0x19a   : > { %6909 = vmatpush1.msra.mxu0 %v6887_v10  ;;  %v11743_v10 = vld [vmem:[%s13680_s3 + $0x90] sm:$0xff] }
 0x19b   : > { %11732 = vmatmul.mubr.msk.f32.vlgmr.msra.gmra.mrb[0].mxu0 %vm503_vm1, %v11731_v9  ;;  %v2013_v26 = vpop.f32.mrb[6].mxu1 }
 0x19c   : > { %9678 = vrot.lane.b32.xlu0 %v13102_v41, %s13695_s17  ;;  %v6876_v11 = vpop.permute.xlu0 %6875  ;;  %v6878_v12 = vpop.permute.xlu1 %6877  ;;  %7114 = vmatprep.mubr.f32.mxu0 %v12298_v0  ;;  %v2025_v27 = vadd.f32 %v2013_v26, %v1621_v24 }
 0x19d   : > { %9692 = vrot.lane.b32.xlu1 %v13108_v45, %s13695_s17  ;;  %v6890_v13 = vsel %vm3264_vm8, %v6874_v8, %v6876_v11  ;;  %v6891_v20 = vsel %vm3264_vm8, %v6876_v11, %v6878_v12  ;;  %v11874_v6 = vpop.f32.mrb[7].mxu1 }
 0x19e   : > { %6979 = vmatprep.subr.mxu1 %v6890_v13 }
 0x19f   : > { %6980 = vmatpush1.msra.mxu1 %v6889_v14 }
 0x1a0   : > { %9694 = vrot.lane.b32.xlu0 %v13118_v48, %s13695_s17  ;;  %11733 = vmatmul.mubr.msk.f32.vlgmr.msra.gmra.mrb[0].mxu1 %vm503_vm1, %v11731_v9 }
 0x1a1   : > { %9688 = vrot.lane.b32.xlu1 %v13124_v53, %s13695_s17  ;;  %7185 = vmatprep.mubr.f32.mxu1 %v12298_v0 }
 0x1a2   : > { %v6880_v15 = vpop.permute.xlu0 %6879  ;;  %v6882_v16 = vpop.permute.xlu1 %6881 }
 0x1a3   : > { %v6892_v17 = vsel %vm3264_vm8, %v6878_v12, %v6880_v15  ;;  %v6893_v7 = vsel %vm3264_vm8, %v6880_v15, %v6882_v16 }
 0x1a4   : > { %9690 = vrot.lane.b32.xlu0 %v13133_v56, %s13695_s17  ;;  %7050 = vmatprep.subr.mxu0 %v6892_v17  ;;  %s12203_s17 = smul.u32 72, %s13707_s28 }
 0x1a5   : > { %10084 = vrot.lane.b32.xlu1 %v13084_v35, %s13693_s19  ;;  %7051 = vmatpush1.msra.mxu0 %v6891_v20 }
 0x1a6   : > { %v6884_v59 = vpop.permute.xlu0 %6883  ;;  %11734 = vmatmul.mubr.msk.f32.vlgmr.msra.gmra.mrb[2].mxu0 %vm503_vm1, %v11731_v9  ;;  %11935 = vmatprep.subr.mxu0 %v12298_v0  ;;  %s434_s22 = sadd.s32 %s12203_s17, %s12202_s16 }
 0x1a7   : > { %v6886_v25 = vpop.permute.xlu1 %6885  ;;  %v6894_v50 = vsel %vm3264_vm8, %v6882_v16, %v6884_v59  ;;  %11937 = vmatprep.mubr.msk.f32.mxu0 %vm12307_vm2, %v12298_v0  ;;  %v2417_v28 = vpop.f32.mrb[8].mxu0 }
 0x1a8   : > { %v6895_v51 = vsel %vm3264_vm8, %v6884_v59, %v6886_v25  ;;  %10086 = vrot.lane.b32.xlu0 %v13088_v37, %s13693_s19  ;;  %7121 = vmatprep.subr.mxu1 %v6894_v50  ;;  %v2429_v30 = vadd.f32 %v2417_v28, %v2025_v27  ;;  %v11879_v32 = vpop.f32.mrb[9].mxu0 }
 0x1a9   : > { %10082 = vrot.lane.b32.xlu1 %v13102_v41, %s13693_s19  ;;  %11936 = vmatpush3.msra.mxu0 %v6895_v51 }
 0x1aa   : > { %7122 = vmatpush1.msra.mxu1 %v6893_v7  ;;  %v7280_v29 = vpop.permute.xlu0 %7279  ;;  %11938 = vmatmul.mubr.msk.f32.vlgmr.msra.gmra.mrb[20].mxu0 %vm503_vm1, %v11731_v9 }
 0x1ab   : > { %v7282_v2 = vpop.permute.xlu1 %7281  ;;  %11735 = vmatmul.mubr.msk.f32.vlgmr.msra.gmra.mrb[2].mxu1 %vm503_vm1, %v11731_v9  ;;  %7378 = vmatprep.mubr.f32.mxu0 %v12298_v0 }
 0x1ac   : > { %10088 = vrot.lane.b32.xlu0 %v13068_v1, %s13693_s19  ;;  %v7296_v33 = vsel %vm3671_vm9, %v7280_v29, %v7282_v2  ;;  %7449 = vmatprep.mubr.f32.mxu1 %v12298_v0 }
 0x1ad   : > { %10090 = vrot.lane.b32.xlu1 %v13073_v31, %s13693_s19  ;;  %7385 = vmatprep.subr.mxu1 %v7296_v33 }
 0x1ae   : > { %v7276_v34 = vpop.permute.xlu0 %7275 }
 0x1af   : > { %v7278_v36 = vpop.permute.xlu1 %7277 }
 0x1b0   : > { %v7295_v38 = vsel %vm3671_vm9, %v7278_v36, %v7280_v29  ;;  %10092 = vrot.lane.b32.xlu0 %v13124_v53, %s13693_s19  ;;  %v7294_v39 = vsel %vm3671_vm9, %v7276_v34, %v7278_v36 }
 0x1b1   : > { %10094 = vrot.lane.b32.xlu1 %v13133_v56, %s13693_s19  ;;  %7314 = vmatprep.subr.mxu0 %v7294_v39 }
 0x1b2   : > { %7386 = vmatpush1.msra.mxu1 %v7295_v38  ;;  %v7274_v42 = vpop.permute.xlu0 %7273 }
 0x1b3   : > { %v7293_v43 = vsel %vm3671_vm9, %v7274_v42, %v7276_v34  ;;  %v7288_v46 = vpop.permute.xlu1 %7287  ;;  %11739 = vmatmul.mubr.msk.f32.vlgmr.msra.gmra.mrb[0].mxu1 %vm503_vm1, %v11737_v40 }
 0x1b4   : > { %10096 = vrot.lane.b32.xlu0 %v13108_v45, %s13693_s19  ;;  %7315 = vmatpush1.msra.mxu0 %v7293_v43 }
 0x1b5   : > { %10098 = vrot.lane.b32.xlu1 %v13118_v48, %s13693_s19  ;;  %11738 = vmatmul.mubr.msk.f32.vlgmr.msra.gmra.mrb[0].mxu0 %vm503_vm1, %v11737_v40 }
 0x1b6   : > { %v7290_v49 = vpop.permute.xlu0 %7289  ;;  %7591 = vmatprep.mubr.f32.mxu1 %v12298_v0  ;;  %7520 = vmatprep.mubr.f32.mxu0 %v12298_v0 }
 0x1b7   : > { %v7284_v52 = vpop.permute.xlu1 %7283  ;;  %v7300_v54 = vsel %vm3671_vm9, %v7288_v46, %v7290_v49 }
 0x1b8   : > { %10100 = vrot.lane.b32.xlu0 %v13339_v47, %s13693_s19  ;;  %7527 = vmatprep.subr.mxu1 %v7300_v54  ;;  %v7297_v62 = vsel %vm3671_vm9, %v7282_v2, %v7284_v52  ;;  %s11633_s19 = sshll.u32 %s434_s22, 3 }
 0x1b9   : > { %10494 = vrot.lane.b32.xlu1 %v13068_v1, %s13694_s24  ;;  %s13631_s14 = scalar_lea.vmem %s13683_s6, %s11633_s19 }
 0x1ba   : > { %v7286_v55 = vpop.permute.xlu0 %7285 }
 0x1bb   : > { %v7299_v57 = vsel %vm3671_vm9, %v7286_v55, %v7288_v46  ;;  %v7292_v60 = vpop.permute.xlu1 %7291  ;;  %v7298_v61 = vsel %vm3671_vm9, %v7284_v52, %v7286_v55 }
 0x1bc   : > { %10496 = vrot.lane.b32.xlu0 %v13073_v31, %s13694_s24  ;;  %7456 = vmatprep.subr.mxu0 %v7298_v61  ;;  %v7301_v3 = vsel %vm3671_vm9, %v7290_v49, %v7292_v60 }
 0x1bd   : > { %10490 = vrot.lane.b32.xlu1 %v13084_v35, %s13694_s24  ;;  %7528 = vmatpush1.msra.mxu1 %v7299_v57 }
 0x1be   : > { %7457 = vmatpush1.msra.mxu0 %v7297_v62  ;;  %11741 = vmatmul.mubr.msk.f32.vlgmr.msra.gmra.mrb[2].mxu1 %vm503_vm1, %v11737_v40  ;;  %v8073_v63 = vpop.permute.xlu0 %8072 }
 0x1bf   : > { %11940 = vmatprep.subr.mxu1 %v12298_v0  ;;  %11740 = vmatmul.mubr.msk.f32.vlgmr.msra.gmra.mrb[2].mxu0 %vm503_vm1, %v11737_v40  ;;  %v13360_v4 = vpop.permute.xlu1 %8074  ;;  %v2821_v5 = vpop.f32.mrb[8].mxu1 }
 0x1c0   : > { %11941 = vmatpush3.msra.mxu1 %v7301_v3  ;;  %10492 = vrot.lane.b32.xlu0 %v13088_v37, %s13694_s24  ;;  %v2833_v8 = vadd.f32 %v2821_v5, %v2429_v30  ;;  %v11884_v9 = vpop.f32.mrb[9].mxu1  ;;  %v8087_v15 = vsel %vm485_vm0, %v8073_v63, %v13360_v4 }
 0x1c1   : > { %10488 = vrot.lane.b32.xlu1 %v13102_v41, %s13694_s24  ;;  %11942 = vmatprep.mubr.msk.f32.mxu1 %vm12307_vm2, %v12298_v0 }
 0x1c2   : > { %7692 = vmatprep.subr.mxu0 %v13084_v35  ;;  %11943 = vmatmul.mubr.msk.f32.vlgmr.msra.gmra.mrb[20].mxu1 %vm503_vm1, %v11737_v40  ;;  %v8069_v11 = vpop.permute.xlu0 %8068 }
 0x1c3   : > { %7693 = vmatpush1.msra.mxu0 %v13102_v41  ;;  %7756 = vmatprep.mubr.f32.mxu0 %v12298_v0  ;;  %v8071_v12 = vpop.permute.xlu1 %8070 }
 0x1c4   : > { %11744 = vmatmul.mubr.msk.f32.vlgmr.msra.gmra.mrb[0].mxu0 %vm503_vm1, %v11743_v10  ;;  %7763 = vmatprep.subr.mxu1 %v13068_v1  ;;  %v8085_v17 = vsel %vm485_vm0, %v8069_v11, %v8071_v12  ;;  %v8086_v19 = vsel %vm485_vm0, %v8071_v12, %v8073_v63 }
 0x1c5   : > { %7764 = vmatpush1.msra.mxu1 %v13088_v37  ;;  %7834 = vmatprep.subr.mxu0 %v13124_v53 }
 0x1c6   : > { %10502 = vrot.lane.b32.xlu0 %v13108_v45, %s13694_s24  ;;  %10504 = vrot.lane.b32.xlu1 %v13118_v48, %s13694_s24  ;;  %v8067_v13 = vpop.permute.xlu0 %8066 }
 0x1c7   : > { %7827 = vmatprep.mubr.f32.mxu1 %v12298_v0  ;;  %7835 = vmatpush1.msra.mxu0 %v13073_v31  ;;  %v8081_v14 = vpop.permute.xlu1 %8080  ;;  %v8084_v22 = vsel %vm485_vm0, %v8067_v13, %v8069_v11  ;;  %v11767_v11 = vld [vmem:[%s13680_s3 + $0xb0] sm:$0xff] }
 0x1c8   : > { %7905 = vmatprep.subr.mxu1 %v13108_v45  ;;  %11745 = vmatmul.mubr.msk.f32.vlgmr.msra.gmra.mrb[0].mxu1 %vm503_vm1, %v11743_v10 }
 0x1c9   : > { %7898 = vmatprep.mubr.f32.mxu0 %v12298_v0  ;;  %7906 = vmatpush1.msra.mxu1 %v13133_v56 }
 0x1ca   : > { %11945 = vmatprep.subr.mxu0 %v12298_v0  ;;  %11746 = vmatmul.mubr.msk.f32.vlgmr.msra.gmra.mrb[2].mxu0 %vm503_vm1, %v11743_v10  ;;  %v8083_v16 = vpop.permute.xlu0 %8082 }
 0x1cb   : > { %11946 = vmatpush3.msra.mxu0 %v13118_v48  ;;  %8175 = vmatprep.subr.mxu1 %v8087_v15  ;;  %v8077_v18 = vpop.permute.xlu1 %8076  ;;  %v8091_v58 = vsel %vm485_vm0, %v8081_v14, %v8083_v16 }
 0x1cc   : > { %8104 = vmatprep.subr.mxu0 %v8085_v17  ;;  %10498 = vrot.lane.b32.xlu0 %v13124_v53, %s13694_s24 }
 0x1cd   : > { %10500 = vrot.lane.b32.xlu1 %v13133_v56, %s13694_s24  ;;  %7969 = vmatprep.mubr.f32.mxu1 %v12298_v0 }
 0x1ce   : > { %11747 = vmatmul.mubr.msk.f32.vlgmr.msra.gmra.mrb[2].mxu1 %vm503_vm1, %v11743_v10  ;;  %11947 = vmatprep.mubr.msk.f32.mxu0 %vm12307_vm2, %v12298_v0  ;;  %v8079_v20 = vpop.permute.xlu0 %8078  ;;  %v3229_v21 = vpop.f32.mrb[10].mxu0 }
 0x1cf   : > { %8176 = vmatpush1.msra.mxu1 %v8086_v19  ;;  %11948 = vmatmul.mubr.msk.f32.vlgmr.msra.gmra.mrb[22].mxu0 %vm503_vm1, %v11743_v10  ;;  %v8472_v59 = vpop.permute.xlu1 %8471  ;;  %v13410_v24 = vadd.f32 %v3229_v21, %v2833_v8  ;;  %v11889_v44 = vpop.f32.mrb[11].mxu0  ;;  %v8089_v25 = vsel %vm485_vm0, %v8077_v18, %v8079_v20  ;;  %v8090_v50 = vsel %vm485_vm0, %v8079_v20, %v8081_v14 }
 0x1d0   : > { %8105 = vmatpush1.msra.mxu0 %v8084_v22  ;;  %10506 = vrot.lane.b32.xlu0 %v13339_v47, %s13694_s24 }
 0x1d1   : > { %10896 = vrot.lane.b32.xlu1 %v13084_v35, %s12306_s26  ;;  %8239 = vmatprep.mubr.f32.mxu1 %v12298_v0  ;;  %v8088_v35 = vsel %vm485_vm0, %v13360_v4, %v8077_v18 }
 0x1d2   : > { %8317 = vmatprep.subr.mxu1 %v8091_v58  ;;  %11751 = vmatmul.mubr.msk.f32.vlgmr.msra.gmra.mrb[0].mxu1 %vm503_vm1, %v11749_v23  ;;  %v8474_v26 = vpop.permute.xlu0 %8473 }
 0x1d3   : > { %8168 = vmatprep.mubr.f32.mxu0 %v12298_v0  ;;  %8246 = vmatprep.subr.mxu0 %v8089_v25  ;;  %v8470_v51 = vpop.permute.xlu1 %8469  ;;  %v8488_v6 = vsel %vm1238_vm3, %v8472_v59, %v8474_v26 }
 0x1d4   : > { %10898 = vrot.lane.b32.xlu0 %v13088_v37, %s12306_s26  ;;  %8318 = vmatpush1.msra.mxu1 %v8090_v50 }
 0x1d5   : > { %10894 = vrot.lane.b32.xlu1 %v13102_v41, %s12306_s26  ;;  %8381 = vmatprep.mubr.f32.mxu1 %v12298_v0  ;;  %v8487_v41 = vsel %vm1238_vm3, %v8470_v51, %v8472_v59 }
 0x1d6   : > { %11750 = vmatmul.mubr.msk.f32.vlgmr.msra.gmra.mrb[0].mxu0 %vm503_vm1, %v11749_v23  ;;  %11753 = vmatmul.mubr.msk.f32.vlgmr.msra.gmra.mrb[2].mxu1 %vm503_vm1, %v11749_v23  ;;  %v8476_v27 = vpop.permute.xlu0 %8475 }
 0x1d7   : > { %8247 = vmatpush1.msra.mxu0 %v8088_v35  ;;  %11950 = vmatprep.subr.mxu1 %v12298_v0  ;;  %v8478_v37 = vpop.permute.xlu1 %8477 }
 0x1d8   : > { %11951 = vmatpush3.msra.mxu1 %v8083_v16  ;;  %10900 = vrot.lane.b32.xlu0 %v13068_v1, %s12306_s26  ;;  %v8490_v7 = vsel %vm1238_vm3, %v8476_v27, %v8478_v37  ;;  %v8489_v1 = vsel %vm1238_vm3, %v8474_v26, %v8476_v27 }
 0x1d9   : > { %10902 = vrot.lane.b32.xlu1 %v13073_v31, %s12306_s26  ;;  %8310 = vmatprep.mubr.f32.mxu0 %v12298_v0  ;;  %v11755_v31 = vld [vmem:[%s13680_s3 + $0xa0] sm:$0xff] }
 0x1da   : > { %11952 = vmatprep.mubr.msk.f32.mxu1 %vm12307_vm2, %v12298_v0  ;;  %8507 = vmatprep.subr.mxu0 %v8488_v6  ;;  %v8480_v28 = vpop.permute.xlu0 %8479 }
 0x1db   : > { %11752 = vmatmul.mubr.msk.f32.vlgmr.msra.gmra.mrb[2].mxu0 %vm503_vm1, %v11749_v23  ;;  %11953 = vmatmul.mubr.msk.f32.vlgmr.msra.gmra.mrb[22].mxu1 %vm503_vm1, %v11749_v23  ;;  %v8482_v29 = vpop.permute.xlu1 %8481  ;;  %v8491_v32 = vsel %vm1238_vm3, %v8478_v37, %v8480_v28  ;;  %v11773_v37 = vld [vmem:[%s13680_s3 + $0xb8] sm:$0xff] }
 0x1dc   : > { %8508 = vmatpush1.msra.mxu0 %v8487_v41  ;;  %10904 = vrot.lane.b32.xlu0 %v13124_v53, %s12306_s26  ;;  %v8492_v30 = vsel %vm1238_vm3, %v8480_v28, %v8482_v29 }
 0x1dd   : > { %10906 = vrot.lane.b32.xlu1 %v13133_v56, %s12306_s26  ;;  %8578 = vmatprep.subr.mxu1 %v8490_v7 }
 0x1de   : > { %8571 = vmatprep.mubr.f32.mxu0 %v12298_v0  ;;  %8579 = vmatpush1.msra.mxu1 %v8489_v1  ;;  %v8484_v2 = vpop.permute.xlu0 %8483 }
 0x1df   : > { %11756 = vmatmul.mubr.msk.f32.vlgmr.msra.gmra.mrb[0].mxu0 %vm503_vm1, %v11755_v31  ;;  %8649 = vmatprep.subr.mxu0 %v8492_v30  ;;  %v8486_v53 = vpop.permute.xlu1 %8485  ;;  %v8493_v56 = vsel %vm1238_vm3, %v8482_v29, %v8484_v2 }
 0x1e0   : > { %10908 = vrot.lane.b32.xlu0 %v13108_v45, %s12306_s26  ;;  %8650 = vmatpush1.msra.mxu0 %v8491_v32  ;;  %v8494_v33 = vsel %vm1238_vm3, %v8484_v2, %v8486_v53 }
 0x1e1   : > { %10910 = vrot.lane.b32.xlu1 %v13118_v48, %s12306_s26  ;;  %8713 = vmatprep.mubr.f32.mxu0 %v12298_v0 }
 0x1e2   : > { %8642 = vmatprep.mubr.f32.mxu1 %v12298_v0  ;;  %8720 = vmatprep.subr.mxu1 %v8494_v33  ;;  %v8879_v34 = vpop.permute.xlu0 %8878 }
 0x1e3   : > { %11758 = vmatmul.mubr.msk.f32.vlgmr.msra.gmra.mrb[2].mxu0 %vm503_vm1, %v11755_v31  ;;  %11955 = vmatprep.subr.mxu0 %v12298_v0  ;;  %v8881_v36 = vpop.permute.xlu1 %8880 }
 0x1e4   : > { %10912 = vrot.lane.b32.xlu0 %v13339_v47, %s12306_s26  ;;  %11757 = vmatmul.mubr.msk.f32.vlgmr.msra.gmra.mrb[0].mxu1 %vm503_vm1, %v11755_v31  ;;  %v8893_v45 = vsel %vm1642_vm4, %v8879_v34, %v8881_v36  ;;  %v3636_v48 = vpop.f32.mrb[10].mxu1  ;;  %v11761_v47 = vld [vmem:[%s13680_s3 + $0xa8] sm:$0xff] }
 0x1e5   : > { %8721 = vmatpush1.msra.mxu1 %v8493_v56  ;;  %11956 = vmatpush3.msra.mxu0 %v8486_v53  ;;  %v3648_v38 = vadd.f32 %v3636_v48, %v13410_v24  ;;  %v11894_v39 = vpop.f32.mrb[11].mxu1  ;;  %v12308_v48 = vmov 0  }
 0x1e6   : > { %11957 = vmatprep.mubr.msk.f32.mxu0 %vm12307_vm2, %v12298_v0  ;;  %8981 = vmatprep.subr.mxu1 %v8893_v45  ;;  %v8875_v40 = vpop.permute.xlu0 %8874 }
 0x1e7   : > { %11958 = vmatmul.mubr.msk.f32.vlgmr.msra.gmra.mrb[24].mxu0 %vm503_vm1, %v11755_v31  ;;  %v8877_v42 = vpop.permute.xlu1 %8876  ;;  %8784 = vmatprep.mubr.f32.mxu1 %v12298_v0 }
 0x1e8   : > { %v8892_v43 = vsel %vm1642_vm4, %v8877_v42, %v8879_v34  ;;  %11759 = vmatmul.mubr.msk.f32.vlgmr.msra.gmra.mrb[2].mxu1 %vm503_vm1, %v11755_v31  ;;  %v8891_v46 = vsel %vm1642_vm4, %v8875_v40, %v8877_v42  ;;  %8974 = vmatprep.mubr.f32.mxu0 %v12298_v0 }
 0x1e9   : > { %8910 = vmatprep.subr.mxu0 %v8891_v46  ;;  %8982 = vmatpush1.msra.mxu1 %v8892_v43  ;;  %v11298_v43 = vld [vmem:[%s13681_s4] sm:$0xff] }
 0x1ea   : > { %v8873_v49 = vpop.permute.xlu0 %8872  ;;  %9045 = vmatprep.mubr.f32.mxu1 %v12298_v0  ;;  %12256 = vset.pattern.permute.xlu1 %v12308_v48 }
 0x1eb   : > { %v8890_v52 = vsel %vm1642_vm4, %v8873_v49, %v8875_v40  ;;  %v8887_v54 = vpop.permute.xlu1 %8886  ;;  %12257 = vset.pattern.permute.xlu0 %v12308_v48  ;;  %11301 = vperm.xlu1 %12256, %v11298_v43  }
 0x1ec   : > { %8911 = vmatpush1.msra.mxu0 %v8890_v52  ;;  %11763 = vmatmul.mubr.msk.f32.vlgmr.msra.gmra.mrb[0].mxu1 %vm503_vm1, %v11761_v47 }
 0x1ed   : > { %9187 = vmatprep.mubr.f32.mxu1 %v12298_v0  ;;  %11762 = vmatmul.mubr.msk.f32.vlgmr.msra.gmra.mrb[0].mxu0 %vm503_vm1, %v11761_v47 }
 0x1ee   : > { %v8889_v55 = vpop.permute.xlu0 %8888  ;;  %9116 = vmatprep.mubr.f32.mxu0 %v12298_v0 }
 0x1ef   : > { %v8883_v57 = vpop.permute.xlu1 %8882  ;;  %v8897_v60 = vsel %vm1642_vm4, %v8887_v54, %v8889_v55 }
 0x1f0   : > { %9123 = vmatprep.subr.mxu1 %v8897_v60  ;;  %v8894_v4 = vsel %vm1642_vm4, %v8881_v36, %v8883_v57 }
 0x1f2   : > { %v8885_v61 = vpop.permute.xlu0 %8884 }
 0x1f3   : > { %v8896_v62 = vsel %vm1642_vm4, %v8885_v61, %v8887_v54  ;;  %v9278_v63 = vpop.permute.xlu1 %9277  ;;  %v8895_v3 = vsel %vm1642_vm4, %v8883_v57, %v8885_v61 }
 0x1f4   : > { %9052 = vmatprep.subr.mxu0 %v8895_v3  ;;  %9124 = vmatpush1.msra.mxu1 %v8896_v62 }
 0x1f5   : > { %9053 = vmatpush1.msra.mxu0 %v8894_v4  ;;  %11765 = vmatmul.mubr.msk.f32.vlgmr.msra.gmra.mrb[2].mxu1 %vm503_vm1, %v11761_v47 }
 0x1f6   : > { %11960 = vmatprep.subr.mxu1 %v12298_v0  ;;  %v9280_v5 = vpop.permute.xlu0 %9279  ;;  %11962 = vmatprep.mubr.msk.f32.mxu1 %vm12307_vm2, %v12298_v0 }
 0x1f7   : > { %11961 = vmatpush3.msra.mxu1 %v8889_v55  ;;  %v9276_v8 = vpop.permute.xlu1 %9275  ;;  %v9294_v9 = vsel %vm2046_vm5, %v9278_v63, %v9280_v5  ;;  %11764 = vmatmul.mubr.msk.f32.vlgmr.msra.gmra.mrb[2].mxu0 %vm503_vm1, %v11761_v47 }
 0x1f8   : > { %v9293_v10 = vsel %vm2046_vm5, %v9276_v8, %v9278_v63  ;;  %9313 = vmatprep.subr.mxu0 %v9294_v9  ;;  %9377 = vmatprep.mubr.f32.mxu0 %v12298_v0 }
 0x1f9   : > { %11963 = vmatmul.mubr.msk.f32.vlgmr.msra.gmra.mrb[24].mxu1 %vm503_vm1, %v11761_v47  ;;  %9314 = vmatpush1.msra.mxu0 %v9293_v10  ;;  %v11779_v47 = vld [vmem:[%s13680_s3 + $0xc0] sm:$0xff] }
 0x1fa   : > { %v9282_v12 = vpop.permute.xlu0 %9281  ;;  %9448 = vmatprep.mubr.f32.mxu1 %v12298_v0  ;;  %v4043_v13 = vpop.f32.mrb[12].mxu0 }
 0x1fb   : > { %v9295_v14 = vsel %vm2046_vm5, %v9280_v5, %v9282_v12  ;;  %v9284_v15 = vpop.permute.xlu1 %9283  ;;  %11768 = vmatmul.mubr.msk.f32.vlgmr.msra.gmra.mrb[0].mxu0 %vm503_vm1, %v11767_v11  ;;  %v4055_v16 = vadd.f32 %v4043_v13, %v3648_v38  ;;  %v11899_v17 = vpop.f32.mrb[13].mxu0 }
 0x1fc   : > { %v9296_v18 = vsel %vm2046_vm5, %v9282_v12, %v9284_v15  ;;  %9519 = vmatprep.mubr.f32.mxu0 %v12298_v0 }
 0x1fd   : > { %9384 = vmatprep.subr.mxu1 %v9296_v18 }
 0x1fe   : > { %9385 = vmatpush1.msra.mxu1 %v9295_v14  ;;  %v9286_v19 = vpop.permute.xlu0 %9285 }
 0x1ff   : > { %v9297_v20 = vsel %vm2046_vm5, %v9284_v15, %v9286_v19  ;;  %v9288_v21 = vpop.permute.xlu1 %9287  ;;  %11769 = vmatmul.mubr.msk.f32.vlgmr.msra.gmra.mrb[0].mxu1 %vm503_vm1, %v11767_v11 }
 0x200   : > { %v9298_v22 = vsel %vm2046_vm5, %v9286_v19, %v9288_v21  ;;  %9590 = vmatprep.mubr.f32.mxu1 %v12298_v0 }
 0x201   : > { %9455 = vmatprep.subr.mxu0 %v9298_v22 }
 0x202   : > { %9456 = vmatpush1.msra.mxu0 %v9297_v20  ;;  %v9290_v58 = vpop.permute.xlu0 %9289 }
 0x203   : > { %v9299_v23 = vsel %vm2046_vm5, %v9288_v21, %v9290_v58  ;;  %11770 = vmatmul.mubr.msk.f32.vlgmr.msra.gmra.mrb[2].mxu0 %vm503_vm1, %v11767_v11  ;;  %v9292_v59 = vpop.permute.xlu1 %9291  ;;  %11965 = vmatprep.subr.mxu0 %v12298_v0  ;;  %v11785_v21 = vld [vmem:[%s13680_s3 + $0xc8] sm:$0xff] }
 0x204   : > { %v9300_v24 = vsel %vm2046_vm5, %v9290_v58, %v9292_v59  ;;  %11966 = vmatpush3.msra.mxu0 %v9292_v59  ;;  %11967 = vmatprep.mubr.msk.f32.mxu0 %vm12307_vm2, %v12298_v0 }
 0x205   : > { %9526 = vmatprep.subr.mxu1 %v9300_v24 }
 0x206   : > { %9527 = vmatpush1.msra.mxu1 %v9299_v23  ;;  %v9685_v44 = vpop.permute.xlu0 %9684  ;;  %v4421_v25 = vpop.f32.mrb[12].mxu1 }
 0x207   : > { %11968 = vmatmul.mubr.msk.f32.vlgmr.msra.gmra.mrb[26].mxu0 %vm503_vm1, %v11767_v11  ;;  %v9687_v50 = vpop.permute.xlu1 %9686  ;;  %11771 = vmatmul.mubr.msk.f32.vlgmr.msra.gmra.mrb[2].mxu1 %vm503_vm1, %v11767_v11  ;;  %v4433_v26 = vadd.f32 %v4421_v25, %v4055_v16  ;;  %v11904_v51 = vpop.f32.mrb[13].mxu1 }
 0x208   : > { %v9699_v35 = vsel %vm2450_vm6, %v9685_v44, %v9687_v50  ;;  %9851 = vmatprep.mubr.f32.mxu1 %v12298_v0  ;;  %9780 = vmatprep.mubr.f32.mxu0 %v12298_v0 }
 0x209   : > { %9787 = vmatprep.subr.mxu1 %v9699_v35 }
 0x20a   : > { %v9681_v27 = vpop.permute.xlu0 %9680 }
 0x20b   : > { %v9683_v6 = vpop.permute.xlu1 %9682 }
 0x20c   : > { %v9698_v41 = vsel %vm2450_vm6, %v9683_v6, %v9685_v44  ;;  %v9697_v7 = vsel %vm2450_vm6, %v9681_v27, %v9683_v6 }
 0x20d   : > { %9716 = vmatprep.subr.mxu0 %v9697_v7  ;;  %9788 = vmatpush1.msra.mxu1 %v9698_v41 }
 0x20e   : > { %v9679_v28 = vpop.permute.xlu0 %9678  ;;  %11775 = vmatmul.mubr.msk.f32.vlgmr.msra.gmra.mrb[0].mxu1 %vm503_vm1, %v11773_v37 }
 0x20f   : > { %v9696_v1 = vsel %vm2450_vm6, %v9679_v28, %v9681_v27  ;;  %v9693_v29 = vpop.permute.xlu1 %9692  ;;  %9993 = vmatprep.mubr.f32.mxu1 %v12298_v0 }
 0x210   : > { %9717 = vmatpush1.msra.mxu0 %v9696_v1 }
 0x211   : > { %11774 = vmatmul.mubr.msk.f32.vlgmr.msra.gmra.mrb[0].mxu0 %vm503_vm1, %v11773_v37 }
 0x212   : > { %v9695_v31 = vpop.permute.xlu0 %9694  ;;  %9922 = vmatprep.mubr.f32.mxu0 %v12298_v0 }
 0x213   : > { %v9689_v30 = vpop.permute.xlu1 %9688  ;;  %v9703_v32 = vsel %vm2450_vm6, %v9693_v29, %v9695_v31 }
 0x214   : > { %9929 = vmatprep.subr.mxu1 %v9703_v32  ;;  %v4833_v2 = vpop.f32.mrb[14].mxu0  ;;  %v9700_v38 = vsel %vm2450_vm6, %v9687_v50, %v9689_v30 }
 0x215   : > { %v4845_v53 = vadd.f32 %v4833_v2, %v4433_v26  ;;  %v11909_v33 = vpop.f32.mrb[15].mxu0 }
 0x216   : > { %v9691_v56 = vpop.permute.xlu0 %9690 }
 0x217   : > { %v9702_v34 = vsel %vm2450_vm6, %v9691_v56, %v9693_v29  ;;  %v10085_v36 = vpop.permute.xlu1 %10084  ;;  %v9701_v45 = vsel %vm2450_vm6, %v9689_v30, %v9691_v56 }
 0x218   : > { %9858 = vmatprep.subr.mxu0 %v9701_v45  ;;  %9930 = vmatpush1.msra.mxu1 %v9702_v34 }
 0x219   : > { %9859 = vmatpush1.msra.mxu0 %v9700_v38  ;;  %11777 = vmatmul.mubr.msk.f32.vlgmr.msra.gmra.mrb[2].mxu1 %vm503_vm1, %v11773_v37 }
 0x21a   : > { %11970 = vmatprep.subr.mxu1 %v12298_v0  ;;  %v10087_v39 = vpop.permute.xlu0 %10086  ;;  %11972 = vmatprep.mubr.msk.f32.mxu1 %vm12307_vm2, %v12298_v0 }
 0x21b   : > { %11971 = vmatpush3.msra.mxu1 %v9695_v31  ;;  %v10083_v40 = vpop.permute.xlu1 %10082  ;;  %v10103_v42 = vsel %vm2857_vm7, %v10085_v36, %v10087_v39  ;;  %11776 = vmatmul.mubr.msk.f32.vlgmr.msra.gmra.mrb[2].mxu0 %vm503_vm1, %v11773_v37  ;;  %v11791_v31 = vld [vmem:[%s13680_s3 + $0xd0] sm:$0xff] }
 0x21c   : > { %v10102_v46 = vsel %vm2857_vm7, %v10083_v40, %v10085_v36  ;;  %10123 = vmatprep.subr.mxu0 %v10103_v42  ;;  %10187 = vmatprep.mubr.f32.mxu0 %v12298_v0 }
 0x21d   : > { %11973 = vmatmul.mubr.msk.f32.vlgmr.msra.gmra.mrb[26].mxu1 %vm503_vm1, %v11773_v37  ;;  %10124 = vmatpush1.msra.mxu0 %v10102_v46 }
 0x21e   : > { %v10089_v49 = vpop.permute.xlu0 %10088  ;;  %10258 = vmatprep.mubr.f32.mxu1 %v12298_v0 }
 0x21f   : > { %v10104_v52 = vsel %vm2857_vm7, %v10087_v39, %v10089_v49  ;;  %v10091_v54 = vpop.permute.xlu1 %10090  ;;  %11780 = vmatmul.mubr.msk.f32.vlgmr.msra.gmra.mrb[0].mxu0 %vm503_vm1, %v11779_v47 }
 0x220   : > { %v10105_v55 = vsel %vm2857_vm7, %v10089_v49, %v10091_v54  ;;  %10329 = vmatprep.mubr.f32.mxu0 %v12298_v0 }
 0x221   : > { %10194 = vmatprep.subr.mxu1 %v10105_v55 }
 0x222   : > { %10195 = vmatpush1.msra.mxu1 %v10104_v52  ;;  %v10093_v57 = vpop.permute.xlu0 %10092 }
 0x223   : > { %v10106_v60 = vsel %vm2857_vm7, %v10091_v54, %v10093_v57  ;;  %v10095_v61 = vpop.permute.xlu1 %10094  ;;  %11781 = vmatmul.mubr.msk.f32.vlgmr.msra.gmra.mrb[0].mxu1 %vm503_vm1, %v11779_v47  ;;  %v5236_v62 = vpop.f32.mrb[14].mxu1 }
 0x224   : > { %v10107_v63 = vsel %vm2857_vm7, %v10093_v57, %v10095_v61  ;;  %10400 = vmatprep.mubr.f32.mxu1 %v12298_v0  ;;  %v5248_v3 = vadd.f32 %v5236_v62, %v4845_v53  ;;  %v11914_v4 = vpop.f32.mrb[15].mxu1 }
 0x225   : > { %10265 = vmatprep.subr.mxu0 %v10107_v63 }
 0x226   : > { %10266 = vmatpush1.msra.mxu0 %v10106_v60  ;;  %v10097_v5 = vpop.permute.xlu0 %10096 }
 0x227   : > { %v10108_v8 = vsel %vm2857_vm7, %v10095_v61, %v10097_v5  ;;  %v10099_v9 = vpop.permute.xlu1 %10098  ;;  %11782 = vmatmul.mubr.msk.f32.vlgmr.msra.gmra.mrb[2].mxu0 %vm503_vm1, %v11779_v47  ;;  %11975 = vmatprep.subr.mxu0 %v12298_v0 }
 0x228   : > { %v10109_v10 = vsel %vm2857_vm7, %v10097_v5, %v10099_v9  ;;  %11977 = vmatprep.mubr.msk.f32.mxu0 %vm12307_vm2, %v12298_v0 }
 0x229   : > { %10336 = vmatprep.subr.mxu1 %v10109_v10 }
 0x22a   : > { %10337 = vmatpush1.msra.mxu1 %v10108_v8  ;;  %v10101_v11 = vpop.permute.xlu0 %10100 }
 0x22b   : > { %v10110_v12 = vsel %vm2857_vm7, %v10099_v9, %v10101_v11  ;;  %v10495_v13 = vpop.permute.xlu1 %10494  ;;  %11783 = vmatmul.mubr.msk.f32.vlgmr.msra.gmra.mrb[2].mxu1 %vm503_vm1, %v11779_v47 }
 0x22c   : > { %11976 = vmatpush3.msra.mxu0 %v10110_v12  ;;  %10664 = vmatprep.mubr.f32.mxu1 %v12298_v0 }
 0x22d   : > { %11978 = vmatmul.mubr.msk.f32.vlgmr.msra.gmra.mrb[28].mxu0 %vm503_vm1, %v11779_v47 }
 0x22e   : > { %v10497_v14 = vpop.permute.xlu0 %10496  ;;  %10593 = vmatprep.mubr.f32.mxu0 %v12298_v0 }
 0x22f   : > { %v10491_v15 = vpop.permute.xlu1 %10490  ;;  %v10511_v16 = vsel %vm3264_vm8, %v10495_v13, %v10497_v14 }
 0x230   : > { %10600 = vmatprep.subr.mxu1 %v10511_v16  ;;  %v5639_v17 = vpop.f32.mrb[16].mxu0 }
 0x231   : > { %v5651_v18 = vadd.f32 %v5639_v17, %v5248_v3  ;;  %v11919_v19 = vpop.f32.mrb[17].mxu0 }
 0x232   : > { %v10493_v20 = vpop.permute.xlu0 %10492 }
 0x233   : > { %v10510_v22 = vsel %vm3264_vm8, %v10493_v20, %v10495_v13  ;;  %v10489_v58 = vpop.permute.xlu1 %10488  ;;  %v10509_v23 = vsel %vm3264_vm8, %v10491_v15, %v10493_v20 }
 0x234   : > { %v10508_v59 = vsel %vm3264_vm8, %v10489_v58, %v10491_v15  ;;  %10529 = vmatprep.subr.mxu0 %v10509_v23  ;;  %10601 = vmatpush1.msra.mxu1 %v10510_v22 }
 0x235   : > { %10530 = vmatpush1.msra.mxu0 %v10508_v59  ;;  %11787 = vmatmul.mubr.msk.f32.vlgmr.msra.gmra.mrb[0].mxu1 %vm503_vm1, %v11785_v21 }
 0x236   : > { %10806 = vmatprep.mubr.f32.mxu1 %v12298_v0  ;;  %11786 = vmatmul.mubr.msk.f32.vlgmr.msra.gmra.mrb[0].mxu0 %vm503_vm1, %v11785_v21 }
 0x237   : > { %10735 = vmatprep.mubr.f32.mxu0 %v12298_v0 }
 0x238   : > { %v10503_v24 = vpop.permute.xlu0 %10502  ;;  %v10505_v44 = vpop.permute.xlu1 %10504 }
 0x239   : > { %v10515_v25 = vsel %vm3264_vm8, %v10503_v24, %v10505_v44 }
 0x23a   : > { %10742 = vmatprep.subr.mxu1 %v10515_v25  ;;  %v11327_v25 = vlaneseq }
 0x23e   : > { %v10499_v50 = vpop.permute.xlu0 %10498 }
 0x23f   : > { %v10512_v26 = vsel %vm3264_vm8, %v10497_v14, %v10499_v50  ;;  %v10501_v51 = vpop.permute.xlu1 %10500 }
 0x240   : > { %v10514_v35 = vsel %vm3264_vm8, %v10501_v51, %v10503_v24  ;;  %v10513_v27 = vsel %vm3264_vm8, %v10499_v50, %v10501_v51  ;;  %v11328_v50 = vshrl.u32 %v11327_v25, 7 }
 0x241   : > { %10671 = vmatprep.subr.mxu0 %v10513_v27  ;;  %10743 = vmatpush1.msra.mxu1 %v10514_v35  ;;  %v11323_v35 = vld [vmem:[%s13682_s5] sm:$0xff] }
 0x242   : > { %10672 = vmatpush1.msra.mxu0 %v10512_v26  ;;  %11789 = vmatmul.mubr.msk.f32.vlgmr.msra.gmra.mrb[2].mxu1 %vm503_vm1, %v11785_v21  ;;  %v10507_v6 = vpop.permute.xlu0 %10506  ;;  %v11329_v26 = vsub.s32 0, %v11328_v50  ;;  %v11333_v27 = vsub.s32 1, %v11328_v50 }
 0x243   : > { %v10516_v37 = vsel %vm3264_vm8, %v10505_v44, %v10507_v6  ;;  %v10897_v41 = vpop.permute.xlu1 %10896  ;;  %11980 = vmatprep.subr.mxu1 %v12298_v0  ;;  %11982 = vmatprep.mubr.msk.f32.mxu1 %vm12307_vm2, %v12298_v0 }
 0x244   : > { %11981 = vmatpush3.msra.mxu1 %v10516_v37  ;;  %11788 = vmatmul.mubr.msk.f32.vlgmr.msra.gmra.mrb[2].mxu0 %vm503_vm1, %v11785_v21 }
 0x245   : > { %10999 = vmatprep.mubr.f32.mxu0 %v12298_v0 }
 0x246   : > { %11983 = vmatmul.mubr.msk.f32.vlgmr.msra.gmra.mrb[28].mxu1 %vm503_vm1, %v11785_v21  ;;  %v10899_v7 = vpop.permute.xlu0 %10898  ;;  %v6042_v28 = vpop.f32.mrb[16].mxu1 }
 0x247   : > { %v10895_v1 = vpop.permute.xlu1 %10894  ;;  %v10915_v29 = vsel %vm3671_vm9, %v10897_v41, %v10899_v7  ;;  %v6054_v30 = vadd.f32 %v6042_v28, %v5651_v18  ;;  %11070 = vmatprep.mubr.f32.mxu1 %v12298_v0  ;;  %v11924_v32 = vpop.f32.mrb[17].mxu1 }
 0x248   : > { %v10914_v2 = vsel %vm3671_vm9, %v10895_v1, %v10897_v41  ;;  %10935 = vmatprep.subr.mxu0 %v10915_v29  ;;  %v11334_v1 = vrot.slane %v11323_v35, %v11333_v27  ;;  %v11337_v29 = vsub.s32 2, %v11328_v50  ;;  %v11341_v32 = vsub.s32 3, %v11328_v50 }
 0x249   : > { %10936 = vmatpush1.msra.mxu0 %v10914_v2 }
 0x24a   : > { %v10901_v53 = vpop.permute.xlu0 %10900  ;;  %11792 = vmatmul.mubr.msk.f32.vlgmr.msra.gmra.mrb[0].mxu0 %vm503_vm1, %v11791_v31 }
 0x24b   : > { %v10916_v33 = vsel %vm3671_vm9, %v10899_v7, %v10901_v53  ;;  %v10903_v56 = vpop.permute.xlu1 %10902  ;;  %11141 = vmatprep.mubr.f32.mxu0 %v12298_v0  ;;  %v11330_v7 = vrot.slane %v11323_v35, %v11329_v26 }
 0x24c   : > { %v10917_v34 = vsel %vm3671_vm9, %v10901_v53, %v10903_v56 }
 0x24d   : > { %11006 = vmatprep.subr.mxu1 %v10917_v34  ;;  %v11345_v34 = vsub.s32 4, %v11328_v50 }
 0x24e   : > { %11007 = vmatpush1.msra.mxu1 %v10916_v33  ;;  %v10905_v36 = vpop.permute.xlu0 %10904 }
 0x24f   : > { %v10918_v45 = vsel %vm3671_vm9, %v10903_v56, %v10905_v36  ;;  %11793 = vmatmul.mubr.msk.f32.vlgmr.msra.gmra.mrb[0].mxu1 %vm503_vm1, %v11791_v31  ;;  %v10907_v48 = vpop.permute.xlu1 %10906  ;;  %v11338_v56 = vrot.slane %v11323_v35, %v11337_v29 }
 0x250   : > { %v10919_v38 = vsel %vm3671_vm9, %v10905_v36, %v10907_v48  ;;  %11212 = vmatprep.mubr.f32.mxu1 %v12298_v0 }
 0x251   : > { %11077 = vmatprep.subr.mxu0 %v10919_v38  ;;  %v11349_v38 = vsub.s32 5, %v11328_v50 }
 0x252   : > { %11078 = vmatpush1.msra.mxu0 %v10918_v45  ;;  %v10909_v39 = vpop.permute.xlu0 %10908 }
 0x253   : > { %v10920_v40 = vsel %vm3671_vm9, %v10907_v48, %v10909_v39  ;;  %11794 = vmatmul.mubr.msk.f32.vlgmr.msra.gmra.mrb[2].mxu0 %vm503_vm1, %v11791_v31  ;;  %v10911_v42 = vpop.permute.xlu1 %10910  ;;  %11985 = vmatprep.subr.mxu0 %v12298_v0  ;;  %v6445_v43 = vpop.f32.mrb[18].mxu0  ;;  %v11342_v48 = vrot.slane %v11323_v35, %v11341_v32 }
 0x254   : > { %v10921_v46 = vsel %vm3671_vm9, %v10909_v39, %v10911_v42  ;;  %11987 = vmatprep.mubr.msk.f32.mxu0 %vm12307_vm2, %v12298_v0  ;;  %v6457_v47 = vadd.f32 %v6445_v43, %v6054_v30  ;;  %v11929_v49 = vpop.f32.mrb[19].mxu0 }
 0x255   : > { %11148 = vmatprep.subr.mxu1 %v10921_v46 }
 0x256   : > { %11149 = vmatpush1.msra.mxu1 %v10920_v40  ;;  %v10913_v52 = vpop.permute.xlu0 %10912 }
 0x257   : > { %v10922_v54 = vsel %vm3671_vm9, %v10911_v42, %v10913_v52  ;;  %11795 = vmatmul.mubr.msk.f32.vlgmr.msra.gmra.mrb[2].mxu1 %vm503_vm1, %v11791_v31  ;;  %v11346_v52 = vrot.slane %v11323_v35, %v11345_v34 }
 0x258   : > { %11986 = vmatpush3.msra.mxu0 %v10922_v54  ;;  %v11353_v54 = vsub.s32 6, %v11328_v50 }
 0x259   : > { %11988 = vmatmul.mubr.msk.f32.vlgmr.msra.gmra.mrb[30].mxu0 %vm503_vm1, %v11791_v31 }
 0x26a   : > { %v6852_v55 = vpop.f32.mrb[18].mxu1  ;;  %v13626_v41 = vpop.permute.xlu1 %11301 }
 0x26b   : > { %v6864_v57 = vadd.f32 %v6852_v55, %v6457_v47  ;;  %v11934_v60 = vpop.f32.mrb[19].mxu1 }
 0x26c   : > { %v11350_v60 = vrot.slane %v11323_v35, %v11349_v38 }
 0x27d   : > { %v7258_v61 = vpop.f32.mrb[20].mxu0 }
 0x27e   : > { %v7270_v62 = vadd.f32 %v7258_v61, %v6864_v57  ;;  %v11939_v63 = vpop.f32.mrb[21].mxu0  ;;  %v11357_v61 = vsub.s32 7, %v11328_v50  ;;  %v11797_v50 = vld [vmem:[%s13682_s5 + $0x8] ss:$0 sm:$0xff] }
 0x295   : > { %v7664_v3 = vpop.f32.mrb[20].mxu1 }
 0x296   : > { %v7676_v0 = vadd.f32 %v7664_v3, %v7270_v62  ;;  %v11944_v4 = vpop.f32.mrb[21].mxu1 }
 0x2a2   : > { %v8042_v5 = vpop.f32.mrb[22].mxu0 }
 0x2a3   : > { %v8054_v8 = vadd.f32 %v8042_v5, %v7676_v0  ;;  %v11949_v9 = vpop.f32.mrb[23].mxu0 }
 0x2ae   : > { %v8454_v10 = vpop.f32.mrb[22].mxu1 }
 0x2af   : > { %v8466_v11 = vadd.f32 %v8454_v10, %v8054_v8  ;;  %v11954_v12 = vpop.f32.mrb[23].mxu1 }
 0x2ba   : > { %v8857_v13 = vpop.f32.mrb[24].mxu0 }
 0x2bb   : > { %v8869_v14 = vadd.f32 %v8857_v13, %v8466_v11  ;;  %v11959_v15 = vpop.f32.mrb[25].mxu0  ;;  %v11354_v11 = vrot.slane %v11323_v35, %v11353_v54 }
 0x2cc   : > { %v9260_v16 = vpop.f32.mrb[24].mxu1 }
 0x2cd   : > { %v9272_v17 = vadd.f32 %v9260_v16, %v8869_v14  ;;  %v11964_v18 = vpop.f32.mrb[25].mxu1  ;;  %v11358_v14 = vrot.slane %v11323_v35, %v11357_v61 }
 0x2da   : > { %v9663_v19 = vpop.f32.mrb[26].mxu0 }
 0x2db   : > { %v9675_v20 = vadd.f32 %v9663_v19, %v9272_v17  ;;  %v11969_v21 = vpop.f32.mrb[27].mxu0 }
 0x2f0   : > { %v10066_v22 = vpop.f32.mrb[26].mxu1 }
 0x2f1   : > { %v10078_v58 = vadd.f32 %v10066_v22, %v9675_v20  ;;  %v11974_v23 = vpop.f32.mrb[27].mxu1 }
 0x300   : > { %v10473_v59 = vpop.f32.mrb[28].mxu0 }
 0x301   : > { %v10485_v24 = vadd.f32 %v10473_v59, %v10078_v58  ;;  %v11979_v44 = vpop.f32.mrb[29].mxu0 }
 0x319   : > { %v10879_v51 = vpop.f32.mrb[28].mxu1 }
 0x31a   : > { %v13624_v6 = vadd.f32 %v10879_v51, %v10485_v24  ;;  %v11984_v37 = vpop.f32.mrb[29].mxu1 }
 0x31d   : > { %v11001_v28 = vpop.f32.mrb[0].mxu0 }
 0x31e   : > { %v11003_v31 = vpop.f32.mrb[1].mxu0  ;;  %v11304_v30 = vadd.f32 %v13626_v41, %v11001_v28 }
 0x31f   : > { %v11305_v2 = vadd.f32 %v13626_v41, %v11003_v31 }
 0x320   : > { %11313 = vst [vmem:[%s13631_s14] sm:$0xff] %v11304_v30  ;;  %v11372_v53 = vmul.f32 %v11330_v7, %v11304_v30 }
 0x321   : > { %11314 = vst [vmem:[%s13631_s14 + $0x8] sm:$0xff] %v11305_v2  ;;  %v11373_v33 = vmul.f32 %v11334_v1, %v11305_v2 }
 0x322   : > { %v11392_v36 = vmul.f32 %v11372_v53, %v11372_v53  ;;  %v11072_v45 = vpop.f32.mrb[0].mxu1 }
 0x323   : > { %v11381_v39 = vadd.f32 %v11373_v33, %v11372_v53  ;;  %v11393_v40 = vmul.f32 %v11373_v33, %v11373_v33  ;;  %v11306_v42 = vadd.f32 %v13626_v41, %v11072_v45  ;;  %v11074_v43 = vpop.f32.mrb[1].mxu1 }
 0x324   : > { %v11307_v46 = vadd.f32 %v13626_v41, %v11074_v43 }
 0x325   : > { %v11401_v47 = vadd.f32 %v11393_v40, %v11392_v36  ;;  %11315 = vst [vmem:[%s13631_s14 + $0x10] sm:$0xff] %v11306_v42  ;;  %v11374_v49 = vmul.f32 %v11338_v56, %v11306_v42 }
 0x326   : > { %11316 = vst [vmem:[%s13631_s14 + $0x18] sm:$0xff] %v11307_v46  ;;  %v11375_v55 = vmul.f32 %v11342_v48, %v11307_v46  ;;  %v11143_v57 = vpop.f32.mrb[2].mxu0 }
 0x327   : > { %v11382_v62 = vadd.f32 %v11381_v39, %v11374_v49  ;;  %v11394_v63 = vmul.f32 %v11374_v49, %v11374_v49  ;;  %v11308_v3 = vadd.f32 %v13626_v41, %v11143_v57  ;;  %v11145_v0 = vpop.f32.mrb[3].mxu0 }
 0x328   : > { %v11395_v4 = vmul.f32 %v11375_v55, %v11375_v55  ;;  %v11309_v5 = vadd.f32 %v13626_v41, %v11145_v0 }
 0x329   : > { %v11402_v8 = vadd.f32 %v11401_v47, %v11394_v63  ;;  %v11383_v9 = vadd.f32 %v11382_v62, %v11375_v55  ;;  %11317 = vst [vmem:[%s13631_s14 + $0x20] sm:$0xff] %v11308_v3  ;;  %v11376_v10 = vmul.f32 %v11346_v52, %v11308_v3 }
 0x32a   : > { %11318 = vst [vmem:[%s13631_s14 + $0x28] sm:$0xff] %v11309_v5  ;;  %v11377_v12 = vmul.f32 %v11350_v60, %v11309_v5  ;;  %v11214_v13 = vpop.f32.mrb[2].mxu1 }
 0x32b   : > { %v11403_v15 = vadd.f32 %v11402_v8, %v11395_v4  ;;  %v11384_v16 = vadd.f32 %v11383_v9, %v11376_v10  ;;  %v11396_v17 = vmul.f32 %v11376_v10, %v11376_v10  ;;  %v11310_v18 = vadd.f32 %v13626_v41, %v11214_v13  ;;  %v11216_v19 = vpop.f32.mrb[3].mxu1 }
 0x32c   : > { %v11397_v20 = vmul.f32 %v11377_v12, %v11377_v12  ;;  %v11311_v21 = vadd.f32 %v13626_v41, %v11216_v19  ;;  %v11285_v22 = vpop.f32.mrb[30].mxu0 }
 0x32d   : > { %v11404_v58 = vadd.f32 %v11403_v15, %v11396_v17  ;;  %v11385_v23 = vadd.f32 %v11384_v16, %v11377_v12  ;;  %11319 = vst [vmem:[%s13631_s14 + $0x30] sm:$0xff] %v11310_v18  ;;  %v11378_v59 = vmul.f32 %v11354_v11, %v11310_v18  ;;  %v11297_v24 = vadd.f32 %v11285_v22, %v13624_v6  ;;  %v11989_v44 = vpop.f32.mrb[31].mxu0 }
 0x32e   : > { %11320 = vst [vmem:[%s13631_s14 + $0x38] sm:$0xff] %v11311_v21  ;;  %v11379_v25 = vmul.f32 %v11358_v14, %v11311_v21 }
 0x32f   : > { %v11405_v26 = vadd.f32 %v11404_v58, %v11397_v20  ;;  %v11386_v51 = vadd.f32 %v11385_v23, %v11378_v59  ;;  %v11398_v35 = vmul.f32 %v11378_v59, %v11378_v59  ;;  %v11312_v27 = vadd.f32 %v13626_v41, %v11297_v24 }
 0x330   : > { %v11399_v37 = vmul.f32 %v11379_v25, %v11379_v25  ;;  %v12309_v41 = vmov (!%p11798_p10), 0.0  }
 0x331   : > { %v11406_v7 = vadd.f32 %v11405_v26, %v11398_v35  ;;  %v11387_v28 = vadd.f32 %v11386_v51, %v11379_v25  ;;  %11322 = vst.msk [vmem:[%s13631_s14 + $0x40] sm:$0xff] %vm11321_vm10, %v11312_v27  ;;  %v11380_v1 = vmul.f32 %v11797_v50, %v11312_v27 }
 0x332   : > { %11417 = vst.msk [vmem:[%s12398_s18] sm:$0xff] (!%p11798_p10), %vm11416_vm11, %v12309_v41  ;;  %11418 = vst.msk [vmem:[%s12403_s21] sm:$0xff] (!%p11798_p10), %vm11416_vm11, %v12309_v41 }
 0x333   : > { %v11400_v29 = vmul.f32 %v11380_v1, %v11380_v1  ;;  %v11388_v6 = vsel %vm11321_vm10, %v11380_v1, 0.0  ;;  %v11407_v31 = vadd.f32 %v11406_v7, %v11399_v37 }
 0x334   : > { %v11389_v30 = vadd.f32 %v11388_v6, %v11387_v28 }
 0x335   : > { %v11408_v32 = vsel %vm11321_vm10, %v11400_v29, 0.0 }
 0x336   : > { %11390 = vadd.xlane.f32.xlu0 %v11389_v30  ;;  %v11409_v2 = vadd.f32 %v11408_v32, %v11407_v31 }
 0x338   : > { %11410 = vadd.xlane.f32.xlu1 %v11409_v2 }
 0x3bf   : > { %11415 = sbr.rel (%p11798_p10) target bundleno = 966 (0x3c6), region = 48 }
 0x3c3   : > { %v11391_v53 = vpop.xlane.xlu0 %11390 }
 0x3c5   : > { %v11411_v33 = vpop.xlane.xlu1 %11410 }
 0x3c6 PF: > { %v11419_v56 = vld [vmem:[%s12398_s18] sm:$0xff]  ;;  %vm11421_vm12 = vcmask 7168  }
 0x3c7   : > { %v11423_v34 = vld [vmem:[%s12403_s21] sm:$0xff]  ;;  %v11420_v36 = vadd.f32 %v11419_v56, %v11391_v53 }
 0x3c8   : > { %v11424_v45 = vadd.f32 %v11423_v34, %v11411_v33 }
 0x3c9   : > { %11422 = vst.msk [vmem:[%s12398_s18] sm:$0xff] %vm11421_vm12, %v11420_v36 }
 0x3ca   : > { %11425 = vst.msk [vmem:[%s12403_s21] sm:$0xff] %vm11421_vm12, %v11424_v45 }
 0x3cb PF: > { %s19_s9 = sadd.s32 1, %s12296_s9   ;;  %s13696_s27 = smov %s12288_s29 }
 0x3cc   : > { %p16_p11 = scmp.ge.s32.totalorder %s19_s9, 18   ;;  %s13697_s28 = smov %s12292_s30 }
 0x3cd   : > { %s13698_s29 = smov %s13701_s10  ;;  %s13699_s30 = smov %s13705_s11 }
 0x3ce   :  { %18 = sbr.rel (!%p16_p11) target bundleno = 3 (0x3), region = 134 }

// kernel: adaptive_transposed_conv_upsample.5
= control target key start
LH: loop header
LB: loop body
LE: loop exit
PB: predicated region body
PF: predicated region fallthrough
CT: control target
= control target key end

     0   :  { %8 = vsyncpa [#allocation3], 0  ;;  %s1313_s0 = inlined_call_operand.vmem [shape: f32[2,8,8,32,34], index: 0, kind: input, shape index: {}]   ;;  %s1314_s1 = inlined_call_operand.vmem [shape: f32[2,8,1,1], index: 1, kind: input, shape index: {}]   ;;  %s1315_s2 = inlined_call_operand.vmem [shape: f32[2,8,1,1], index: 2, kind: input, shape index: {}]   ;;  %s1316_s3 = inlined_call_operand.hbm [shape: f32[2,8,8,32,32], index: 3, kind: output, shape index: {}]  }
   0x1   :  { %10 = vsyncpa [#allocation3 + $0x1], 0  ;;  %s986_s12 = smov 0   ;;  %s988_s13 = smov 0  }
   0x2   :  { %s990_s14 = smov 0   ;;  %s992_s15 = smov 0  }
   0x3   :  { %s994_s16 = smov 0   ;;  %s996_s17 = smov 0  }
   0x4   :  { %s998_s18 = smov 0   ;;  %s1000_s19 = smov 0  }
   0x5 LB: > { %s770_s20 = sadd.s32 4294967295, %s956_s19   ;;  %s771_s21 = sadd.s32 4294967294, %s956_s19   ;;  %s956_s19 = sphi %s1000_s19, %s16_s19   ;;  %s952_s18 = sphi %s998_s18, %s1325_s18   ;;  %s948_s17 = sphi %s996_s17, %s1324_s17   ;;  %s944_s16 = sphi %s994_s16, %s1323_s16   ;;  %s940_s15 = sphi %s992_s15, %s1322_s15   ;;  %s936_s14 = sphi %s990_s14, %s1321_s14   ;;  %s932_s13 = sphi %s988_s13, %s1320_s13   ;;  %s928_s12 = sphi %s986_s12, %s1319_s12  }
   0x6   : > { %s25_s22 = sadd.s32 1, %s948_s17  ;;  %s28_s23 = sadd.s32 1, %s952_s18 }
   0x7   : > { %p26_p0 = scmp.ge.s32.totalorder %s25_s22, 8  ;;  %p127_p1 = scmp.ne.s32.totalorder %s936_s14, %s932_s13 }
   0x8   : > { %p128_p2 = scmp.eq.s32.totalorder %s770_s20, 15  ;;  %p133_p5 = scmp.ne.s32.totalorder %s932_s13, %s928_s12 }
   0x9   : > { %s1327_s22 = smov (%p26_p0, %s25_s22), 0  ;;  %s1329_s23 = smov (!%p26_p0, %s28_s23), %s952_s18 }
   0xa   : > { %s113_s24 = ssub.s32 %s948_s17, %s1327_s22  ;;  %p1037_p3 = por %p128_p2, %p127_p1 }
   0xb   : > { %p30_p4 = scmp.ge.s32.totalorder %s1329_s23, 2  ;;  %p134_p6 = scmp.eq.s32.totalorder %s771_s21, 15 }
   0xc   : > { %p774_p7 = scmp.ge.s32.totalorder %s956_s19, 1  ;;  %p178_p9 = scmp.lt.s32.totalorder %s956_s19, 17 }
   0xd   : > { %s1331_s23 = smov (%p30_p4, %s1329_s23), 0  ;;  %p1046_p8 = por %p134_p6, %p133_p5 }
   0xe   : > { %s112_s27 = ssub.s32 %s952_s18, %s1331_s23  ;;  %s117_s28 = sadd.s32 1, %s936_s14 }
   0xf   : > { %s114_s29 = sor.u32 %s113_s24, %s112_s27  ;;  %p179_p10 = pnand %p774_p7, %p178_p9 }
  0x10   : > { %p115_p11 = scmp.eq.s32.totalorder %s114_s29, 0  ;;  %p214_p12 = scmp.lt.s32.totalorder (!%p179_p10), %s944_s16, 1  ;;  %v958_v0 = vmov (!%p179_p10), 0   ;;  %vm583_vm0 = vcmask (!%p179_p10), 261120  }
  0x11   : > { %182 = sbr.rel (%p179_p10) target bundleno = 219 (0xdb), region = 32  ;;  %889 = vset.pattern.permute.xlu1 (!%p179_p10), %v958_v0  ;;  %888 = vset.pattern.permute.xlu0 (!%p179_p10), %v958_v0  ;;  %s211_s20 = sand.u32 (!%p179_p10), 1, %s932_s13  }
  0x12   : > { %s1055_s30 = scalar_select %p115_p11, %s936_s14, %s117_s28  }
  0x13   : > { %p216_p13 = scmp.lt.s32.totalorder (!%p179_p10), %s940_s15, 7  ;;  %s617_s9 = scalar_lea.sflag (!%p179_p10), [#allocation3], %s211_s20 }
  0x18   : > { %s1059_s4 = scalar_select %p214_p12, %s944_s16, 1 }
  0x19   : > { %s217_s21 = scalar_select %p216_p13, %s940_s15, 7 }
  0x1a   : > { %s779_s5 = sshll.u32 %s1059_s4, 3  ;;  %s777_s27 = sshll.u32 %s1059_s4, 8 }
  0x1b   : > { %s226_s8 = scalar_lea.vmem %s1314_s1, %s779_s5  ;;  %s230_s11 = scalar_lea.vmem %s1315_s2, %s779_s5 }
  0x1c   : > { %v783_v1 = vld [vmem:[%s226_s8 + $0x2] ss:$0 sm:$0xff]  ;;  %v781_v2 = vld [vmem:[%s226_s8] ss:$0 sm:$0xff]  ;;  %v784_v3 = vld [vmem:[%s226_s8 + $0x3] ss:$0 sm:$0xff] }
  0x1d   : > { %320 = vperm.xlu1 %889, %v783_v1   ;;  %312 = vperm.xlu0 %888, %v781_v2   ;;  %v782_v4 = vld [vmem:[%s226_s8 + $0x1] ss:$0 sm:$0xff]  ;;  %v786_v5 = vld [vmem:[%s226_s8 + $0x5] ss:$0 sm:$0xff]  ;;  %v785_v6 = vld [vmem:[%s226_s8 + $0x4] ss:$0 sm:$0xff] }
  0x1e   : > { %v788_v7 = vld [vmem:[%s226_s8 + $0x7] ss:$0 sm:$0xff]  ;;  %v787_v8 = vld [vmem:[%s226_s8 + $0x6] ss:$0 sm:$0xff]  ;;  %v790_v9 = vld [vmem:[%s230_s11 + $0x1] ss:$0 sm:$0xff] }
  0x1f   : > { %v789_v10 = vld [vmem:[%s230_s11] ss:$0 sm:$0xff]  ;;  %v792_v11 = vld [vmem:[%s230_s11 + $0x3] ss:$0 sm:$0xff]  ;;  %v791_v12 = vld [vmem:[%s230_s11 + $0x2] ss:$0 sm:$0xff] }
  0x20   : > { %v794_v13 = vld [vmem:[%s230_s11 + $0x5] ss:$0 sm:$0xff]  ;;  %v793_v14 = vld [vmem:[%s230_s11 + $0x4] ss:$0 sm:$0xff]  ;;  %v796_v15 = vld [vmem:[%s230_s11 + $0x7] ss:$0 sm:$0xff] }
  0x21   : > { %324 = vperm.xlu1 %889, %v784_v3   ;;  %316 = vperm.xlu0 %888, %v782_v4   ;;  %v795_v16 = vld [vmem:[%s230_s11 + $0x6] ss:$0 sm:$0xff]  ;;  %s776_s24 = sshll.u32 %s217_s21, 5  ;;  %s1148_s4 = sshll.u32 %s211_s20, 8 }
  0x22   : > { %s220_s28 = sadd.s32 %s777_s27, %s776_s24  ;;  %s1162_s8 = scalar_lea.vmem [#allocation2], %s1148_s4 }
  0x23   : > { %s778_s29 = sshll.u32 %s220_s28, 3 }
  0x24   : > { %s1075_s7 = scalar_lea.vmem %s1313_s0, %s778_s29 }
  0x25   : > { %332 = vperm.xlu1 %889, %v786_v5   ;;  %328 = vperm.xlu0 %888, %v785_v6   ;;  %v239_v19 = vld [vmem:[%s1075_s7 + $0x40] sm:$0xff]  ;;  %v240_v20 = vld [vmem:[%s1075_s7 + $0x48] sm:$0xff]  ;;  %v241_v21 = vld [vmem:[%s1075_s7 + $0x50] sm:$0xff] }
  0x26   : > { %v242_v24 = vld [vmem:[%s1075_s7 + $0x58] sm:$0xff]  ;;  %v231_v25 = vld [vmem:[%s1075_s7] sm:$0xff]  ;;  %v232_v26 = vld [vmem:[%s1075_s7 + $0x8] sm:$0xff] }
  0x27   : > { %v233_v27 = vld [vmem:[%s1075_s7 + $0x10] sm:$0xff]  ;;  %v234_v28 = vld [vmem:[%s1075_s7 + $0x18] sm:$0xff]  ;;  %v243_v29 = vld [vmem:[%s1075_s7 + $0x60] sm:$0xff] }
  0x28   : > { %v244_v30 = vld [vmem:[%s1075_s7 + $0x68] sm:$0xff]  ;;  %v245_v31 = vld [vmem:[%s1075_s7 + $0x70] sm:$0xff]  ;;  %v246_v32 = vld [vmem:[%s1075_s7 + $0x78] sm:$0xff] }
  0x29   : > { %340 = vperm.xlu1 %889, %v788_v7   ;;  %336 = vperm.xlu0 %888, %v787_v8   ;;  %v235_v33 = vld [vmem:[%s1075_s7 + $0x20] sm:$0xff]  ;;  %v236_v34 = vld [vmem:[%s1075_s7 + $0x28] sm:$0xff]  ;;  %v237_v35 = vld [vmem:[%s1075_s7 + $0x30] sm:$0xff] }
  0x2a   : > { %v238_v36 = vld [vmem:[%s1075_s7 + $0x38] sm:$0xff]  ;;  %v251_v42 = vld [vmem:[%s1075_s7 + $0xa0] sm:$0xff]  ;;  %v252_v43 = vld [vmem:[%s1075_s7 + $0xa8] sm:$0xff] }
  0x2b   : > { %v253_v44 = vld [vmem:[%s1075_s7 + $0xb0] sm:$0xff]  ;;  %v254_v49 = vld [vmem:[%s1075_s7 + $0xb8] sm:$0xff]  ;;  %v247_v50 = vld [vmem:[%s1075_s7 + $0x80] sm:$0xff] }
  0x2c   : > { %v248_v51 = vld [vmem:[%s1075_s7 + $0x88] sm:$0xff]  ;;  %v249_v56 = vld [vmem:[%s1075_s7 + $0x90] sm:$0xff]  ;;  %v250_v57 = vld [vmem:[%s1075_s7 + $0x98] sm:$0xff] }
  0x2d   : > { %428 = vperm.xlu1 %889, %v790_v9   ;;  %424 = vperm.xlu0 %888, %v789_v10   ;;  %v259_v58 = vld [vmem:[%s1075_s7 + $0xe0] sm:$0xff]  ;;  %v260_v1 = vld [vmem:[%s1075_s7 + $0xe8] sm:$0xff]  ;;  %v261_v2 = vld [vmem:[%s1075_s7 + $0xf0] sm:$0xff] }
  0x2e   : > { %v262_v3 = vld [vmem:[%s1075_s7 + $0xf8] sm:$0xff]  ;;  %v255_v8 = vld [vmem:[%s1075_s7 + $0xc0] sm:$0xff]  ;;  %v256_v9 = vld [vmem:[%s1075_s7 + $0xc8] sm:$0xff] }
  0x2f   : > { %v257_v10 = vld [vmem:[%s1075_s7 + $0xd0] sm:$0xff] }
  0x31   : > { %436 = vperm.xlu1 %889, %v792_v11   ;;  %432 = vperm.xlu0 %888, %v791_v12  }
  0x35   : > { %444 = vperm.xlu1 %889, %v794_v13   ;;  %440 = vperm.xlu0 %888, %v793_v14  }
  0x39   : > { %452 = vperm.xlu1 %889, %v796_v15   ;;  %448 = vperm.xlu0 %888, %v795_v16  }
  0x9c   : > { %v321_v17 = vpop.permute.xlu1 %320  ;;  %v313_v18 = vpop.permute.xlu0 %312 }
  0x9d   : > { %v1093_v39 = vmul.f32 %v321_v17, %v239_v19  ;;  %v1095_v40 = vmul.f32 %v321_v17, %v240_v20  ;;  %v1097_v41 = vmul.f32 %v321_v17, %v241_v21  ;;  %v1102_v45 = vmul.f32 %v321_v17, %v242_v24 }
  0x9e   : > { %v343_v46 = vmul.f32 %v313_v18, %v231_v25  ;;  %v344_v47 = vmul.f32 %v313_v18, %v232_v26  ;;  %v345_v48 = vmul.f32 %v313_v18, %v233_v27  ;;  %v346_v52 = vmul.f32 %v313_v18, %v234_v28 }
  0xa0   : > { %v325_v22 = vpop.permute.xlu1 %324  ;;  %v317_v23 = vpop.permute.xlu0 %316 }
  0xa1   : > { %v1107_v53 = vmul.f32 %v325_v22, %v243_v29  ;;  %v1109_v54 = vmul.f32 %v325_v22, %v244_v30  ;;  %v1111_v55 = vmul.f32 %v325_v22, %v245_v31  ;;  %v1116_v59 = vmul.f32 %v325_v22, %v246_v32  ;;  %v258_v29 = vld [vmem:[%s1075_s7 + $0xd8] sm:$0xff] }
  0xa2   : > { %v347_v60 = vmul.f32 %v317_v23, %v235_v33  ;;  %v348_v61 = vmul.f32 %v317_v23, %v236_v34  ;;  %v349_v62 = vmul.f32 %v317_v23, %v237_v35  ;;  %v350_v4 = vmul.f32 %v317_v23, %v238_v36 }
  0xa4   : > { %v333_v37 = vpop.permute.xlu1 %332  ;;  %v329_v38 = vpop.permute.xlu0 %328 }
  0xa5   : > { %v1121_v5 = vmul.f32 %v333_v37, %v251_v42  ;;  %v1123_v6 = vmul.f32 %v333_v37, %v252_v43  ;;  %v1125_v7 = vmul.f32 %v333_v37, %v253_v44  ;;  %v1130_v11 = vmul.f32 %v333_v37, %v254_v49 }
  0xa6   : > { %v1132_v12 = vmul.f32 %v329_v38, %v247_v50  ;;  %v1134_v13 = vmul.f32 %v329_v38, %v248_v51  ;;  %v1136_v14 = vmul.f32 %v329_v38, %v249_v56  ;;  %v1138_v15 = vmul.f32 %v329_v38, %v250_v57 }
  0xa8   : > { %v341_v63 = vpop.permute.xlu1 %340  ;;  %v337_v0 = vpop.permute.xlu0 %336 }
  0xa9   : > { %v1140_v16 = vmul.f32 %v341_v63, %v259_v58  ;;  %v1142_v17 = vmul.f32 %v341_v63, %v260_v1  ;;  %v1144_v18 = vmul.f32 %v341_v63, %v261_v2  ;;  %v1150_v21 = vmul.f32 %v341_v63, %v262_v3 }
  0xaa   : > { %v1152_v22 = vmul.f32 %v337_v0, %v255_v8  ;;  %v1154_v23 = vmul.f32 %v337_v0, %v256_v9  ;;  %v1156_v24 = vmul.f32 %v337_v0, %v257_v10  ;;  %v1159_v37 = vmul.f32 %v337_v0, %v258_v29 }
  0xac   : > { %v429_v19 = vpop.permute.xlu1 %428  ;;  %v425_v20 = vpop.permute.xlu0 %424 }
  0xad   : > { %v459_v25 = vadd.f32 %v429_v19, %v347_v60  ;;  %v460_v26 = vadd.f32 %v429_v19, %v348_v61  ;;  %v461_v27 = vadd.f32 %v429_v19, %v349_v62  ;;  %v462_v28 = vadd.f32 %v429_v19, %v350_v4 }
  0xae   : > { %v455_v30 = vadd.f32 %v425_v20, %v343_v46  ;;  %v456_v31 = vadd.f32 %v425_v20, %v344_v47  ;;  %v457_v32 = vadd.f32 %v425_v20, %v345_v48  ;;  %v458_v33 = vadd.f32 %v425_v20, %v346_v52 }
  0xaf   : > { %vm491_vm1 = vcmp.ge.f32.partialorder %v459_v25, 0.0  ;;  %vm492_vm2 = vcmp.ge.f32.partialorder %v460_v26, 0.0  ;;  %vm493_vm3 = vcmp.ge.f32.partialorder %v461_v27, 0.0  ;;  %vm494_vm4 = vcmp.ge.f32.partialorder %v462_v28, 0.0 }
  0xb0   : > { %v523_v34 = vmul.f32 0.01, %v459_v25  ;;  %v524_v35 = vmul.f32 0.01, %v460_v26  ;;  %v525_v36 = vmul.f32 0.01, %v461_v27  ;;  %v437_v42 = vpop.permute.xlu1 %436  ;;  %v433_v58 = vpop.permute.xlu0 %432 }
  0xb1   : > { %v526_v38 = vmul.f32 0.01, %v462_v28  ;;  %vm487_vm5 = vcmp.ge.f32.partialorder %v455_v30, 0.0  ;;  %vm488_vm6 = vcmp.ge.f32.partialorder %v456_v31, 0.0  ;;  %vm489_vm7 = vcmp.ge.f32.partialorder %v457_v32, 0.0 }
  0xb2   : > { %v555_v43 = vsel %vm491_vm1, %v459_v25, %v523_v34  ;;  %v556_v44 = vsel %vm492_vm2, %v460_v26, %v524_v35  ;;  %v557_v46 = vsel %vm493_vm3, %v461_v27, %v525_v36  ;;  %vm490_vm8 = vcmp.ge.f32.partialorder %v458_v33, 0.0 }
  0xb3   : > { %v558_v47 = vsel %vm494_vm4, %v462_v28, %v526_v38  ;;  %588 = vst.msk [vmem:[%s1162_s8 + $0x20] sm:$0xff] %vm583_vm0, %v555_v43  ;;  %589 = vst.msk [vmem:[%s1162_s8 + $0x28] sm:$0xff] %vm583_vm0, %v556_v44  ;;  %v519_v48 = vmul.f32 0.01, %v455_v30  ;;  %v520_v49 = vmul.f32 0.01, %v456_v31  ;;  %v467_v52 = vadd.f32 %v437_v42, %v1107_v53 }
  0xb4   : > { %590 = vst.msk [vmem:[%s1162_s8 + $0x30] sm:$0xff] %vm583_vm0, %v557_v46  ;;  %v521_v50 = vmul.f32 0.01, %v457_v32  ;;  %591 = vst.msk [vmem:[%s1162_s8 + $0x38] sm:$0xff] %vm583_vm0, %v558_v47  ;;  %v522_v51 = vmul.f32 0.01, %v458_v33  ;;  %v468_v56 = vadd.f32 %v437_v42, %v1109_v54  ;;  %v469_v57 = vadd.f32 %v437_v42, %v1111_v55  ;;  %v445_v4 = vpop.permute.xlu1 %444  ;;  %v441_v28 = vpop.permute.xlu0 %440 }
  0xb5   : > { %v551_v60 = vsel %vm487_vm5, %v455_v30, %v519_v48  ;;  %v552_v61 = vsel %vm488_vm6, %v456_v31, %v520_v49  ;;  %v470_v63 = vadd.f32 %v437_v42, %v1116_v59  ;;  %vm499_vm9 = vcmp.ge.f32.partialorder %v467_v52, 0.0 }
  0xb6   : > { %v553_v62 = vsel %vm489_vm7, %v457_v32, %v521_v50  ;;  %v554_v0 = vsel %vm490_vm8, %v458_v33, %v522_v51  ;;  %584 = vst.msk [vmem:[%s1162_s8] sm:$0xff] %vm583_vm0, %v551_v60  ;;  %585 = vst.msk [vmem:[%s1162_s8 + $0x8] sm:$0xff] %vm583_vm0, %v552_v61  ;;  %vm500_vm10 = vcmp.ge.f32.partialorder %v468_v56, 0.0  ;;  %vm501_vm11 = vcmp.ge.f32.partialorder %v469_v57, 0.0 }
  0xb7   : > { %586 = vst.msk [vmem:[%s1162_s8 + $0x10] sm:$0xff] %vm583_vm0, %v553_v62  ;;  %587 = vst.msk [vmem:[%s1162_s8 + $0x18] sm:$0xff] %vm583_vm0, %v554_v0  ;;  %vm502_vm12 = vcmp.ge.f32.partialorder %v470_v63, 0.0  ;;  %v531_v53 = vmul.f32 0.01, %v467_v52  ;;  %v463_v55 = vadd.f32 %v433_v58, %v1093_v39  ;;  %v464_v2 = vadd.f32 %v433_v58, %v1095_v40 }
  0xb8   : > { %v532_v54 = vmul.f32 0.01, %v468_v56  ;;  %v533_v59 = vmul.f32 0.01, %v469_v57  ;;  %v534_v1 = vmul.f32 0.01, %v470_v63  ;;  %v465_v3 = vadd.f32 %v433_v58, %v1097_v41  ;;  %v453_v38 = vpop.permute.xlu1 %452  ;;  %v449_v51 = vpop.permute.xlu0 %448 }
  0xb9   : > { %v563_v8 = vsel %vm499_vm9, %v467_v52, %v531_v53  ;;  %v466_v10 = vadd.f32 %v433_v58, %v1102_v45  ;;  %vm495_vm13 = vcmp.ge.f32.partialorder %v463_v55, 0.0  ;;  %vm496_vm14 = vcmp.ge.f32.partialorder %v464_v2, 0.0 }
  0xba   : > { %v564_v9 = vsel %vm500_vm10, %v468_v56, %v532_v54  ;;  %v565_v19 = vsel %vm501_vm11, %v469_v57, %v533_v59  ;;  %v566_v20 = vsel %vm502_vm12, %v470_v63, %v534_v1  ;;  %596 = vst.msk [vmem:[%s1162_s8 + $0x60] sm:$0xff] %vm583_vm0, %v563_v8  ;;  %vm497_vm15 = vcmp.ge.f32.partialorder %v465_v3, 0.0 }
  0xbb   : > { %597 = vst.msk [vmem:[%s1162_s8 + $0x68] sm:$0xff] %vm583_vm0, %v564_v9  ;;  %598 = vst.msk [vmem:[%s1162_s8 + $0x70] sm:$0xff] %vm583_vm0, %v565_v19  ;;  %vm498_vm1 = vcmp.ge.f32.partialorder %v466_v10, 0.0  ;;  %v527_v39 = vmul.f32 0.01, %v463_v55  ;;  %v475_v41 = vadd.f32 %v445_v4, %v1121_v5  ;;  %v476_v26 = vadd.f32 %v445_v4, %v1123_v6 }
  0xbc   : > { %599 = vst.msk [vmem:[%s1162_s8 + $0x78] sm:$0xff] %vm583_vm0, %v566_v20  ;;  %v528_v40 = vmul.f32 0.01, %v464_v2  ;;  %v529_v45 = vmul.f32 0.01, %v465_v3  ;;  %v477_v27 = vadd.f32 %v445_v4, %v1125_v7  ;;  %v478_v31 = vadd.f32 %v445_v4, %v1130_v11 }
  0xbd   : > { %v530_v25 = vmul.f32 0.01, %v466_v10  ;;  %v559_v29 = vsel %vm495_vm13, %v463_v55, %v527_v39  ;;  %vm507_vm2 = vcmp.ge.f32.partialorder %v475_v41, 0.0  ;;  %vm508_vm3 = vcmp.ge.f32.partialorder %v476_v26, 0.0 }
  0xbe   : > { %v560_v30 = vsel %vm496_vm14, %v464_v2, %v528_v40  ;;  %v561_v32 = vsel %vm497_vm15, %v465_v3, %v529_v45  ;;  %592 = vst.msk [vmem:[%s1162_s8 + $0x40] sm:$0xff] %vm583_vm0, %v559_v29  ;;  %vm509_vm4 = vcmp.ge.f32.partialorder %v477_v27, 0.0  ;;  %vm510_vm5 = vcmp.ge.f32.partialorder %v478_v31, 0.0 }
  0xbf   : > { %v562_v33 = vsel %vm498_vm1, %v466_v10, %v530_v25  ;;  %593 = vst.msk [vmem:[%s1162_s8 + $0x48] sm:$0xff] %vm583_vm0, %v560_v30  ;;  %594 = vst.msk [vmem:[%s1162_s8 + $0x50] sm:$0xff] %vm583_vm0, %v561_v32  ;;  %v539_v5 = vmul.f32 0.01, %v475_v41  ;;  %v540_v6 = vmul.f32 0.01, %v476_v26  ;;  %v471_v7 = vadd.f32 %v441_v28, %v1132_v12 }
  0xc0   : > { %595 = vst.msk [vmem:[%s1162_s8 + $0x58] sm:$0xff] %vm583_vm0, %v562_v33  ;;  %v541_v11 = vmul.f32 0.01, %v477_v27  ;;  %v542_v34 = vmul.f32 0.01, %v478_v31  ;;  %v472_v35 = vadd.f32 %v441_v28, %v1134_v13  ;;  %v473_v36 = vadd.f32 %v441_v28, %v1136_v14 }
  0xc1   : > { %v571_v42 = vsel %vm507_vm2, %v475_v41, %v539_v5  ;;  %v572_v43 = vsel %vm508_vm3, %v476_v26, %v540_v6  ;;  %v474_v44 = vadd.f32 %v441_v28, %v1138_v15  ;;  %vm503_vm6 = vcmp.ge.f32.partialorder %v471_v7, 0.0 }
  0xc2   : > { %v573_v46 = vsel %vm509_vm4, %v477_v27, %v541_v11  ;;  %v574_v47 = vsel %vm510_vm5, %v478_v31, %v542_v34  ;;  %604 = vst.msk [vmem:[%s1162_s8 + $0xa0] sm:$0xff] %vm583_vm0, %v571_v42  ;;  %605 = vst.msk [vmem:[%s1162_s8 + $0xa8] sm:$0xff] %vm583_vm0, %v572_v43  ;;  %vm504_vm7 = vcmp.ge.f32.partialorder %v472_v35, 0.0  ;;  %vm505_vm8 = vcmp.ge.f32.partialorder %v473_v36, 0.0 }
  0xc3   : > { %606 = vst.msk [vmem:[%s1162_s8 + $0xb0] sm:$0xff] %vm583_vm0, %v573_v46  ;;  %607 = vst.msk [vmem:[%s1162_s8 + $0xb8] sm:$0xff] %vm583_vm0, %v574_v47  ;;  %vm506_vm9 = vcmp.ge.f32.partialorder %v474_v44, 0.0  ;;  %v535_v12 = vmul.f32 0.01, %v471_v7  ;;  %v483_v14 = vadd.f32 %v453_v38, %v1140_v16  ;;  %v484_v49 = vadd.f32 %v453_v38, %v1142_v17 }
  0xc4   : > { %v536_v13 = vmul.f32 0.01, %v472_v35  ;;  %v537_v15 = vmul.f32 0.01, %v473_v36  ;;  %v538_v48 = vmul.f32 0.01, %v474_v44  ;;  %v485_v50 = vadd.f32 %v453_v38, %v1144_v18 }
  0xc5   : > { %v567_v52 = vsel %vm503_vm6, %v471_v7, %v535_v12  ;;  %v486_v57 = vadd.f32 %v453_v38, %v1150_v21  ;;  %vm515_vm10 = vcmp.ge.f32.partialorder %v483_v14, 0.0  ;;  %vm516_vm11 = vcmp.ge.f32.partialorder %v484_v49, 0.0 }
  0xc6   : > { %v568_v56 = vsel %vm504_vm7, %v472_v35, %v536_v13  ;;  %v569_v58 = vsel %vm505_vm8, %v473_v36, %v537_v15  ;;  %v570_v60 = vsel %vm506_vm9, %v474_v44, %v538_v48  ;;  %600 = vst.msk [vmem:[%s1162_s8 + $0x80] sm:$0xff] %vm583_vm0, %v567_v52  ;;  %vm517_vm12 = vcmp.ge.f32.partialorder %v485_v50, 0.0 }
  0xc7   : > { %601 = vst.msk [vmem:[%s1162_s8 + $0x88] sm:$0xff] %vm583_vm0, %v568_v56  ;;  %602 = vst.msk [vmem:[%s1162_s8 + $0x90] sm:$0xff] %vm583_vm0, %v569_v58  ;;  %vm518_vm13 = vcmp.ge.f32.partialorder %v486_v57, 0.0  ;;  %v547_v16 = vmul.f32 0.01, %v483_v14  ;;  %v479_v18 = vadd.f32 %v449_v51, %v1152_v22  ;;  %v480_v62 = vadd.f32 %v449_v51, %v1154_v23 }
  0xc8   : > { %603 = vst.msk [vmem:[%s1162_s8 + $0x98] sm:$0xff] %vm583_vm0, %v570_v60  ;;  %v548_v17 = vmul.f32 0.01, %v484_v49  ;;  %v549_v21 = vmul.f32 0.01, %v485_v50  ;;  %v481_v63 = vadd.f32 %v449_v51, %v1156_v24  ;;  %v482_v54 = vadd.f32 %v449_v51, %v1159_v37 }
  0xc9   : > { %v550_v61 = vmul.f32 0.01, %v486_v57  ;;  %v579_v0 = vsel %vm515_vm10, %v483_v14, %v547_v16  ;;  %vm511_vm14 = vcmp.ge.f32.partialorder %v479_v18, 0.0  ;;  %vm512_vm15 = vcmp.ge.f32.partialorder %v480_v62, 0.0 }
  0xca   : > { %v580_v53 = vsel %vm516_vm11, %v484_v49, %v548_v17  ;;  %v581_v55 = vsel %vm517_vm12, %v485_v50, %v549_v21  ;;  %612 = vst.msk [vmem:[%s1162_s8 + $0xe0] sm:$0xff] %vm583_vm0, %v579_v0  ;;  %vm513_vm1 = vcmp.ge.f32.partialorder %v481_v63, 0.0  ;;  %vm514_vm2 = vcmp.ge.f32.partialorder %v482_v54, 0.0 }
  0xcb   : > { %v582_v59 = vsel %vm518_vm13, %v486_v57, %v550_v61  ;;  %613 = vst.msk [vmem:[%s1162_s8 + $0xe8] sm:$0xff] %vm583_vm0, %v580_v53  ;;  %614 = vst.msk [vmem:[%s1162_s8 + $0xf0] sm:$0xff] %vm583_vm0, %v581_v55  ;;  %v543_v22 = vmul.f32 0.01, %v479_v18  ;;  %v544_v23 = vmul.f32 0.01, %v480_v62 }
  0xcc   : > { %615 = vst.msk [vmem:[%s1162_s8 + $0xf8] sm:$0xff] %vm583_vm0, %v582_v59  ;;  %v545_v24 = vmul.f32 0.01, %v481_v63  ;;  %v546_v37 = vmul.f32 0.01, %v482_v54 }
  0xcd   : > { %v575_v1 = vsel %vm511_vm14, %v479_v18, %v543_v22  ;;  %v576_v2 = vsel %vm512_vm15, %v480_v62, %v544_v23 }
  0xce   : > { %v577_v3 = vsel %vm513_vm1, %v481_v63, %v545_v24  ;;  %v578_v4 = vsel %vm514_vm2, %v482_v54, %v546_v37  ;;  %608 = vst.msk [vmem:[%s1162_s8 + $0xc0] sm:$0xff] %vm583_vm0, %v575_v1  ;;  %609 = vst.msk [vmem:[%s1162_s8 + $0xc8] sm:$0xff] %vm583_vm0, %v576_v2 }
  0xcf   : > { %610 = vst.msk [vmem:[%s1162_s8 + $0xd0] sm:$0xff] %vm583_vm0, %v577_v3  ;;  %611 = vst.msk [vmem:[%s1162_s8 + $0xd8] sm:$0xff] %vm583_vm0, %v578_v4 }
  0xd0   : > { %s798_s10 = sshll.u32 %s940_s15, 2  ;;  %s799_s11 = sshll.u32 %s944_s16, 8 }
  0xd1   : > { %s629_s21 = sadd.s32 %s799_s11, %s798_s10  ;;  %s648_s24 = sshll.u32 %s1162_s8, 4  ;;  %s649_s24 = int_to_ptr.vmem [resolvable:$true] %s648_s24 }
  0xd2   : > { %s800_s27 = sshll.u32 %s629_s21, 7  ;;  %s959_s5 = smov 512  }
  0xd3   : > { %s631_s20 = scalar_lea.hbm %s1316_s3, %s800_s27  ;;  %803 = sst [smem:[#allocation5]] (%p1037_p3), %s959_s5 }
  0xd4   : > { %s960_s6 = smov 4096   ;;  %s961_s7 = smov 4  }
  0xd5   : > { %804 = sst [smem:[#allocation5 + $0x1]] (%p1037_p3), %s960_s6  ;;  %s962_s15 = smov 128  }
  0xd6   : > { %805 = sst [smem:[#allocation5 + $0x2]] (%p1037_p3), %s961_s7  ;;  %s963_s16 = smov 8  }
  0xd7   : > { %806 = sst [smem:[#allocation5 + $0x3]] (%p1037_p3), %s962_s15  ;;  %s964_s4 = smov [#allocation4]  }
  0xd8   : > { %807 = sst [smem:[#allocation5 + $0x4]] (%p1037_p3), %s962_s15  ;;  %s965_s8 = smov 0  }
  0xd9   : > { %808 = sst [smem:[#allocation5 + $0x5]] (%p1037_p3), %s963_s16 }
  0xda   : > { %809 = dma.general (%p1037_p3), %s649_s24, 4096, %s631_s20, %s617_s9, %s964_s4, [#allocation5], %s965_s8, 0  }
  0xdb PF: > { %p815_p0 = scmp.ge.s32.totalorder %s956_s19, 2  ;;  %s676_s10 = sand.u32 1, %s928_s12  }
  0xdc   : > { %s677_s11 = scalar_lea.sflag [#allocation3], %s676_s10 }
  0xdd   : > { %p812_p1 = pnand %p815_p0, %p1046_p8 }
  0xdf   : > { %923 = dma.done.wait (!%p812_p1), %s677_s11, 4096  }
  0xe0   : > { %925 = vsyncadd (!%p812_p1), %s677_s11, 4294963200  ;;  %s16_s19 = sadd.s32 1, %s956_s19   ;;  %s1319_s12 = smov %s932_s13 }
  0xe1   : > { %p13_p2 = scmp.ge.s32.totalorder %s16_s19, 18   ;;  %s1320_s13 = smov %s936_s14 }
  0xe2   : > { %s1321_s14 = smov %s1055_s30  ;;  %s1322_s15 = smov %s948_s17 }
  0xe3   : > { %s1323_s16 = smov %s952_s18  ;;  %s1324_s17 = smov %s1327_s22 }
  0xe4   : > { %s1325_s18 = smov %s1331_s23  ;;  %15 = sbr.rel (!%p13_p2) target bundleno = 5 (0x5), region = 78 }
  0xeb   :  { %682 = vsyncpa [#allocation3], 1 }
  0xec   :  { %684 = vsyncpa [#allocation3 + $0x1], 1 }

</bundles_post_ra>
